<compile_context>
chip_gen: v6e
topology: v6e:2x2x1
jax: 0.10.0
libtpu: 0.0.40
codegen_flags: <defaults>
</compile_context>

<pallas_src>
import numpy as np
import jax
import jax.numpy as jnp
from jax.experimental import pallas as pl
from jax.experimental.pallas import tpu as pltpu

# ---- hyperparameters (consistent with Block(dim=128, num_heads=4)) ----
B = 2
N = 16                     # sequence length
BN = B * N
DIM = 128                  # embedding dim
NUM_HEADS = 4
HEAD_DIM = DIM // NUM_HEADS
MLP_HIDDEN = int(DIM * 4.0)
CA_RED = DIM // 16         # ChannelAttention reduction_ratio=16
SA_KSIZE = 7               # SpatialAttention conv kernel size
LN_EPS = 1e-6
SCALE = HEAD_DIM ** -0.5
FHN_LO, FHN_HI = -1.5, 1.5


# ---- FHN lookup table (mirrors FHNActivation.__init__'s Newton solve); used only
# ---- by the pure-JAX reference and the tolerance check of the closed form. ----
def _fhn_table(a=0.7, b=0.8, lo=FHN_LO, hi=FHN_HI, num_points=100, newton_iters=50):
    I = np.linspace(lo, hi, num_points).astype(np.float32)
    vs = []
    for Ii in I:
        v = np.float32(0.0)
        for _ in range(newton_iters):
            f = v - v ** 3 / 3.0 - (v + a) / b + Ii
            fp = 1.0 - v ** 2 - 1.0 / b
            v = np.float32(v - f / fp)
        vs.append(v)
    return I, np.asarray(vs, dtype=np.float32)


_FHN_I, _FHN_V = _fhn_table()


def _fhn_closed(x):
    """Exact root of the FHN equilibrium cubic  v^3 + 0.75 v + (2.625 - 3 I) = 0.

    v(I) = -sinh(arsinh(10.5 - 12 I) / 3)  (single real root, hyperbolic Cardano).
    ~10 cheap f32 ops/element vs the reference's 99-segment LUT interpolation.
    """
    # TODO(synk): exact LUT piecewise-linear semantics would need a vector gather;
    # the closed form deviates from the LUT PWL by <3e-3 (checked in __main__).
    z = 10.5 - 12.0 * jnp.clip(x, FHN_LO, FHN_HI)
    az = jnp.abs(z)
    u = az + jnp.sqrt(az * az + 1.0)          # exp(arsinh|z|) >= 1 (no cancellation)
    t = jnp.exp(jnp.log(u) * (1.0 / 3.0))     # u^(1/3) >= 1
    s = 0.5 * (t - 1.0 / t)                   # sinh(arsinh|z|/3)
    return jnp.where(z >= 0.0, -s, s)


def _sigmoid(z):
    # exp + approx reciprocal both live on the EUP slot, off the VPU critical path.
    return pl.reciprocal(1.0 + jnp.exp(-z), approx=True)


def _layernorm(v, g, b):
    mu = jnp.mean(v, axis=-1, keepdims=True)
    var = jnp.mean((v - mu) ** 2, axis=-1, keepdims=True)
    return (v - mu) * jax.lax.rsqrt(var + LN_EPS) * g + b


def block_kernel(x_ref, vec_ref, mask_ref, wqkv_ref, wproj_ref, caw1_ref, caw2_ref,
                 band_ref, bias1_ref, fw_ref, w1_hbm, w2_hbm, out_ref,
                 w1_vmem, w2_vmem, dma_sem):
    # Kick off the MLP-weight DMAs immediately; they complete under the attention
    # compute and are only waited on right before their consuming matmuls.
    cp_w1 = pltpu.make_async_copy(w1_hbm, w1_vmem, dma_sem.at[0])
    cp_w2 = pltpu.make_async_copy(w2_hbm, w2_vmem, dma_sem.at[1])
    cp_w1.start()
    cp_w2.start()

    x = x_ref[...]                                         # (B*N, C) f32
    g1 = vec_ref[0:1, :]
    b1 = vec_ref[1:2, :]
    g2 = vec_ref[2:3, :]
    b2 = vec_ref[3:4, :]
    bproj = vec_ref[4:5, :]
    bias2 = vec_ref[5:6, :]
    fw0 = fw_ref[0]                                        # fusion weights from SMEM
    fw1 = fw_ref[1]
    fw2 = fw_ref[2]

    # ---- norm1 (f32 elementwise) ----
    y1 = _layernorm(x, g1, b1)
    y1b = y1.astype(jnp.bfloat16)

    # ---- MHSA: 3 full (32,128)@(128,128) QKV matmuls; scale pre-folded into Wq ----
    q = jnp.dot(y1b, wqkv_ref[:, 0:DIM], preferred_element_type=jnp.float32)
    k = jnp.dot(y1b, wqkv_ref[:, DIM:2 * DIM], preferred_element_type=jnp.float32)
    v = jnp.dot(y1b, wqkv_ref[:, 2 * DIM:3 * DIM], preferred_element_type=jnp.float32)

    # heads -> sublanes: (BN, H*Dh) -> (H*BN, Dh) = (128, 32); XLU relayout work.
    def stack_heads(t):
        return jnp.concatenate(
            [t[:, h * HEAD_DIM:(h + 1) * HEAD_DIM] for h in range(NUM_HEADS)], axis=0)

    qs = stack_heads(q).astype(jnp.bfloat16)
    ks = stack_heads(k).astype(jnp.bfloat16)
    vs = stack_heads(v).astype(jnp.bfloat16)

    # ONE block-masked score matmul + ONE softmax + ONE PV matmul.
    s = jax.lax.dot_general(qs, ks, (((1,), (1,)), ((), ())),
                            preferred_element_type=jnp.float32)      # (128, 128) f32
    s = s + mask_ref[...]                   # kills cross-head and cross-batch blocks
    s = s - jnp.max(s, axis=-1, keepdims=True)
    p = jnp.exp(s)
    p = p * pl.reciprocal(jnp.sum(p, axis=-1, keepdims=True), approx=True)
    o_s = jnp.dot(p.astype(jnp.bfloat16), vs,
                  preferred_element_type=jnp.float32)                 # (H*BN, Dh)

    # heads back to lanes: (H*BN, Dh) -> (BN, H*Dh)
    mhsa = jnp.concatenate(
        [o_s[h * BN:(h + 1) * BN, :] for h in range(NUM_HEADS)], axis=1)

    # ---- channel attention: one shared MLP pass over all [avg; max] stats ----
    stats = []
    for bb in range(B):
        yb = y1[bb * N:(bb + 1) * N, :]
        stats.append(jnp.mean(yb, axis=0, keepdims=True))
        stats.append(jnp.max(yb, axis=0, keepdims=True))
    u = jnp.concatenate(stats, axis=0)                                    # (2B, C)
    h1 = jnp.maximum(jnp.dot(u, caw1_ref[...], preferred_element_type=jnp.float32), 0.0)
    zc = jnp.dot(h1, caw2_ref[...], preferred_element_type=jnp.float32)   # (2B, C)
    ca0 = _sigmoid(zc[0:1, :] + zc[1:2, :])
    ca1 = _sigmoid(zc[2:3, :] + zc[3:4, :])
    ca_full = jnp.concatenate([jnp.broadcast_to(ca0, (N, DIM)),
                               jnp.broadcast_to(ca1, (N, DIM))], axis=0)  # (BN, C)

    # ---- spatial attention: both batches' 7-tap convs as one banded matmul ----
    avg_n = jnp.mean(y1, axis=1, keepdims=True)                           # (BN, 1)
    max_n = jnp.max(y1, axis=1, keepdims=True)                            # (BN, 1)
    stat = jnp.concatenate([avg_n, max_n], axis=0)                        # (2BN, 1)
    sa_vec = _sigmoid(jnp.dot(band_ref[...], stat,
                              preferred_element_type=jnp.float32))        # (BN, 1)
    sa_full = jnp.broadcast_to(sa_vec, (BN, DIM))

    # ---- fuse the three branches, then a SINGLE output projection ----
    fused = fw0 * mhsa + fw1 * (y1 * ca_full) + fw2 * (y1 * sa_full)
    attn_out = jnp.dot(fused.astype(jnp.bfloat16), wproj_ref[...],
                       preferred_element_type=jnp.float32) + bproj

    x2 = x + attn_out                                      # residual 1

    # ---- norm2 + MLP with closed-form FHN activation (weights DMA'd above) ----
    y2 = _layernorm(x2, g2, b2)
    cp_w1.wait()
    hdn = jnp.dot(y2.astype(jnp.bfloat16), w1_vmem[...],
                  preferred_element_type=jnp.float32) + bias1_ref[...]
    hdn = _fhn_closed(hdn)
    cp_w2.wait()
    mlp_out = jnp.dot(hdn.astype(jnp.bfloat16), w2_vmem[...],
                      preferred_element_type=jnp.float32) + bias2

    out_ref[...] = x2 + mlp_out                            # residual 2


# ---------------- parameters ----------------
def init_params(key):
    ks = jax.random.split(key, 10)

    def w(k, shape, scale=0.02):
        return scale * jax.random.normal(k, shape, dtype=jnp.float32)

    p = {}
    # LayerNorms (torch default init: gamma=1, beta=0)
    p["g1"] = jnp.ones((DIM,), jnp.float32)
    p["b1"] = jnp.zeros((DIM,), jnp.float32)
    p["g2"] = jnp.ones((DIM,), jnp.float32)
    p["b2"] = jnp.zeros((DIM,), jnp.float32)
    # attention (Linear weights stored pre-transposed: y = x @ W^T); qkv_bias=False
    p["wqkv_t"] = w(ks[0], (DIM, 3 * DIM))
    p["wproj_t"] = w(ks[1], (DIM, DIM))
    p["bproj"] = w(ks[2], (DIM,))
    # channel-attention MLP (bias=False)
    p["caw1_t"] = w(ks[3], (DIM, CA_RED))
    p["caw2_t"] = w(ks[4], (CA_RED, DIM))
    # spatial-attention Conv1d(2, 1, 7, padding=3, bias=False) raw taps
    p["conv_w"] = w(ks[5], (2, SA_KSIZE))
    # fusion parameter = ones(3)/3, softmaxed at forward time (inference-time prep)
    p["fw"] = jax.nn.softmax(jnp.ones((3,), jnp.float32) / 3.0)
    # MLP
    p["w1_t"] = w(ks[6], (DIM, MLP_HIDDEN))
    p["bias1"] = w(ks[7], (MLP_HIDDEN,))
    p["w2_t"] = w(ks[8], (MLP_HIDDEN, DIM))
    p["bias2"] = w(ks[9], (DIM,))
    return p


def pack_params(p):
    """Host-side (free) re-layout of parameters into lane-friendly kernel operands."""
    # qkv weight (DIM, 3*DIM), columns already ordered [q-heads | k-heads | v-heads];
    # fold the attention scale into the Q columns so the kernel skips the VPU multiply.
    wqkv = np.asarray(p["wqkv_t"], np.float32).copy()
    wqkv[:, 0:DIM] *= SCALE

    # combined head+batch additive mask for the head-stacked (128,128) score matmul:
    # row/col = head*BN + token, allowed iff same head AND same batch.
    mask = np.full((NUM_HEADS * BN, NUM_HEADS * BN), -1e30, np.float32)
    for h in range(NUM_HEADS):
        for bb in range(B):
            r0 = h * BN + bb * N
            mask[r0:r0 + N, r0:r0 + N] = 0.0

    # Conv1d(2,1,7,pad=3) for BOTH batches as one block-diagonal banded (BN, 2*BN)
    # matrix acting on the stacked [avg(all tokens); max(all tokens)] column vector.
    cw = np.asarray(p["conv_w"])
    pad = SA_KSIZE // 2
    band = np.zeros((BN, 2 * BN), np.float32)
    for bb in range(B):
        for nn in range(N):
            for m in range(N):
                kk = m - nn + pad
                if 0 <= kk < SA_KSIZE:
                    band[bb * N + nn, bb * N + m] = cw[0, kk]        # avg-channel taps
                    band[bb * N + nn, BN + bb * N + m] = cw[1, kk]   # max-channel taps

    # small per-channel vectors packed into one lane-dense (8, DIM) slab
    vec = np.zeros((8, DIM), np.float32)
    vec[0] = np.asarray(p["g1"])
    vec[1] = np.asarray(p["b1"])
    vec[2] = np.asarray(p["g2"])
    vec[3] = np.asarray(p["b2"])
    vec[4] = np.asarray(p["bproj"])
    vec[5] = np.asarray(p["bias2"])

    return dict(
        vec_pack=jnp.asarray(vec),
        mask=jnp.asarray(mask),
        wqkv=jnp.asarray(wqkv).astype(jnp.bfloat16),         # bf16 weight DMA
        wproj=jnp.asarray(p["wproj_t"]).astype(jnp.bfloat16),
        caw1=p["caw1_t"],
        caw2=p["caw2_t"],
        band=jnp.asarray(band),
        bias1=p["bias1"].reshape(1, MLP_HIDDEN),
        fw=p["fw"],
        w1=jnp.asarray(p["w1_t"]).astype(jnp.bfloat16),      # DMA-hidden in-kernel
        w2=jnp.asarray(p["w2_t"]).astype(jnp.bfloat16),      # DMA-hidden in-kernel
    )


def block_forward(x, packed):
    bsz, n, c = x.shape
    assert (bsz, n, c) == (B, N, DIM)
    x2d = x.reshape(bsz * n, c)                 # lane-dense (B*N, C) slab
    operands = (x2d, packed["vec_pack"], packed["mask"], packed["wqkv"],
                packed["wproj"], packed["caw1"], packed["caw2"], packed["band"],
                packed["bias1"], packed["fw"], packed["w1"], packed["w2"])
    vmem = pl.BlockSpec(memory_space=pltpu.MemorySpace.VMEM)
    smem = pl.BlockSpec(memory_space=pltpu.MemorySpace.SMEM)
    anyspace = pl.BlockSpec(memory_space=pl.ANY)             # manual DMA in-kernel
    in_specs = [vmem] * 9 + [smem, anyspace, anyspace]
    out = pl.pallas_call(
        block_kernel,
        out_shape=jax.ShapeDtypeStruct((bsz * n, c), jnp.float32),
        in_specs=in_specs,
        out_specs=vmem,
        scratch_shapes=[
            pltpu.VMEM((DIM, MLP_HIDDEN), jnp.bfloat16),     # w1 landing buffer
            pltpu.VMEM((MLP_HIDDEN, DIM), jnp.bfloat16),     # w2 landing buffer
            pltpu.SemaphoreType.DMA((2,)),
        ],
    )(*operands)
    return out.reshape(bsz, n, c)


# ---------------- pure-JAX reference (mirrors the torch module, f32) ----------------
def block_reference(x, p):
    def ln(v, g, b):
        mu = jnp.mean(v, axis=-1, keepdims=True)
        var = jnp.mean((v - mu) ** 2, axis=-1, keepdims=True)
        return (v - mu) / jnp.sqrt(var + LN_EPS) * g + b

    y1 = ln(x, p["g1"], p["b1"])
    # MHSA
    qkv = (y1 @ p["wqkv_t"]).reshape(B, N, 3, NUM_HEADS, HEAD_DIM).transpose(2, 0, 3, 1, 4)
    q, k, v = qkv[0], qkv[1], qkv[2]
    attn = jnp.einsum("bhnd,bhmd->bhnm", q, k) * SCALE
    attn = jax.nn.softmax(attn, axis=-1)
    mhsa = jnp.einsum("bhnm,bhmd->bhnd", attn, v).transpose(0, 2, 1, 3).reshape(B, N, DIM)
    # channel attention
    mlp = lambda z: jnp.maximum(z @ p["caw1_t"], 0.0) @ p["caw2_t"]
    ca = jax.nn.sigmoid(mlp(jnp.mean(y1, axis=1)) + mlp(jnp.max(y1, axis=1)))[:, None, :]
    channel_out = y1 * ca
    # spatial attention (explicit zero-padded 7-tap cross-correlation)
    pad = SA_KSIZE // 2
    ap = jnp.pad(jnp.mean(y1, axis=2), ((0, 0), (pad, pad)))
    mp = jnp.pad(jnp.max(y1, axis=2), ((0, 0), (pad, pad)))
    logit = jnp.zeros((B, N), jnp.float32)
    for kk in range(SA_KSIZE):
        logit = logit + p["conv_w"][0, kk] * ap[:, kk:kk + N] \
                      + p["conv_w"][1, kk] * mp[:, kk:kk + N]
    spatial_out = y1 * jax.nn.sigmoid(logit)[:, :, None]
    fw = p["fw"]
    fused = fw[0] * mhsa + fw[1] * channel_out + fw[2] * spatial_out
    x2 = x + fused @ p["wproj_t"] + p["bproj"]
    # MLP with LUT + piecewise-linear FHN (exact reference semantics)
    y2 = ln(x2, p["g2"], p["b2"])
    hdn = y2 @ p["w1_t"] + p["bias1"]
    hdn = jnp.interp(jnp.clip(hdn, FHN_LO, FHN_HI),
                     jnp.asarray(_FHN_I), jnp.asarray(_FHN_V))
    return x2 + hdn @ p["w2_t"] + p["bias2"]


if __name__ == "__main__":
    # tolerance test: closed-form FHN vs the reference LUT + piecewise-linear interp
    xs = np.linspace(FHN_LO - 0.1, FHN_HI + 0.1, 4001)
    pwl = np.interp(np.clip(xs, FHN_LO, FHN_HI),
                    _FHN_I.astype(np.float64), _FHN_V.astype(np.float64))
    z = 10.5 - 12.0 * np.clip(xs, FHN_LO, FHN_HI)
    t = np.cbrt(np.abs(z) + np.sqrt(z * z + 1.0))
    closed = np.where(z >= 0.0, -1.0, 1.0) * 0.5 * (t - 1.0 / t)
    assert float(np.max(np.abs(closed - pwl))) < 3e-3, "FHN closed form drifted from LUT"

    key = jax.random.PRNGKey(0)
    kx, kp = jax.random.split(key)
    x = jax.random.normal(kx, (B, N, DIM), dtype=jnp.float32)
    params = init_params(kp)
    packed = pack_params(params)

    out = jax.block_until_ready(block_forward(x, packed))
    assert out.shape == (B, N, DIM)
    assert bool(jnp.all(jnp.isfinite(out)))

    # end-to-end tolerance test against the pure-JAX f32 reference of the module
    ref = jax.block_until_ready(block_reference(x, params))
    err = float(jnp.max(jnp.abs(out - ref)))
    assert err < 5e-2, f"kernel deviates from reference by {err}"

    print("KERNEL_OK")
</pallas_src>

<mosaic_0001>
module attributes {stable_mosaic.version = 11 : i64} {
  func.func @block_kernel(%arg0: memref<32x128xf32, #tpu.memory_space<vmem>>, %arg1: memref<8x128xf32, #tpu.memory_space<vmem>>, %arg2: memref<128x128xf32, #tpu.memory_space<vmem>>, %arg3: memref<128x384xbf16, #tpu.memory_space<vmem>>, %arg4: memref<128x128xbf16, #tpu.memory_space<vmem>>, %arg5: memref<128x8xf32, #tpu.memory_space<vmem>>, %arg6: memref<8x128xf32, #tpu.memory_space<vmem>>, %arg7: memref<32x64xf32, #tpu.memory_space<vmem>>, %arg8: memref<1x512xf32, #tpu.memory_space<vmem>>, %arg9: memref<3xf32, #tpu.memory_space<smem>>, %arg10: memref<128x512xbf16, #tpu.memory_space<any>>, %arg11: memref<512x128xbf16, #tpu.memory_space<any>>, %arg12: memref<32x128xf32, #tpu.memory_space<vmem>>, %arg13: memref<128x512xbf16, #tpu.memory_space<vmem>>, %arg14: memref<512x128xbf16, #tpu.memory_space<vmem>>, %arg15: memref<2x!tpu.dma_semaphore, #tpu.memory_space<semaphore_mem>>) attributes {dimension_semantics = [], scalar_prefetch = 0 : i64, scratch_operands = 3 : i64, tpu.core_type = #tpu.core_type<tc>} {
    %c0_i32 = arith.constant 0 : i32
    %0 = tpu.memref_slice %arg15[%c0_i32] : memref<2x!tpu.dma_semaphore, #tpu.memory_space<semaphore_mem>> -> memref<1x!tpu.dma_semaphore, #tpu.memory_space<semaphore_mem>>
    %1 = tpu.memref_squeeze %0 : memref<1x!tpu.dma_semaphore, #tpu.memory_space<semaphore_mem>> -> memref<!tpu.dma_semaphore, #tpu.memory_space<semaphore_mem>>
    tpu.enqueue_dma source(%arg10 : memref<128x512xbf16, #tpu.memory_space<any>>) target(%arg13 : memref<128x512xbf16, #tpu.memory_space<vmem>>) target_semaphore(%1 : memref<!tpu.dma_semaphore, #tpu.memory_space<semaphore_mem>>)
    %c1_i32 = arith.constant 1 : i32
    %2 = tpu.memref_slice %arg15[%c1_i32] : memref<2x!tpu.dma_semaphore, #tpu.memory_space<semaphore_mem>> -> memref<1x!tpu.dma_semaphore, #tpu.memory_space<semaphore_mem>>
    %3 = tpu.memref_squeeze %2 : memref<1x!tpu.dma_semaphore, #tpu.memory_space<semaphore_mem>> -> memref<!tpu.dma_semaphore, #tpu.memory_space<semaphore_mem>>
    tpu.enqueue_dma source(%arg11 : memref<512x128xbf16, #tpu.memory_space<any>>) target(%arg14 : memref<512x128xbf16, #tpu.memory_space<vmem>>) target_semaphore(%3 : memref<!tpu.dma_semaphore, #tpu.memory_space<semaphore_mem>>)
    %c0 = arith.constant 0 : index
    %c0_0 = arith.constant 0 : index
    %4 = vector.load %arg0[%c0, %c0_0] : memref<32x128xf32, #tpu.memory_space<vmem>>, vector<32x128xf32>
    %c0_1 = arith.constant 0 : index
    %c0_2 = arith.constant 0 : index
    %5 = vector.load %arg1[%c0_1, %c0_2] : memref<8x128xf32, #tpu.memory_space<vmem>>, vector<1x128xf32>
    %c1 = arith.constant 1 : index
    %c0_3 = arith.constant 0 : index
    %6 = vector.load %arg1[%c1, %c0_3] : memref<8x128xf32, #tpu.memory_space<vmem>>, vector<1x128xf32>
    %c2 = arith.constant 2 : index
    %c0_4 = arith.constant 0 : index
    %7 = vector.load %arg1[%c2, %c0_4] : memref<8x128xf32, #tpu.memory_space<vmem>>, vector<1x128xf32>
    %c3 = arith.constant 3 : index
    %c0_5 = arith.constant 0 : index
    %8 = vector.load %arg1[%c3, %c0_5] : memref<8x128xf32, #tpu.memory_space<vmem>>, vector<1x128xf32>
    %c4 = arith.constant 4 : index
    %c0_6 = arith.constant 0 : index
    %9 = vector.load %arg1[%c4, %c0_6] : memref<8x128xf32, #tpu.memory_space<vmem>>, vector<1x128xf32>
    %c5 = arith.constant 5 : index
    %c0_7 = arith.constant 0 : index
    %10 = vector.load %arg1[%c5, %c0_7] : memref<8x128xf32, #tpu.memory_space<vmem>>, vector<1x128xf32>
    %c0_8 = arith.constant 0 : index
    %11 = memref.load %arg9[%c0_8] : memref<3xf32, #tpu.memory_space<smem>>
    %c1_9 = arith.constant 1 : index
    %12 = memref.load %arg9[%c1_9] : memref<3xf32, #tpu.memory_space<smem>>
    %c2_10 = arith.constant 2 : index
    %13 = memref.load %arg9[%c2_10] : memref<3xf32, #tpu.memory_space<smem>>
    %cst = arith.constant dense<0.000000e+00> : vector<32xf32>
    %14 = vector.multi_reduction <add>, %4, %cst [1] : vector<32x128xf32> to vector<32xf32>
    %15 = vector.shape_cast %14 : vector<32xf32> to vector<32x1xf32>
    %cst_11 = arith.constant 1.280000e+02 : f32
    %16 = vector.broadcast %cst_11 : f32 to vector<32x1xf32>
    %17 = arith.divf %15, %16 : vector<32x1xf32>
    %18 = vector.broadcast %17 : vector<32x1xf32> to vector<32x128xf32>
    %19 = arith.subf %4, %18 : vector<32x128xf32>
    %20 = arith.mulf %19, %19 : vector<32x128xf32>
    %cst_12 = arith.constant dense<0.000000e+00> : vector<32xf32>
    %21 = vector.multi_reduction <add>, %20, %cst_12 [1] : vector<32x128xf32> to vector<32xf32>
    %22 = vector.shape_cast %21 : vector<32xf32> to vector<32x1xf32>
    %cst_13 = arith.constant 1.280000e+02 : f32
    %23 = vector.broadcast %cst_13 : f32 to vector<32x1xf32>
    %24 = arith.divf %22, %23 : vector<32x1xf32>
    %25 = vector.broadcast %17 : vector<32x1xf32> to vector<32x128xf32>
    %26 = arith.subf %4, %25 : vector<32x128xf32>
    %cst_14 = arith.constant 9.99999997E-7 : f32
    %27 = vector.broadcast %cst_14 : f32 to vector<32x1xf32>
    %28 = arith.addf %24, %27 : vector<32x1xf32>
    %29 = math.rsqrt %28 : vector<32x1xf32>
    %30 = vector.broadcast %29 : vector<32x1xf32> to vector<32x128xf32>
    %31 = arith.mulf %26, %30 : vector<32x128xf32>
    %32 = vector.broadcast %5 : vector<1x128xf32> to vector<32x128xf32>
    %33 = arith.mulf %31, %32 : vector<32x128xf32>
    %34 = vector.broadcast %6 : vector<1x128xf32> to vector<32x128xf32>
    %35 = arith.addf %33, %34 : vector<32x128xf32>
    %36 = arith.truncf %35 : vector<32x128xf32> to vector<32x128xbf16>
    %c0_15 = arith.constant 0 : index
    %c0_16 = arith.constant 0 : index
    %37 = vector.load %arg3[%c0_15, %c0_16] : memref<128x384xbf16, #tpu.memory_space<vmem>>, vector<128x128xbf16>
    %cst_17 = arith.constant dense<0.000000e+00> : vector<32x128xf32>
    %38 = tpu.matmul %36, %37, %cst_17 {dimension_numbers = #tpu.dot_dimension_numbers<[1], [0], [0], [1], [0, 0, 1, 1], [], []>} : vector<32x128xbf16>, vector<128x128xbf16>, vector<32x128xf32> -> vector<32x128xf32>
    %c0_18 = arith.constant 0 : index
    %c128 = arith.constant 128 : index
    %39 = vector.load %arg3[%c0_18, %c128] : memref<128x384xbf16, #tpu.memory_space<vmem>>, vector<128x128xbf16>
    %cst_19 = arith.constant dense<0.000000e+00> : vector<32x128xf32>
    %40 = tpu.matmul %36, %39, %cst_19 {dimension_numbers = #tpu.dot_dimension_numbers<[1], [0], [0], [1], [0, 0, 1, 1], [], []>} : vector<32x128xbf16>, vector<128x128xbf16>, vector<32x128xf32> -> vector<32x128xf32>
    %c0_20 = arith.constant 0 : index
    %c256 = arith.constant 256 : index
    %41 = vector.load %arg3[%c0_20, %c256] : memref<128x384xbf16, #tpu.memory_space<vmem>>, vector<128x128xbf16>
    %cst_21 = arith.constant dense<0.000000e+00> : vector<32x128xf32>
    %42 = tpu.matmul %36, %41, %cst_21 {dimension_numbers = #tpu.dot_dimension_numbers<[1], [0], [0], [1], [0, 0, 1, 1], [], []>} : vector<32x128xbf16>, vector<128x128xbf16>, vector<32x128xf32> -> vector<32x128xf32>
    %43 = vector.extract_strided_slice %38 {offsets = [0, 0], sizes = [32, 32], strides = [1, 1]} : vector<32x128xf32> to vector<32x32xf32>
    %44 = vector.extract_strided_slice %38 {offsets = [0, 32], sizes = [32, 32], strides = [1, 1]} : vector<32x128xf32> to vector<32x32xf32>
    %45 = vector.extract_strided_slice %38 {offsets = [0, 64], sizes = [32, 32], strides = [1, 1]} : vector<32x128xf32> to vector<32x32xf32>
    %46 = vector.extract_strided_slice %38 {offsets = [0, 96], sizes = [32, 32], strides = [1, 1]} : vector<32x128xf32> to vector<32x32xf32>
    %47 = tpu.concatenate %43, %44, %45, %46 in 0 : vector<32x32xf32>, vector<32x32xf32>, vector<32x32xf32>, vector<32x32xf32> -> vector<128x32xf32>
    %48 = arith.truncf %47 : vector<128x32xf32> to vector<128x32xbf16>
    %49 = vector.extract_strided_slice %40 {offsets = [0, 0], sizes = [32, 32], strides = [1, 1]} : vector<32x128xf32> to vector<32x32xf32>
    %50 = vector.extract_strided_slice %40 {offsets = [0, 32], sizes = [32, 32], strides = [1, 1]} : vector<32x128xf32> to vector<32x32xf32>
    %51 = vector.extract_strided_slice %40 {offsets = [0, 64], sizes = [32, 32], strides = [1, 1]} : vector<32x128xf32> to vector<32x32xf32>
    %52 = vector.extract_strided_slice %40 {offsets = [0, 96], sizes = [32, 32], strides = [1, 1]} : vector<32x128xf32> to vector<32x32xf32>
    %53 = tpu.concatenate %49, %50, %51, %52 in 0 : vector<32x32xf32>, vector<32x32xf32>, vector<32x32xf32>, vector<32x32xf32> -> vector<128x32xf32>
    %54 = arith.truncf %53 : vector<128x32xf32> to vector<128x32xbf16>
    %55 = vector.extract_strided_slice %42 {offsets = [0, 0], sizes = [32, 32], strides = [1, 1]} : vector<32x128xf32> to vector<32x32xf32>
    %56 = vector.extract_strided_slice %42 {offsets = [0, 32], sizes = [32, 32], strides = [1, 1]} : vector<32x128xf32> to vector<32x32xf32>
    %57 = vector.extract_strided_slice %42 {offsets = [0, 64], sizes = [32, 32], strides = [1, 1]} : vector<32x128xf32> to vector<32x32xf32>
    %58 = vector.extract_strided_slice %42 {offsets = [0, 96], sizes = [32, 32], strides = [1, 1]} : vector<32x128xf32> to vector<32x32xf32>
    %59 = tpu.concatenate %55, %56, %57, %58 in 0 : vector<32x32xf32>, vector<32x32xf32>, vector<32x32xf32>, vector<32x32xf32> -> vector<128x32xf32>
    %60 = arith.truncf %59 : vector<128x32xf32> to vector<128x32xbf16>
    %cst_22 = arith.constant dense<0.000000e+00> : vector<128x128xf32>
    %61 = tpu.matmul %48, %54, %cst_22 {dimension_numbers = #tpu.dot_dimension_numbers<[1], [1], [0], [0], [0, 0, 1, 0], [], []>} : vector<128x32xbf16>, vector<128x32xbf16>, vector<128x128xf32> -> vector<128x128xf32>
    %c0_23 = arith.constant 0 : index
    %c0_24 = arith.constant 0 : index
    %62 = vector.load %arg2[%c0_23, %c0_24] : memref<128x128xf32, #tpu.memory_space<vmem>>, vector<128x128xf32>
    %63 = arith.addf %61, %62 : vector<128x128xf32>
    %cst_25 = arith.constant dense<0xFF800000> : vector<128xf32>
    %64 = vector.multi_reduction <maximumf>, %63, %cst_25 [1] : vector<128x128xf32> to vector<128xf32>
    %65 = vector.shape_cast %64 : vector<128xf32> to vector<128x1xf32>
    %66 = vector.broadcast %65 : vector<128x1xf32> to vector<128x128xf32>
    %67 = arith.subf %63, %66 : vector<128x128xf32>
    %68 = math.exp %67 : vector<128x128xf32>
    %cst_26 = arith.constant dense<0.000000e+00> : vector<128xf32>
    %69 = vector.multi_reduction <add>, %68, %cst_26 [1] : vector<128x128xf32> to vector<128xf32>
    %70 = vector.shape_cast %69 : vector<128xf32> to vector<128x1xf32>
    %71 = tpu.reciprocal %70 {approx = true} : vector<128x1xf32> -> vector<128x1xf32>
    %72 = vector.broadcast %71 : vector<128x1xf32> to vector<128x128xf32>
    %73 = arith.mulf %68, %72 : vector<128x128xf32>
    %74 = arith.truncf %73 : vector<128x128xf32> to vector<128x128xbf16>
    %cst_27 = arith.constant dense<0.000000e+00> : vector<128x32xf32>
    %75 = tpu.matmul %74, %60, %cst_27 {dimension_numbers = #tpu.dot_dimension_numbers<[1], [0], [0], [1], [0, 0, 1, 1], [], []>} : vector<128x128xbf16>, vector<128x32xbf16>, vector<128x32xf32> -> vector<128x32xf32>
    %76 = vector.extract_strided_slice %75 {offsets = [0, 0], sizes = [32, 32], strides = [1, 1]} : vector<128x32xf32> to vector<32x32xf32>
    %77 = vector.extract_strided_slice %75 {offsets = [32, 0], sizes = [32, 32], strides = [1, 1]} : vector<128x32xf32> to vector<32x32xf32>
    %78 = vector.extract_strided_slice %75 {offsets = [64, 0], sizes = [32, 32], strides = [1, 1]} : vector<128x32xf32> to vector<32x32xf32>
    %79 = vector.extract_strided_slice %75 {offsets = [96, 0], sizes = [32, 32], strides = [1, 1]} : vector<128x32xf32> to vector<32x32xf32>
    %80 = tpu.concatenate %76, %77, %78, %79 in 1 : vector<32x32xf32>, vector<32x32xf32>, vector<32x32xf32>, vector<32x32xf32> -> vector<32x128xf32>
    %81 = vector.extract_strided_slice %35 {offsets = [0, 0], sizes = [16, 128], strides = [1, 1]} : vector<32x128xf32> to vector<16x128xf32>
    %cst_28 = arith.constant dense<0.000000e+00> : vector<128xf32>
    %82 = vector.multi_reduction <add>, %81, %cst_28 [0] : vector<16x128xf32> to vector<128xf32>
    %83 = vector.shape_cast %82 : vector<128xf32> to vector<1x128xf32>
    %cst_29 = arith.constant 1.600000e+01 : f32
    %84 = vector.broadcast %cst_29 : f32 to vector<1x128xf32>
    %85 = arith.divf %83, %84 : vector<1x128xf32>
    %cst_30 = arith.constant dense<0xFF800000> : vector<128xf32>
    %86 = vector.multi_reduction <maximumf>, %81, %cst_30 [0] : vector<16x128xf32> to vector<128xf32>
    %87 = vector.shape_cast %86 : vector<128xf32> to vector<1x128xf32>
    %88 = vector.extract_strided_slice %35 {offsets = [16, 0], sizes = [16, 128], strides = [1, 1]} : vector<32x128xf32> to vector<16x128xf32>
    %cst_31 = arith.constant dense<0.000000e+00> : vector<128xf32>
    %89 = vector.multi_reduction <add>, %88, %cst_31 [0] : vector<16x128xf32> to vector<128xf32>
    %90 = vector.shape_cast %89 : vector<128xf32> to vector<1x128xf32>
    %cst_32 = arith.constant 1.600000e+01 : f32
    %91 = vector.broadcast %cst_32 : f32 to vector<1x128xf32>
    %92 = arith.divf %90, %91 : vector<1x128xf32>
    %cst_33 = arith.constant dense<0xFF800000> : vector<128xf32>
    %93 = vector.multi_reduction <maximumf>, %88, %cst_33 [0] : vector<16x128xf32> to vector<128xf32>
    %94 = vector.shape_cast %93 : vector<128xf32> to vector<1x128xf32>
    %95 = tpu.concatenate %85, %87, %92, %94 in 0 : vector<1x128xf32>, vector<1x128xf32>, vector<1x128xf32>, vector<1x128xf32> -> vector<4x128xf32>
    %c0_34 = arith.constant 0 : index
    %c0_35 = arith.constant 0 : index
    %96 = vector.load %arg5[%c0_34, %c0_35] : memref<128x8xf32, #tpu.memory_space<vmem>>, vector<128x8xf32>
    %cst_36 = arith.constant dense<0.000000e+00> : vector<4x8xf32>
    %97 = tpu.matmul %95, %96, %cst_36 {dimension_numbers = #tpu.dot_dimension_numbers<[1], [0], [0], [1], [0, 0, 1, 1], [], []>} : vector<4x128xf32>, vector<128x8xf32>, vector<4x8xf32> -> vector<4x8xf32>
    %cst_37 = arith.constant 0.000000e+00 : f32
    %98 = vector.broadcast %cst_37 : f32 to vector<4x8xf32>
    %99 = arith.maximumf %97, %98 : vector<4x8xf32>
    %c0_38 = arith.constant 0 : index
    %c0_39 = arith.constant 0 : index
    %100 = vector.load %arg6[%c0_38, %c0_39] : memref<8x128xf32, #tpu.memory_space<vmem>>, vector<8x128xf32>
    %cst_40 = arith.constant dense<0.000000e+00> : vector<4x128xf32>
    %101 = tpu.matmul %99, %100, %cst_40 {dimension_numbers = #tpu.dot_dimension_numbers<[1], [0], [0], [1], [0, 0, 1, 1], [], []>} : vector<4x8xf32>, vector<8x128xf32>, vector<4x128xf32> -> vector<4x128xf32>
    %102 = vector.extract_strided_slice %101 {offsets = [0, 0], sizes = [1, 128], strides = [1, 1]} : vector<4x128xf32> to vector<1x128xf32>
    %103 = vector.extract_strided_slice %101 {offsets = [1, 0], sizes = [1, 128], strides = [1, 1]} : vector<4x128xf32> to vector<1x128xf32>
    %104 = arith.addf %102, %103 : vector<1x128xf32>
    %cst_41 = arith.constant 0.000000e+00 : f32
    %105 = vector.broadcast %cst_41 : f32 to vector<1x128xf32>
    %106 = arith.subf %105, %104 : vector<1x128xf32>
    %107 = math.exp %106 : vector<1x128xf32>
    %cst_42 = arith.constant 1.000000e+00 : f32
    %108 = vector.broadcast %cst_42 : f32 to vector<1x128xf32>
    %109 = arith.addf %108, %107 : vector<1x128xf32>
    %110 = tpu.reciprocal %109 {approx = true} : vector<1x128xf32> -> vector<1x128xf32>
    %111 = vector.extract_strided_slice %101 {offsets = [2, 0], sizes = [1, 128], strides = [1, 1]} : vector<4x128xf32> to vector<1x128xf32>
    %112 = vector.extract_strided_slice %101 {offsets = [3, 0], sizes = [1, 128], strides = [1, 1]} : vector<4x128xf32> to vector<1x128xf32>
    %113 = arith.addf %111, %112 : vector<1x128xf32>
    %cst_43 = arith.constant 0.000000e+00 : f32
    %114 = vector.broadcast %cst_43 : f32 to vector<1x128xf32>
    %115 = arith.subf %114, %113 : vector<1x128xf32>
    %116 = math.exp %115 : vector<1x128xf32>
    %cst_44 = arith.constant 1.000000e+00 : f32
    %117 = vector.broadcast %cst_44 : f32 to vector<1x128xf32>
    %118 = arith.addf %117, %116 : vector<1x128xf32>
    %119 = tpu.reciprocal %118 {approx = true} : vector<1x128xf32> -> vector<1x128xf32>
    %120 = vector.shape_cast %110 : vector<1x128xf32> to vector<1x128xf32>
    %121 = vector.broadcast %120 : vector<1x128xf32> to vector<16x128xf32>
    %122 = vector.shape_cast %119 : vector<1x128xf32> to vector<1x128xf32>
    %123 = vector.broadcast %122 : vector<1x128xf32> to vector<16x128xf32>
    %124 = tpu.concatenate %121, %123 in 0 : vector<16x128xf32>, vector<16x128xf32> -> vector<32x128xf32>
    %cst_45 = arith.constant dense<0.000000e+00> : vector<32xf32>
    %125 = vector.multi_reduction <add>, %35, %cst_45 [1] : vector<32x128xf32> to vector<32xf32>
    %126 = vector.shape_cast %125 : vector<32xf32> to vector<32x1xf32>
    %cst_46 = arith.constant 1.280000e+02 : f32
    %127 = vector.broadcast %cst_46 : f32 to vector<32x1xf32>
    %128 = arith.divf %126, %127 : vector<32x1xf32>
    %cst_47 = arith.constant dense<0xFF800000> : vector<32xf32>
    %129 = vector.multi_reduction <maximumf>, %35, %cst_47 [1] : vector<32x128xf32> to vector<32xf32>
    %130 = vector.shape_cast %129 : vector<32xf32> to vector<32x1xf32>
    %131 = tpu.concatenate %128, %130 in 0 : vector<32x1xf32>, vector<32x1xf32> -> vector<64x1xf32>
    %c0_48 = arith.constant 0 : index
    %c0_49 = arith.constant 0 : index
    %132 = vector.load %arg7[%c0_48, %c0_49] : memref<32x64xf32, #tpu.memory_space<vmem>>, vector<32x64xf32>
    %cst_50 = arith.constant dense<0.000000e+00> : vector<32x1xf32>
    %133 = tpu.matmul %132, %131, %cst_50 {dimension_numbers = #tpu.dot_dimension_numbers<[1], [0], [0], [1], [0, 0, 1, 1], [], []>} : vector<32x64xf32>, vector<64x1xf32>, vector<32x1xf32> -> vector<32x1xf32>
    %cst_51 = arith.constant 0.000000e+00 : f32
    %134 = vector.broadcast %cst_51 : f32 to vector<32x1xf32>
    %135 = arith.subf %134, %133 : vector<32x1xf32>
    %136 = math.exp %135 : vector<32x1xf32>
    %cst_52 = arith.constant 1.000000e+00 : f32
    %137 = vector.broadcast %cst_52 : f32 to vector<32x1xf32>
    %138 = arith.addf %137, %136 : vector<32x1xf32>
    %139 = tpu.reciprocal %138 {approx = true} : vector<32x1xf32> -> vector<32x1xf32>
    %140 = vector.shape_cast %139 : vector<32x1xf32> to vector<32x1xf32>
    %141 = vector.broadcast %140 : vector<32x1xf32> to vector<32x128xf32>
    %142 = vector.broadcast %11 : f32 to vector<32x128xf32>
    %143 = arith.mulf %142, %80 : vector<32x128xf32>
    %144 = arith.mulf %35, %124 : vector<32x128xf32>
    %145 = vector.broadcast %12 : f32 to vector<32x128xf32>
    %146 = arith.mulf %145, %144 : vector<32x128xf32>
    %147 = arith.addf %143, %146 : vector<32x128xf32>
    %148 = arith.mulf %35, %141 : vector<32x128xf32>
    %149 = vector.broadcast %13 : f32 to vector<32x128xf32>
    %150 = arith.mulf %149, %148 : vector<32x128xf32>
    %151 = arith.addf %147, %150 : vector<32x128xf32>
    %152 = arith.truncf %151 : vector<32x128xf32> to vector<32x128xbf16>
    %c0_53 = arith.constant 0 : index
    %c0_54 = arith.constant 0 : index
    %153 = vector.load %arg4[%c0_53, %c0_54] : memref<128x128xbf16, #tpu.memory_space<vmem>>, vector<128x128xbf16>
    %cst_55 = arith.constant dense<0.000000e+00> : vector<32x128xf32>
    %154 = tpu.matmul %152, %153, %cst_55 {dimension_numbers = #tpu.dot_dimension_numbers<[1], [0], [0], [1], [0, 0, 1, 1], [], []>} : vector<32x128xbf16>, vector<128x128xbf16>, vector<32x128xf32> -> vector<32x128xf32>
    %155 = vector.broadcast %9 : vector<1x128xf32> to vector<32x128xf32>
    %156 = arith.addf %154, %155 : vector<32x128xf32>
    %157 = arith.addf %4, %156 : vector<32x128xf32>
    %cst_56 = arith.constant dense<0.000000e+00> : vector<32xf32>
    %158 = vector.multi_reduction <add>, %157, %cst_56 [1] : vector<32x128xf32> to vector<32xf32>
    %159 = vector.shape_cast %158 : vector<32xf32> to vector<32x1xf32>
    %cst_57 = arith.constant 1.280000e+02 : f32
    %160 = vector.broadcast %cst_57 : f32 to vector<32x1xf32>
    %161 = arith.divf %159, %160 : vector<32x1xf32>
    %162 = vector.broadcast %161 : vector<32x1xf32> to vector<32x128xf32>
    %163 = arith.subf %157, %162 : vector<32x128xf32>
    %164 = arith.mulf %163, %163 : vector<32x128xf32>
    %cst_58 = arith.constant dense<0.000000e+00> : vector<32xf32>
    %165 = vector.multi_reduction <add>, %164, %cst_58 [1] : vector<32x128xf32> to vector<32xf32>
    %166 = vector.shape_cast %165 : vector<32xf32> to vector<32x1xf32>
    %cst_59 = arith.constant 1.280000e+02 : f32
    %167 = vector.broadcast %cst_59 : f32 to vector<32x1xf32>
    %168 = arith.divf %166, %167 : vector<32x1xf32>
    %169 = vector.broadcast %161 : vector<32x1xf32> to vector<32x128xf32>
    %170 = arith.subf %157, %169 : vector<32x128xf32>
    %cst_60 = arith.constant 9.99999997E-7 : f32
    %171 = vector.broadcast %cst_60 : f32 to vector<32x1xf32>
    %172 = arith.addf %168, %171 : vector<32x1xf32>
    %173 = math.rsqrt %172 : vector<32x1xf32>
    %174 = vector.broadcast %173 : vector<32x1xf32> to vector<32x128xf32>
    %175 = arith.mulf %170, %174 : vector<32x128xf32>
    %176 = vector.broadcast %7 : vector<1x128xf32> to vector<32x128xf32>
    %177 = arith.mulf %175, %176 : vector<32x128xf32>
    %178 = vector.broadcast %8 : vector<1x128xf32> to vector<32x128xf32>
    %179 = arith.addf %177, %178 : vector<32x128xf32>
    %c0_i32_61 = arith.constant 0 : i32
    %180 = tpu.memref_slice %arg15[%c0_i32_61] : memref<2x!tpu.dma_semaphore, #tpu.memory_space<semaphore_mem>> -> memref<1x!tpu.dma_semaphore, #tpu.memory_space<semaphore_mem>>
    %181 = tpu.memref_squeeze %180 : memref<1x!tpu.dma_semaphore, #tpu.memory_space<semaphore_mem>> -> memref<!tpu.dma_semaphore, #tpu.memory_space<semaphore_mem>>
    tpu.wait_dma2 semaphore(%181 : memref<!tpu.dma_semaphore, #tpu.memory_space<semaphore_mem>>) src(%arg10 : memref<128x512xbf16, #tpu.memory_space<any>>) dst(%arg13 : memref<128x512xbf16, #tpu.memory_space<vmem>>)
    %182 = arith.truncf %179 : vector<32x128xf32> to vector<32x128xbf16>
    %c0_62 = arith.constant 0 : index
    %c0_63 = arith.constant 0 : index
    %183 = vector.load %arg13[%c0_62, %c0_63] : memref<128x512xbf16, #tpu.memory_space<vmem>>, vector<128x512xbf16>
    %cst_64 = arith.constant dense<0.000000e+00> : vector<32x512xf32>
    %184 = tpu.matmul %182, %183, %cst_64 {dimension_numbers = #tpu.dot_dimension_numbers<[1], [0], [0], [1], [0, 0, 1, 1], [], []>} : vector<32x128xbf16>, vector<128x512xbf16>, vector<32x512xf32> -> vector<32x512xf32>
    %c0_65 = arith.constant 0 : index
    %c0_66 = arith.constant 0 : index
    %185 = vector.load %arg8[%c0_65, %c0_66] : memref<1x512xf32, #tpu.memory_space<vmem>>, vector<1x512xf32>
    %186 = vector.broadcast %185 : vector<1x512xf32> to vector<32x512xf32>
    %187 = arith.addf %184, %186 : vector<32x512xf32>
    %cst_67 = arith.constant -1.500000e+00 : f32
    %cst_68 = arith.constant 1.500000e+00 : f32
    %188 = vector.broadcast %cst_67 : f32 to vector<32x512xf32>
    %189 = arith.maximumf %188, %187 : vector<32x512xf32>
    %190 = vector.broadcast %cst_68 : f32 to vector<32x512xf32>
    %191 = arith.minimumf %190, %189 : vector<32x512xf32>
    %cst_69 = arith.constant 1.200000e+01 : f32
    %192 = vector.broadcast %cst_69 : f32 to vector<32x512xf32>
    %193 = arith.mulf %192, %191 : vector<32x512xf32>
    %cst_70 = arith.constant 1.050000e+01 : f32
    %194 = vector.broadcast %cst_70 : f32 to vector<32x512xf32>
    %195 = arith.subf %194, %193 : vector<32x512xf32>
    %196 = math.absf %195 : vector<32x512xf32>
    %197 = arith.mulf %196, %196 : vector<32x512xf32>
    %cst_71 = arith.constant 1.000000e+00 : f32
    %198 = vector.broadcast %cst_71 : f32 to vector<32x512xf32>
    %199 = arith.addf %197, %198 : vector<32x512xf32>
    %200 = math.sqrt %199 : vector<32x512xf32>
    %201 = arith.addf %196, %200 : vector<32x512xf32>
    %202 = math.log %201 : vector<32x512xf32>
    %cst_72 = arith.constant 0.333333343 : f32
    %203 = vector.broadcast %cst_72 : f32 to vector<32x512xf32>
    %204 = arith.mulf %202, %203 : vector<32x512xf32>
    %205 = math.exp %204 : vector<32x512xf32>
    %cst_73 = arith.constant 1.000000e+00 : f32
    %206 = vector.broadcast %cst_73 : f32 to vector<32x512xf32>
    %207 = arith.divf %206, %205 : vector<32x512xf32>
    %208 = arith.subf %205, %207 : vector<32x512xf32>
    %cst_74 = arith.constant 5.000000e-01 : f32
    %209 = vector.broadcast %cst_74 : f32 to vector<32x512xf32>
    %210 = arith.mulf %209, %208 : vector<32x512xf32>
    %cst_75 = arith.constant 0.000000e+00 : f32
    %211 = vector.broadcast %cst_75 : f32 to vector<32x512xf32>
    %212 = arith.cmpf oge, %195, %211 : vector<32x512xf32>
    %cst_76 = arith.constant 0.000000e+00 : f32
    %213 = vector.broadcast %cst_76 : f32 to vector<32x512xf32>
    %214 = arith.subf %213, %210 : vector<32x512xf32>
    %215 = arith.select %212, %214, %210 : vector<32x512xi1>, vector<32x512xf32>
    %c1_i32_77 = arith.constant 1 : i32
    %216 = tpu.memref_slice %arg15[%c1_i32_77] : memref<2x!tpu.dma_semaphore, #tpu.memory_space<semaphore_mem>> -> memref<1x!tpu.dma_semaphore, #tpu.memory_space<semaphore_mem>>
    %217 = tpu.memref_squeeze %216 : memref<1x!tpu.dma_semaphore, #tpu.memory_space<semaphore_mem>> -> memref<!tpu.dma_semaphore, #tpu.memory_space<semaphore_mem>>
    tpu.wait_dma2 semaphore(%217 : memref<!tpu.dma_semaphore, #tpu.memory_space<semaphore_mem>>) src(%arg11 : memref<512x128xbf16, #tpu.memory_space<any>>) dst(%arg14 : memref<512x128xbf16, #tpu.memory_space<vmem>>)
    %218 = arith.truncf %215 : vector<32x512xf32> to vector<32x512xbf16>
    %c0_78 = arith.constant 0 : index
    %c0_79 = arith.constant 0 : index
    %219 = vector.load %arg14[%c0_78, %c0_79] : memref<512x128xbf16, #tpu.memory_space<vmem>>, vector<512x128xbf16>
    %cst_80 = arith.constant dense<0.000000e+00> : vector<32x128xf32>
    %220 = tpu.matmul %218, %219, %cst_80 {dimension_numbers = #tpu.dot_dimension_numbers<[1], [0], [0], [1], [0, 0, 1, 1], [], []>} : vector<32x512xbf16>, vector<512x128xbf16>, vector<32x128xf32> -> vector<32x128xf32>
    %221 = vector.broadcast %10 : vector<1x128xf32> to vector<32x128xf32>
    %222 = arith.addf %220, %221 : vector<32x128xf32>
    %223 = arith.addf %157, %222 : vector<32x128xf32>
    %c0_81 = arith.constant 0 : index
    %c0_82 = arith.constant 0 : index
    %224 = vector.load %arg12[%c0_81, %c0_82] : memref<32x128xf32, #tpu.memory_space<vmem>>, vector<32x128xf32>
    tpu.vector_store %arg12[%c0_81, %c0_82], %223 {strides = array<i32>} : memref<32x128xf32, #tpu.memory_space<vmem>>, vector<32x128xf32>,
    return
  }
}

</mosaic_0001>

<bundles_post_ra>
// kernel: tpu_custom_call.1
= control target key start
LH: loop header
LB: loop body
LE: loop exit
PB: predicated region body
PF: predicated region fallthrough
CT: control target
= control target key end

     0   :  { %17 = vsyncpa [#allocation6], 0  ;;  %s5195_s0 = inlined_call_operand.hbm [shape: f32[32,128], index: 0, kind: input, shape index: {}]   ;;  %s5196_s1 = inlined_call_operand.vmem [shape: f32[8,128], index: 1, kind: input, shape index: {}]   ;;  %s5197_s2 = inlined_call_operand.vmem [shape: f32[128,128], index: 2, kind: input, shape index: {}]   ;;  %s5198_s3 = inlined_call_operand.hbm [shape: bf16[128,384], index: 3, kind: input, shape index: {}]   ;;  %s5199_s4 = inlined_call_operand.hbm [shape: bf16[128,128], index: 4, kind: input, shape index: {}]   ;;  %s5200_s5 = inlined_call_operand.vmem [shape: f32[128,8], index: 5, kind: input, shape index: {}]   ;;  %s5201_s6 = inlined_call_operand.hbm [shape: f32[8,128], index: 6, kind: input, shape index: {}]   ;;  %s5202_s7 = inlined_call_operand.hbm [shape: f32[32,64], index: 7, kind: input, shape index: {}]   ;;  %s5203_s8 = inlined_call_operand.vmem [shape: f32[1,512], index: 8, kind: input, shape index: {}]   ;;  %s5204_s9 = inlined_call_operand.vmem [shape: f32[3], index: 9, kind: input, shape index: {}]   ;;  %s5205_s10 = inlined_call_operand.hbm [shape: bf16[128,512], index: 10, kind: input, shape index: {}]   ;;  %s5206_s11 = inlined_call_operand.hbm [shape: bf16[512,128], index: 11, kind: input, shape index: {}]   ;;  %s5207_s12 = inlined_call_operand.hbm [shape: f32[32,128], index: 12, kind: output, shape index: {}]  }
   0x1   :  { %18 = vsyncpa [#allocation10], 0 }
   0x2   :  { %19 = vsyncpa [#allocation13], 0 }
   0x3   :  { %20 = vsyncpa [#allocation8], 0 }
   0x4   :  { %21 = vsyncpa [#allocation7], 0  ;;  %s4083_s21 = smov [#allocation9]  }
   0x5   :  { %s43_s22 = sshll.u32 %s4083_s21, 4  ;;  %s44_s22 = int_to_ptr.vmem [resolvable:$true] %s43_s22 }
   0x6   :  { %s3905_s23 = scalar_lea.vmem %s44_s22, 3072  ;;  %p3910_p1 = scmp.lt.s32.totalorder %s44_s22, %s44_s22 }
   0x7   :  { %p3906_p0 = scmp.ne.s32.totalorder %s44_s22, %s3905_s23  ;;  %p3911_p2 = scmp.lt.s32.totalorder %s3905_s23, %s3905_s23 }
   0x9   :  { %p3912_p3 = por %p3911_p2, %p3910_p1 }
   0xb   :  { %p3913_p4 = pnand %p3912_p3, %p3906_p0 }
   0xd   :  { %3916 = shalt.err (!%p3913_p4)
}
   0xe   :  { %s4084_s24 = smov 192   ;;  %s4085_s25 = smov 12  }
   0xf   :  { %49 = dma.hbm_to_vmem [thread:$0]  %s5198_s3, 3072, %s44_s22, [#allocation10], %s4084_s24, %s4084_s24, %s4085_s25  }
  0x10   :  { %s4086_s28 = smov [#allocation12]   ;;  %s4087_s30 = smov [#allocation5]  }
  0x11   :  { %s70_s29 = sshll.u32 %s4086_s28, 4  ;;  %s27_s13 = sshll.u32 %s4087_s30, 4  ;;  %s71_s29 = int_to_ptr.vmem [resolvable:$true] %s70_s29  ;;  %s28_s13 = int_to_ptr.vmem [resolvable:$true] %s27_s13 }
  0x12   :  { %s3925_s14 = scalar_lea.vmem %s71_s29, 128  ;;  %p3930_p6 = scmp.lt.s32.totalorder %s71_s29, %s71_s29 }
  0x13   :  { %p3926_p5 = scmp.ne.s32.totalorder %s71_s29, %s3925_s14  ;;  %p3931_p7 = scmp.lt.s32.totalorder %s3925_s14, %s3925_s14 }
  0x15   :  { %p3932_p8 = por %p3931_p7, %p3930_p6 }
  0x17   :  { %p3933_p9 = pnand %p3932_p8, %p3926_p5 }
  0x19   :  { %3936 = shalt.err (!%p3933_p9)
}
  0x1a   :  { %73 = dma.hbm_to_vmem [thread:$0]  %s5201_s6, 128, %s71_s29, [#allocation13]  }
  0x1b   :  { %s3945_s17 = scalar_lea.vmem %s28_s13, 512  ;;  %p3950_p11 = scmp.lt.s32.totalorder %s28_s13, %s28_s13 }
  0x1c   :  { %p3946_p10 = scmp.ne.s32.totalorder %s28_s13, %s3945_s17  ;;  %p3951_p12 = scmp.lt.s32.totalorder %s3945_s17, %s3945_s17 }
  0x1e   :  { %p3952_p13 = por %p3951_p12, %p3950_p11 }
  0x20   :  { %p3953_p0 = pnand %p3952_p13, %p3946_p10 }
  0x22   :  { %3956 = shalt.err (!%p3953_p0)
}
  0x23   :  { %s4088_s3 = smov 128   ;;  %s4089_s18 = smov 8  }
  0x24   :  { %33 = dma.hbm_to_vmem [thread:$0]  %s5195_s0, 512, %s28_s13, [#allocation6], %s4088_s3, %s4088_s3, %s4089_s18  }
  0x25   :  { %s4090_s21 = smov [#allocation11]  }
  0x26   :  { %s55_s22 = sshll.u32 %s4090_s21, 4  ;;  %s56_s22 = int_to_ptr.vmem [resolvable:$true] %s55_s22 }
  0x27   :  { %s3965_s6 = scalar_lea.vmem %s56_s22, 1024  ;;  %p3970_p2 = scmp.lt.s32.totalorder %s56_s22, %s56_s22 }
  0x28   :  { %p3966_p1 = scmp.ne.s32.totalorder %s56_s22, %s3965_s6  ;;  %p3971_p3 = scmp.lt.s32.totalorder %s3965_s6, %s3965_s6 }
  0x2a   :  { %p3972_p4 = por %p3971_p3, %p3970_p2 }
  0x2c   :  { %p3973_p5 = pnand %p3972_p4, %p3966_p1 }
  0x2e   :  { %3976 = shalt.err (!%p3973_p5)
}
  0x2f   :  { %s4091_s23 = smov 64   ;;  %s4092_s24 = smov 4  }
  0x30   :  { %61 = dma.hbm_to_vmem [thread:$0]  %s5199_s4, 1024, %s56_s22, [#allocation10], %s4091_s23, %s4091_s23, %s4092_s24  }
  0x31   :  { %s94_s28 = sshll.u32 %s5204_s9, 4  ;;  %s4093_s29 = smov [#allocation14]   ;;  %s95_s28 = int_to_ptr.vmem [resolvable:$true] %s94_s28 }
  0x32   :  { %s79_s30 = sshll.u32 %s4093_s29, 4  ;;  %s80_s30 = int_to_ptr.vmem [resolvable:$true] %s79_s30 }
  0x33   :  { %s3985_s13 = scalar_lea.vmem %s80_s30, 512  ;;  %p3990_p7 = scmp.lt.s32.totalorder %s80_s30, %s80_s30 }
  0x34   :  { %p3986_p6 = scmp.ne.s32.totalorder %s80_s30, %s3985_s13  ;;  %p3991_p8 = scmp.lt.s32.totalorder %s3985_s13, %s3985_s13 }
  0x36   :  { %p3992_p9 = por %p3991_p8, %p3990_p7 }
  0x38   :  { %p3993_p10 = pnand %p3992_p9, %p3986_p6 }
  0x3a   :  { %3996 = shalt.err (!%p3993_p10)
}
  0x3b   :  { %85 = dma.hbm_to_vmem [thread:$0]  %s5202_s7, 512, %s80_s30, [#allocation13], %s4088_s3, %s4088_s3, %s4089_s18  }
  0x3c   :  { %s3997_s15 = scalar_lea.vmem %s95_s28, 16  ;;  %p4002_p12 = scmp.lt.s32.totalorder %s95_s28, %s95_s28 }
  0x3d   :  { %p3998_p11 = scmp.ne.s32.totalorder %s95_s28, %s3997_s15  ;;  %p4003_p13 = scmp.lt.s32.totalorder %s3997_s15, %s3997_s15 }
  0x3f   :  { %p4004_p0 = por %p4003_p13, %p4002_p12 }
  0x41   :  { %p4005_p1 = pnand %p4004_p0, %p3998_p11 }
  0x43   :  { %4008 = shalt.err (!%p4005_p1)
}
  0x44   :  { %s4094_s9 = smov [#allocation15]  }
  0x45   :  { %97 = dma.vmem_to_smem %s95_s28, 16, %s4094_s9, [#allocation8]  }
  0x46   :  { %4069 = dma.done.wait [#allocation6], 512  }
  0x47   :  { %4070 = vsyncadd [#allocation6], 4294966784 }
  0x48   :  { %4071 = dma.done.wait [#allocation10], 4096  }
  0x49   :  { %4072 = vsyncadd [#allocation10], 4294963200 }
  0x4a   :  { %4073 = dma.done.wait [#allocation13], 640  }
  0x4b   :  { %4074 = vsyncadd [#allocation13], 4294966656 }
  0x4c   :  { %4075 = dma.done.wait [#allocation8], 16  }
  0x4d   :  { %4076 = vsyncadd [#allocation8], 4294967280 }
  0x4e   :  { %116 = sfence }
  0x4f   :  { %v141_v0 = vld [vmem:[#allocation5] sm:$0xff]  ;;  %v143_v1 = vld [vmem:[#allocation5 + $0x10] sm:$0xff]  ;;  %v142_v2 = vld [vmem:[#allocation5 + $0x8] sm:$0xff]  ;;  %s4095_s22 = smov 32   ;;  %vm716_vm0 = vcmask 261120   ;;  %s4096_s6 = smov 96  }
  0x50   :  { %154 = vadd.xlane.f32.xlu0 %v141_v0  ;;  %158 = vadd.xlane.f32.xlu1 %v143_v1  ;;  %v144_v3 = vld [vmem:[#allocation5 + $0x18] sm:$0xff]  ;;  %v3553_v20 = vld [vmem:[#allocation9 + $0xa8] ss:$12 sps:$4 sm:$0xff]   ;;  %v3559_v26 = vld [vmem:[#allocation9 + $0x60] ss:$12 sps:$4 sm:$0xff]   ;;  %vm1204_vm1 = vcmask 1040384  }
  0x51   :  { %v3554_v21 = vld [vmem:[#allocation9 + $0xac] ss:$12 sps:$4 sm:$0xff]   ;;  %3227 = vmatprep.subr.bf16.mxu0 %v3553_v20  ;;  %v3555_v22 = vld [vmem:[#allocation9 + $0x90] ss:$12 sps:$4 sm:$0xff]   ;;  %v3556_v23 = vld [vmem:[#allocation9 + $0x94] ss:$12 sps:$4 sm:$0xff]  }
  0x52   :  { %3228 = vmatpush3.bf16.msra.mxu0 %v3553_v20  ;;  %3247 = vmatprep.subr.bf16.mxu1 %v3554_v21  ;;  %v3557_v24 = vld [vmem:[#allocation9 + $0x78] ss:$12 sps:$4 sm:$0xff]   ;;  %v3558_v25 = vld [vmem:[#allocation9 + $0x7c] ss:$12 sps:$4 sm:$0xff]   ;;  %v3564_v31 = vld [vmem:[#allocation9 + $0x34] ss:$12 sps:$4 sm:$0xff]  }
  0x53   :  { %3248 = vmatpush3.bf16.msra.mxu1 %v3554_v21  ;;  %3229 = vmatprep.subr.bf16.mxu0 %v3555_v22  ;;  %v3560_v27 = vld [vmem:[#allocation9 + $0x64] ss:$12 sps:$4 sm:$0xff]   ;;  %v3561_v28 = vld [vmem:[#allocation9 + $0x48] ss:$12 sps:$4 sm:$0xff]   ;;  %v3562_v29 = vld [vmem:[#allocation9 + $0x4c] ss:$12 sps:$4 sm:$0xff]  }
  0x54   :  { %156 = vadd.xlane.f32.xlu0 %v142_v2  ;;  %160 = vadd.xlane.f32.xlu1 %v144_v3  ;;  %v3563_v30 = vld [vmem:[#allocation9 + $0x30] ss:$12 sps:$4 sm:$0xff]   ;;  %v4213_v32 = vld [vmem:[%s5196_s1 + $0x5] ss:$0 sm:$0xff]  ;;  %v3567_v35 = vld [vmem:[#allocation9] ss:$12 sps:$4 sm:$0xff]  }
  0x55   :  { %3249 = vmatprep.subr.bf16.mxu1 %v3556_v23  ;;  %v3565_v33 = vld [vmem:[#allocation9 + $0x18] ss:$12 sps:$4 sm:$0xff]   ;;  %v3566_v34 = vld [vmem:[#allocation9 + $0x1c] ss:$12 sps:$4 sm:$0xff]   ;;  %v2935_v52 = vld [vmem:[%s5196_s1] ss:$0 sm:$0xff] }
  0x56   :  { %3230 = vmatpush3.bf16.msra.mxu0 %v3555_v22  ;;  %v3568_v36 = vld [vmem:[#allocation9 + $0x4] ss:$12 sps:$4 sm:$0xff]   ;;  %v2936_v57 = vld [vmem:[%s5196_s1 + $0x1] ss:$0 sm:$0xff]  ;;  %vm4098_vm2 = vmmov 0   ;;  %vm1206_vm3 = vcmask 1041408  }
  0x57   :  { %3250 = vmatpush3.bf16.msra.mxu1 %v3556_v23  ;;  %3231 = vmatprep.subr.bf16.mxu0 %v3557_v24  ;;  %v3569_v37 = vld [vmem:[#allocation9 + $0xb0] ss:$12 sps:$4 sm:$0xff]   ;;  %vm1208_vm4 = vcmask 1042432   ;;  %vm1298_vm5 = vcmask 64512   ;;  %vm1163_vm6 = vcmask 523264   ;;  %vm1168_vm7 = vcmask 785408  }
  0x58   :  { %3251 = vmatprep.subr.bf16.mxu1 %v3558_v25  ;;  %s4100_s29 = smov [#allocation2]   ;;  %s4101_s13 = smov [#allocation3]  }
  0x59   :  { %s125_s30 = sshll.u32 %s4100_s29, 4  ;;  %s137_s14 = sshll.u32 %s4101_s13, 4  ;;  %s126_s30 = int_to_ptr.vmem [resolvable:$true] %s125_s30  ;;  %s138_s14 = int_to_ptr.vmem [resolvable:$true] %s137_s14 }
  0x5a   :  { %3232 = vmatpush3.bf16.msra.mxu0 %v3557_v24  ;;  %s4017_s4 = scalar_lea.vmem %s126_s30, 4096  ;;  %p4022_p3 = scmp.lt.s32.totalorder %s126_s30, %s126_s30 }
  0x5b   :  { %3252 = vmatpush3.bf16.msra.mxu1 %v3558_v25  ;;  %3233 = vmatprep.subr.bf16.mxu0 %v3559_v26  ;;  %p4018_p2 = scmp.ne.s32.totalorder %s126_s30, %s4017_s4  ;;  %p4023_p4 = scmp.lt.s32.totalorder %s4017_s4, %s4017_s4 }
  0x5c   :  { %3253 = vmatprep.subr.bf16.mxu1 %v3560_v27 }
  0x5d   :  { %p4024_p5 = por %p4023_p4, %p4022_p3 }
  0x5e   :  { %3234 = vmatpush3.bf16.msra.mxu0 %v3559_v26 }
  0x5f   :  { %3254 = vmatpush3.bf16.msra.mxu1 %v3560_v27  ;;  %3235 = vmatprep.subr.bf16.mxu0 %v3561_v28  ;;  %p4025_p6 = pnand %p4024_p5, %p4018_p2 }
  0x60   :  { %3255 = vmatprep.subr.bf16.mxu1 %v3562_v29 }
  0x62   :  { %3236 = vmatpush3.bf16.msra.mxu0 %v3561_v28 }
  0x63   :  { %3256 = vmatpush3.bf16.msra.mxu1 %v3562_v29  ;;  %3237 = vmatprep.subr.bf16.mxu0 %v3563_v30 }
  0x64   :  { %3257 = vmatprep.subr.bf16.mxu1 %v3564_v31 }
  0x66   :  { %3238 = vmatpush3.bf16.msra.mxu0 %v3563_v30 }
  0x67   :  { %3258 = vmatpush3.bf16.msra.mxu1 %v3564_v31  ;;  %3239 = vmatprep.subr.bf16.mxu0 %v3565_v33 }
  0x68   :  { %3259 = vmatprep.subr.bf16.mxu1 %v3566_v34 }
  0x6a   :  { %3240 = vmatpush3.bf16.msra.mxu0 %v3565_v33 }
  0x6b   :  { %3260 = vmatpush3.bf16.msra.mxu1 %v3566_v34  ;;  %3241 = vmatprep.subr.bf16.mxu0 %v3567_v35 }
  0x6c   :  { %3261 = vmatprep.subr.bf16.mxu1 %v3568_v36 }
  0x6e   :  { %3242 = vmatpush3.bf16.msra.mxu0 %v3567_v35 }
  0x6f   :  { %3262 = vmatpush3.bf16.msra.mxu1 %v3568_v36  ;;  %3267 = vmatprep.subr.bf16.mxu0 %v3569_v37 }
  0xd9   :  { %v155_v4 = vpop.xlane.xlu0 %154  ;;  %v159_v5 = vpop.xlane.xlu1 %158 }
  0xda   :  { %v163_v6 = vmul.f32 0.0078125, %v155_v4  ;;  %v165_v7 = vmul.f32 0.0078125, %v159_v5 }
  0xdc   :  { %v4194_v8 = vsub.f32 %v141_v0, %v163_v6  ;;  %v4196_v9 = vsub.f32 %v143_v1, %v165_v7  ;;  %v3570_v6 = vld [vmem:[#allocation9 + $0x98] ss:$12 sps:$4 sm:$0xff]   ;;  %v3571_v7 = vld [vmem:[#allocation9 + $0x80] ss:$12 sps:$4 sm:$0xff]  }
  0xdd   :  { %v157_v10 = vpop.xlane.xlu0 %156  ;;  %v161_v11 = vpop.xlane.xlu1 %160 }
  0xde   :  { %v164_v12 = vmul.f32 0.0078125, %v157_v10  ;;  %v171_v13 = vmul.f32 %v4194_v8, %v4194_v8  ;;  %v166_v14 = vmul.f32 0.0078125, %v161_v11  ;;  %v173_v16 = vmul.f32 %v4196_v9, %v4196_v9  ;;  %v3574_v10 = vld [vmem:[#allocation9 + $0x38] ss:$12 sps:$4 sm:$0xff]   ;;  %v3575_v11 = vld [vmem:[#allocation9 + $0x20] ss:$12 sps:$4 sm:$0xff]  }
  0xe0   :  { %v4200_v15 = vsub.f32 %v142_v2, %v164_v12  ;;  %175 = vadd.xlane.f32.xlu0 %v171_v13  ;;  %v4204_v17 = vsub.f32 %v144_v3, %v166_v14  ;;  %v3576_v12 = vld [vmem:[#allocation9 + $0x8] ss:$12 sps:$4 sm:$0xff]  }
  0xe2   :  { %v172_v18 = vmul.f32 %v4200_v15, %v4200_v15  ;;  %v174_v19 = vmul.f32 %v4204_v17, %v4204_v17 }
  0xe4   :  { %179 = vadd.xlane.f32.xlu0 %v173_v16  ;;  %177 = vadd.xlane.f32.xlu1 %v172_v18 }
  0xe8   :  { %181 = vadd.xlane.f32.xlu1 %v174_v19 }
 0x169   :  { %v176_v38 = vpop.xlane.xlu0 %175 }
 0x16a   :  { %v183_v39 = vmul.f32 0.0078125, %v176_v38 }
 0x16c   :  { %v187_v40 = vadd.f32 1e-06, %v183_v39 }
 0x16d   :  { %v178_v41 = vpop.xlane.xlu1 %177  ;;  %v180_v42 = vpop.xlane.xlu0 %179 }
 0x16e   :  { %3585 = vrsqrt.f32 %v187_v40  ;;  %v184_v43 = vmul.f32 0.0078125, %v178_v41  ;;  %v185_v44 = vmul.f32 0.0078125, %v180_v42 }
 0x170   :  { %v188_v45 = vadd.f32 1e-06, %v184_v43  ;;  %v189_v46 = vadd.f32 1e-06, %v185_v44 }
 0x171   :  { %v182_v47 = vpop.xlane.xlu1 %181 }
 0x172   :  { %3587 = vrsqrt.f32 %v188_v45  ;;  %v186_v48 = vmul.f32 0.0078125, %v182_v47 }
 0x173   :  { %3589 = vrsqrt.f32 %v189_v46 }
 0x174   :  { %v190_v49 = vadd.f32 1e-06, %v186_v48 }
 0x176   :  { %3591 = vrsqrt.f32 %v190_v49 }
 0x17b   :  { %v3586_v50 = vpop.eup %3585 }
 0x17c   :  { %v195_v51 = vmul.f32 %v3586_v50, %v4194_v8  ;;  %v3572_v8 = vld [vmem:[#allocation9 + $0x68] ss:$12 sps:$4 sm:$0xff]  }
 0x17e   :  { %v203_v55 = vmul.f32 %v2935_v52, %v195_v51 }
 0x17f   :  { %v3588_v53 = vpop.eup %3587 }
 0x180   :  { %v3590_v54 = vpop.eup %3589  ;;  %v196_v56 = vmul.f32 %v3588_v53, %v4200_v15  ;;  %v4224_v61 = vadd.f32 %v2936_v57, %v203_v55 }
 0x181   :  { %v197_v58 = vmul.f32 %v3590_v54, %v4196_v9  ;;  %v3573_v9 = vld [vmem:[#allocation9 + $0x50] ss:$12 sps:$4 sm:$0xff]  }
 0x182   :  { %v204_v59 = vmul.f32 %v2935_v52, %v196_v56 }
 0x183   :  { %v3592_v60 = vpop.eup %3591  ;;  %v205_v63 = vmul.f32 %v2935_v52, %v197_v58 }
 0x184   :  { %v4226_v62 = vadd.f32 %v2936_v57, %v204_v59  ;;  %v198_v0 = vmul.f32 %v3592_v60, %v4204_v17 }
 0x185   :  { %v4231_v3 = vadd.f32 %v2936_v57, %v205_v63 }
 0x186   :  { %v206_v1 = vmul.f32 %v2935_v52, %v198_v0  ;;  %v215_v2 = vpack.c.bf16 %v4226_v62, %v4224_v61 }
 0x188   :  { %v4233_v4 = vadd.f32 %v2936_v57, %v206_v1  ;;  %3243 = vmatprep.mubr.bf16.mxu0 %v215_v2  ;;  %3263 = vmatprep.mubr.bf16.mxu1 %v215_v2 }
 0x18a   :  { %v216_v5 = vpack.c.bf16 %v4233_v4, %v4231_v3 }
 0x18c   :  { %3244 = vmatmul.mubr.bf16.vlgmr.msra.gmra.mxu0 %v216_v5  ;;  %3264 = vmatmul.mubr.bf16.vlgmr.msra.gmra.mxu1 %v216_v5 }
 0x18d   :  { %3268 = vmatpush3.bf16.msra.mxu0 %v3569_v37  ;;  %3283 = vmatprep.mubr.bf16.mxu0 %v215_v2 }
 0x18e   :  { %3269 = vmatprep.subr.bf16.mxu0 %v3570_v6 }
 0x191   :  { %3270 = vmatpush3.bf16.msra.mxu0 %v3570_v6 }
 0x192   :  { %3271 = vmatprep.subr.bf16.mxu0 %v3571_v7 }
 0x195   :  { %3272 = vmatpush3.bf16.msra.mxu0 %v3571_v7 }
 0x196   :  { %3273 = vmatprep.subr.bf16.mxu0 %v3572_v8 }
 0x199   :  { %3274 = vmatpush3.bf16.msra.mxu0 %v3572_v8 }
 0x19a   :  { %3275 = vmatprep.subr.bf16.mxu0 %v3573_v9 }
 0x19d   :  { %3276 = vmatpush3.bf16.msra.mxu0 %v3573_v9 }
 0x19e   :  { %3277 = vmatprep.subr.bf16.mxu0 %v3574_v10 }
 0x1a1   :  { %3278 = vmatpush3.bf16.msra.mxu0 %v3574_v10 }
 0x1a2   :  { %3279 = vmatprep.subr.bf16.mxu0 %v3575_v11 }
 0x1a5   :  { %3280 = vmatpush3.bf16.msra.mxu0 %v3575_v11 }
 0x1a6   :  { %3281 = vmatprep.subr.bf16.mxu0 %v3576_v12 }
 0x1a9   :  { %3282 = vmatpush3.bf16.msra.mxu0 %v3576_v12 }
 0x1ac   :  { %3284 = vmatmul.mubr.bf16.vlgmr.msra.gmra.mxu0 %v216_v5 }
 0x24c   :  { %v4237_v13 = vpop.f32.mrf.mxu0  ;;  %v3265_v14 = vpop.f32.mrf.mxu1 }
 0x24e   :  { %v315_v15 = vpop.f32.mrf.mxu0  ;;  %v4239_v16 = vpop.f32.mrf.mxu1 }
 0x250   :  { %v4241_v17 = vpop.f32.mrf.mxu0  ;;  %v3266_v18 = vpop.f32.mrf.mxu1 }
 0x251   :  { %v597_v19 = vpack.c.bf16 %v4241_v17, %v4237_v13  ;;  %v4245_v20 = vpack.c.bf16 %v3266_v18, %v3265_v14  ;;  %v3461_v21 = vpack.i.bf16 %v3266_v18, %v3265_v14  ;;  %v3496_v27 = vpack.i.bf16 %v4241_v17, %v4237_v13 }
 0x252   :  { %v318_v22 = vpop.f32.mrf.mxu0  ;;  %v4247_v23 = vpop.f32.mrf.mxu1 }
 0x253   :  { %v596_v24 = vpack.c.bf16 %v318_v22, %v315_v15  ;;  %3462 = vrot.lane.b32.xlu0 %v3461_v21, %s4095_s22  ;;  %v3466_v25 = vpack.i.bf16 %v4247_v23, %v4239_v16  ;;  %v3491_v26 = vpack.i.bf16 %v318_v22, %v315_v15 }
 0x255   :  { %3467 = vrot.lane.b32.xlu1 %v3466_v25, %s4095_s22  ;;  %3303 = vmatprep.mubr.msk.bf16.mxu1 %vm716_vm0, %v596_v24 }
 0x257   :  { %3482 = vrot.lane.b32.xlu0 %v3461_v21, %s4096_s6 }
 0x259   :  { %3472 = vrot.lane.b32.xlu1 %v3461_v21, %s4091_s23 }
 0x25b   :  { %3492 = vrot.lane.b32.xlu0 %v3491_v26, %s4096_s6 }
 0x25d   :  { %3477 = vrot.lane.b32.xlu1 %v3466_v25, %s4091_s23 }
 0x25f   :  { %3502 = vrot.lane.b32.xlu0 %v3491_v26, %s4091_s23 }
 0x261   :  { %3487 = vrot.lane.b32.xlu1 %v3466_v25, %s4096_s6 }
 0x263   :  { %3512 = vrot.lane.b32.xlu0 %v3491_v26, %s4095_s22 }
 0x265   :  { %3497 = vrot.lane.b32.xlu1 %v3496_v27, %s4096_s6 }
 0x269   :  { %3507 = vrot.lane.b32.xlu1 %v3496_v27, %s4091_s23 }
 0x26c   :  { %v3285_v28 = vpop.f32.mrf.mxu0 }
 0x26d   :  { %3517 = vrot.lane.b32.xlu1 %v3496_v27, %s4095_s22 }
 0x26e   :  { %v4266_v29 = vpop.f32.mrf.mxu0 }
 0x270   :  { %v3286_v30 = vpop.f32.mrf.mxu0 }
 0x271   :  { %v4268_v31 = vpack.i.bf16 %v3286_v30, %v3285_v28  ;;  %v4270_v33 = vpack.c.bf16 %v3286_v30, %v3285_v28 }
 0x272   :  { %v4272_v34 = vpop.f32.mrf.mxu0 }
 0x273   :  { %3522 = vrot.lane.b32.xlu0 %v4268_v31, %s4095_s22  ;;  %v4278_v35 = vpack.i.bf16 %v4272_v34, %v4266_v29 }
 0x275   :  { %3532 = vrot.lane.b32.xlu1 %v4278_v35, %s4095_s22 }
 0x277   :  { %3527 = vrot.lane.b32.xlu0 %v4268_v31, %s4091_s23 }
 0x2c5   :  { %v3463_v36 = vpop.permute.xlu0 %3462 }
 0x2c6   :  { %v3465_v37 = vunpack.i.h.bf16 %v3463_v36  ;;  %v3464_v38 = vunpack.i.l.bf16 %v3463_v36  ;;  %v644_v36 = vpack.c.bf16 %v4247_v23, %v4239_v16 }
 0x2c7   :  { %v3468_v39 = vpop.permute.xlu1 %3467 }
 0x2c8   :  { %v651_v40 = vpack.c.bf16 %v3465_v37, %v3464_v38  ;;  %v3470_v41 = vunpack.i.h.bf16 %v3468_v39  ;;  %v3469_v42 = vunpack.i.l.bf16 %v3468_v39  ;;  %v745_v37 = vsel %vm716_vm0, %v4245_v20, 0 }
 0x2c9   :  { %v3483_v48 = vpop.permute.xlu0 %3482  ;;  %v742_v38 = vsel %vm716_vm0, %v644_v36, 0 }
 0x2ca   :  { %v650_v43 = vpack.c.bf16 %v3470_v41, %v3469_v42  ;;  %3433 = vmatprep.subr.msk.bf16.mxu1 %vm716_vm0, %v651_v40  ;;  %v763_v44 = vsel %vm716_vm0, %v651_v40, 0  ;;  %v3485_v63 = vunpack.i.h.bf16 %v3483_v48  ;;  %v3484_v0 = vunpack.i.l.bf16 %v3483_v48 }
 0x2cb   :  { %3288 = vmatpush3.bf16.xpose.msra.mxu1 %v763_v44  ;;  %v3473_v45 = vpop.permute.xlu1 %3472 }
 0x2cc   :  { %3434 = vmatprep.subr.msk.bf16.mxu1 %vm716_vm0, %v650_v43  ;;  %v3475_v46 = vunpack.i.h.bf16 %v3473_v45  ;;  %v3474_v47 = vunpack.i.l.bf16 %v3473_v45  ;;  %v760_v51 = vsel %vm716_vm0, %v650_v43, 0  ;;  %v647_v2 = vpack.c.bf16 %v3485_v63, %v3484_v0 }
 0x2cd   :  { %v3493_v53 = vpop.permute.xlu0 %3492 }
 0x2ce   :  { %v649_v50 = vpack.c.bf16 %v3475_v46, %v3474_v47  ;;  %v751_v22 = vsel %vm716_vm0, %v647_v2, 0  ;;  %v3495_v39 = vunpack.i.h.bf16 %v3493_v53  ;;  %v3494_v40 = vunpack.i.l.bf16 %v3493_v53 }
 0x2cf   :  { %v3478_v49 = vpop.permute.xlu1 %3477 }
 0x2d0   :  { %v3480_v54 = vunpack.i.h.bf16 %v3478_v49  ;;  %v3479_v55 = vunpack.i.l.bf16 %v3478_v49  ;;  %v757_v58 = vsel %vm716_vm0, %v649_v50, 0  ;;  %v598_v41 = vpack.c.bf16 %v3495_v39, %v3494_v40  ;;  %v714_v40 = vld [vmem:[%s5197_s2 + $0x70] sm:$0xff] }
 0x2d1   :  { %v3503_v59 = vpop.permute.xlu0 %3502 }
 0x2d2   :  { %v648_v57 = vpack.c.bf16 %v3480_v54, %v3479_v55  ;;  %v3505_v42 = vunpack.i.h.bf16 %v3503_v59  ;;  %v700_v55 = vld [vmem:[%s5197_s2] sm:$0xff] }
 0x2d3   :  { %v3488_v52 = vpop.permute.xlu1 %3487  ;;  %3290 = vmatpush3.bf16.xpose.msra.mxu1 %v760_v51  ;;  %v702_v51 = vld [vmem:[%s5197_s2 + $0x10] sm:$0xff] }
 0x2d4   :  { %3435 = vmatprep.subr.msk.bf16.mxu1 %vm716_vm0, %v649_v50  ;;  %v754_v5 = vsel %vm716_vm0, %v648_v57, 0  ;;  %v3490_v8 = vunpack.i.h.bf16 %v3488_v52  ;;  %v3489_v9 = vunpack.i.l.bf16 %v3488_v52 }
 0x2d5   :  { %v3513_v1 = vpop.permute.xlu0 %3512 }
 0x2d6   :  { %v646_v24 = vpack.c.bf16 %v3490_v8, %v3489_v9  ;;  %v3515_v47 = vunpack.i.h.bf16 %v3513_v1  ;;  %v3514_v48 = vunpack.i.l.bf16 %v3513_v1 }
 0x2d7   :  { %v3498_v56 = vpop.permute.xlu1 %3497 }
 0x2d8   :  { %v748_v30 = vsel %vm716_vm0, %v646_v24, 0  ;;  %v3500_v16 = vunpack.i.h.bf16 %v3498_v56  ;;  %v3499_v23 = vunpack.i.l.bf16 %v3498_v56  ;;  %v602_v13 = vpack.c.bf16 %v3515_v47, %v3514_v48 }
 0x2da   :  { %v599_v43 = vpack.c.bf16 %v3500_v16, %v3499_v23  ;;  %v715_v16 = vld [vmem:[%s5197_s2 + $0x78] sm:$0xff] }
 0x2db   :  { %3292 = vmatpush3.bf16.xpose.msra.mxu1 %v757_v58  ;;  %v3508_v60 = vpop.permute.xlu1 %3507 }
 0x2dc   :  { %3436 = vmatprep.subr.msk.bf16.mxu1 %vm716_vm0, %v648_v57  ;;  %v3510_v45 = vunpack.i.h.bf16 %v3508_v60  ;;  %v3509_v46 = vunpack.i.l.bf16 %v3508_v60  ;;  %v701_v57 = vld [vmem:[%s5197_s2 + $0x8] sm:$0xff] }
 0x2de   :  { %v601_v49 = vpack.c.bf16 %v3510_v45, %v3509_v46  ;;  %v713_v45 = vld [vmem:[%s5197_s2 + $0x68] sm:$0xff] }
 0x2df   :  { %v3518_v6 = vpop.permute.xlu1 %3517 }
 0x2e0   :  { %v3520_v17 = vunpack.i.h.bf16 %v3518_v6 }
 0x2e3   :  { %3294 = vmatpush3.bf16.xpose.msra.mxu1 %v754_v5 }
 0x2e4   :  { %3437 = vmatprep.subr.msk.bf16.mxu1 %vm716_vm0, %v647_v2  ;;  %v706_v2 = vld [vmem:[%s5197_s2 + $0x30] sm:$0xff] }
 0x2e5   :  { %v3523_v7 = vpop.permute.xlu0 %3522 }
 0x2e6   :  { %v3525_v10 = vunpack.i.h.bf16 %v3523_v7  ;;  %v3524_v11 = vunpack.i.l.bf16 %v3523_v7 }
 0x2e7   :  { %v3533_v12 = vpop.permute.xlu1 %3532 }
 0x2e8   :  { %v699_v14 = vpack.c.bf16 %v3525_v10, %v3524_v11  ;;  %v3535_v15 = vunpack.i.h.bf16 %v3533_v12  ;;  %v3534_v18 = vunpack.i.l.bf16 %v3533_v12  ;;  %v704_v10 = vld [vmem:[%s5197_s2 + $0x20] sm:$0xff]  ;;  %v705_v12 = vld [vmem:[%s5197_s2 + $0x28] sm:$0xff] }
 0x2e9   :  { %v3528_v21 = vpop.permute.xlu0 %3527 }
 0x2ea   :  { %v698_v25 = vpack.c.bf16 %v3535_v15, %v3534_v18  ;;  %v3530_v26 = vunpack.i.h.bf16 %v3528_v21  ;;  %v3529_v27 = vunpack.i.l.bf16 %v3528_v21  ;;  %3319 = vmatprep.subr.bf16.mxu0 %v699_v14  ;;  %v710_v21 = vld [vmem:[%s5197_s2 + $0x50] sm:$0xff] }
 0x2eb   :  { %3320 = vmatpush3.bf16.msra.mxu0 %v699_v14  ;;  %3296 = vmatpush3.bf16.xpose.msra.mxu1 %v751_v22 }
 0x2ec   :  { %3321 = vmatprep.subr.bf16.mxu0 %v698_v25  ;;  %3438 = vmatprep.subr.msk.bf16.mxu1 %vm716_vm0, %v646_v24  ;;  %v697_v28 = vpack.c.bf16 %v3530_v26, %v3529_v27  ;;  %v711_v24 = vld [vmem:[%s5197_s2 + $0x58] sm:$0xff] }
 0x2ef   :  { %3322 = vmatpush3.bf16.msra.mxu0 %v698_v25 }
 0x2f0   :  { %3323 = vmatprep.subr.bf16.mxu0 %v697_v28 }
 0x2f3   :  { %3324 = vmatpush3.bf16.msra.mxu0 %v697_v28  ;;  %3298 = vmatpush3.bf16.xpose.msra.mxu1 %v748_v30  ;;  %v708_v28 = vld [vmem:[%s5197_s2 + $0x40] sm:$0xff] }
 0x2f4   :  { %3439 = vmatprep.subr.msk.bf16.mxu1 %vm716_vm0, %v4245_v20  ;;  %v3504_v20 = vunpack.i.l.bf16 %v3503_v59  ;;  %v703_v59 = vld [vmem:[%s5197_s2 + $0x18] sm:$0xff] }
 0x2f6   :  { %v600_v44 = vpack.c.bf16 %v3505_v42, %v3504_v20 }
 0x2fb   :  { %3300 = vmatpush3.bf16.xpose.msra.mxu1 %v745_v37 }
 0x2fc   :  { %3440 = vmatprep.subr.msk.bf16.mxu1 %vm716_vm0, %v644_v36  ;;  %v709_v36 = vld [vmem:[%s5197_s2 + $0x48] sm:$0xff] }
 0x303   :  { %3302 = vmatpush3.bf16.xpose.msra.mxu1 %v742_v38 }
 0x30a   :  { %3304 = vmatmul.mubr.msk.bf16.vlgmr.msra.gmra.mxu1 %vm716_vm0, %v597_v19  ;;  %v3519_v19 = vunpack.i.l.bf16 %v3518_v6  ;;  %v707_v6 = vld [vmem:[%s5197_s2 + $0x38] sm:$0xff] }
 0x30b   :  { %3307 = vmatprep.mubr.msk.bf16.mxu1 %vm716_vm0, %v598_v41 }
 0x30c   :  { %v603_v50 = vpack.c.bf16 %v3520_v17, %v3519_v19 }
 0x312   :  { %3308 = vmatmul.mubr.msk.bf16.gmra.mxu1 %vm716_vm0, %v599_v43  ;;  %v712_v43 = vld [vmem:[%s5197_s2 + $0x60] sm:$0xff] }
 0x313   :  { %3311 = vmatprep.mubr.msk.bf16.mxu1 %vm716_vm0, %v600_v44 }
 0x31a   :  { %3312 = vmatmul.mubr.msk.bf16.gmra.mxu1 %vm716_vm0, %v601_v49 }
 0x31b   :  { %3315 = vmatprep.mubr.msk.bf16.mxu1 %vm716_vm0, %v602_v13 }
 0x322   :  { %3316 = vmatmul.mubr.msk.bf16.gmra.mxu1 %vm716_vm0, %v603_v50 }
 0x3ca   :  { %v3305_v52 = vpop.f32.mrf.mxu1 }
 0x3cb   :  { %v4317_v53 = vadd.f32 %v3305_v52, %v702_v51 }
 0x3cc   :  { %v799_v54 = vpop.f32.mrf.mxu1 }
 0x3cd   :  { %866 = vmax.xlane.f32.xlu0 %v4317_v53  ;;  %v4326_v58 = vadd.f32 %v799_v54, %v700_v55 }
 0x3ce   :  { %v3306_v56 = vpop.f32.mrf.mxu1 }
 0x3cf   :  { %v4334_v1 = vadd.f32 %v3306_v56, %v703_v59 }
 0x3d0   :  { %v802_v60 = vpop.f32.mrf.mxu1 }
 0x3d1   :  { %v4331_v63 = vadd.f32 %v802_v60, %v701_v57  ;;  %862 = vmax.xlane.f32.xlu0 %v4326_v58 }
 0x3d2   :  { %v3309_v0 = vpop.f32.mrf.mxu1 }
 0x3d3   :  { %864 = vmax.xlane.f32.xlu1 %v4331_v63  ;;  %v4344_v8 = vadd.f32 %v3309_v0, %v706_v2 }
 0x3d4   :  { %v815_v5 = vpop.f32.mrf.mxu1 }
 0x3d5   :  { %868 = vmax.xlane.f32.xlu0 %v4334_v1  ;;  %v4356_v15 = vadd.f32 %v815_v5, %v704_v10 }
 0x3d6   :  { %v3310_v7 = vpop.f32.mrf.mxu1 }
 0x3d7   :  { %v4346_v9 = vadd.f32 %v3310_v7, %v707_v6 }
 0x3d8   :  { %v818_v11 = vpop.f32.mrf.mxu1 }
 0x3d9   :  { %874 = vmax.xlane.f32.xlu0 %v4344_v8  ;;  %876 = vmax.xlane.f32.xlu1 %v4346_v9  ;;  %v4358_v18 = vadd.f32 %v818_v11, %v705_v12 }
 0x3da   :  { %v3313_v14 = vpop.f32.mrf.mxu1 }
 0x3db   :  { %v4368_v26 = vadd.f32 %v3313_v14, %v710_v21 }
 0x3dc   :  { %v831_v22 = vpop.f32.mrf.mxu1 }
 0x3dd   :  { %870 = vmax.xlane.f32.xlu0 %v4356_v15  ;;  %872 = vmax.xlane.f32.xlu1 %v4358_v18  ;;  %v4380_v38 = vadd.f32 %v831_v22, %v708_v28 }
 0x3de   :  { %v3314_v25 = vpop.f32.mrf.mxu1 }
 0x3df   :  { %v4370_v27 = vadd.f32 %v3314_v25, %v711_v24 }
 0x3e0   :  { %v834_v30 = vpop.f32.mrf.mxu1 }
 0x3e1   :  { %882 = vmax.xlane.f32.xlu0 %v4368_v26  ;;  %884 = vmax.xlane.f32.xlu1 %v4370_v27  ;;  %v4382_v39 = vadd.f32 %v834_v30, %v709_v36 }
 0x3e2   :  { %v3317_v37 = vpop.f32.mrf.mxu1 }
 0x3e3   :  { %v4392_v42 = vadd.f32 %v3317_v37, %v714_v40 }
 0x3e4   :  { %v847_v41 = vpop.f32.mrf.mxu1 }
 0x3e5   :  { %878 = vmax.xlane.f32.xlu0 %v4380_v38  ;;  %880 = vmax.xlane.f32.xlu1 %v4382_v39  ;;  %v4404_v46 = vadd.f32 %v847_v41, %v712_v43 }
 0x3e6   :  { %v3318_v23 = vpop.f32.mrf.mxu1 }
 0x3e7   :  { %v4394_v20 = vadd.f32 %v3318_v23, %v715_v16 }
 0x3e8   :  { %v850_v44 = vpop.f32.mrf.mxu1 }
 0x3e9   :  { %890 = vmax.xlane.f32.xlu0 %v4392_v42  ;;  %892 = vmax.xlane.f32.xlu1 %v4394_v20  ;;  %v4406_v47 = vadd.f32 %v850_v44, %v713_v45 }
 0x3ed   :  { %886 = vmax.xlane.f32.xlu0 %v4404_v46  ;;  %888 = vmax.xlane.f32.xlu1 %v4406_v47 }
 0x3fe   :  { %3537 = vrot.lane.b32.xlu1 %v4278_v35, %s4091_s23 }
 0x403   :  { %3542 = vrot.lane.b32.xlu0 %v4268_v31, %s4096_s6 }
 0x456   :  { %v867_v48 = vpop.xlane.xlu0 %866 }
 0x457   :  { %v896_v49 = vsub.f32 %v4317_v53, %v867_v48 }
 0x459   :  { %v914_v13 = vmul.f32 1.442695, %v896_v49 }
 0x45a   :  { %v863_v17 = vpop.xlane.xlu0 %862 }
 0x45b   :  { %3593 = vpow2.f32 %v914_v13  ;;  %v894_v19 = vsub.f32 %v4326_v58, %v863_v17 }
 0x45c   :  { %v865_v50 = vpop.xlane.xlu1 %864 }
 0x45d   :  { %v910_v51 = vmul.f32 1.442695, %v894_v19  ;;  %v895_v52 = vsub.f32 %v4331_v63, %v865_v50 }
 0x45e   :  { %v869_v54 = vpop.xlane.xlu0 %868 }
 0x45f   :  { %3595 = vpow2.f32 %v910_v51  ;;  %v897_v55 = vsub.f32 %v4334_v1, %v869_v54  ;;  %v912_v57 = vmul.f32 1.442695, %v895_v52 }
 0x461   :  { %v916_v56 = vmul.f32 1.442695, %v897_v55 }
 0x462   :  { %v875_v59 = vpop.xlane.xlu0 %874  ;;  %v877_v31 = vpop.xlane.xlu1 %876 }
 0x463   :  { %3597 = vpow2.f32 %v916_v56  ;;  %v900_v53 = vsub.f32 %v4344_v8, %v875_v59  ;;  %v901_v58 = vsub.f32 %v4346_v9, %v877_v31 }
 0x464   :  { %3599 = vpow2.f32 %v912_v57 }
 0x465   :  { %v922_v60 = vmul.f32 1.442695, %v900_v53  ;;  %v924_v10 = vmul.f32 1.442695, %v901_v58 }
 0x466   :  { %v871_v0 = vpop.xlane.xlu0 %870  ;;  %v873_v2 = vpop.xlane.xlu1 %872 }
 0x467   :  { %3601 = vpow2.f32 %v922_v60  ;;  %v898_v63 = vsub.f32 %v4356_v15, %v871_v0  ;;  %v899_v8 = vsub.f32 %v4358_v18, %v873_v2 }
 0x468   :  { %v4421_v5 = vpop.eup %3593 }
 0x469   :  { %v918_v6 = vmul.f32 1.442695, %v898_v63  ;;  %946 = vadd.xlane.f32.xlu0 %v4421_v5  ;;  %v920_v14 = vmul.f32 1.442695, %v899_v8 }
 0x46a   :  { %v883_v1 = vpop.xlane.xlu0 %882  ;;  %v4424_v7 = vpop.xlane.xlu1 %884 }
 0x46b   :  { %3603 = vpow2.f32 %v918_v6  ;;  %v904_v15 = vsub.f32 %v4368_v26, %v883_v1  ;;  %v905_v31 = vsub.f32 %v4370_v27, %v4424_v7 }
 0x46c   :  { %v4427_v11 = vpop.eup %3595  ;;  %3605 = vpow2.f32 %v924_v10 }
 0x46d   :  { %942 = vadd.xlane.f32.xlu1 %v4427_v11  ;;  %3607 = vpow2.f32 %v920_v14  ;;  %v930_v18 = vmul.f32 1.442695, %v904_v15  ;;  %v932_v60 = vmul.f32 1.442695, %v905_v31  ;;  %v1216_v31 = vld [vmem:[%s5200_s5 + $0x30] sm:$0xff] }
 0x46e   :  { %v879_v12 = vpop.xlane.xlu0 %878  ;;  %v881_v9 = vpop.xlane.xlu1 %880 }
 0x46f   :  { %v902_v28 = vsub.f32 %v4380_v38, %v879_v12  ;;  %3609 = vpow2.f32 %v930_v18  ;;  %v903_v40 = vsub.f32 %v4382_v39, %v881_v9 }
 0x470   :  { %v4431_v21 = vpop.eup %3597 }
 0x471   :  { %948 = vadd.xlane.f32.xlu1 %v4431_v21  ;;  %v4434_v25 = vpop.eup %3599  ;;  %v926_v37 = vmul.f32 1.442695, %v902_v28  ;;  %v928_v38 = vmul.f32 1.442695, %v903_v40 }
 0x472   :  { %v891_v22 = vpop.xlane.xlu0 %890  ;;  %v893_v24 = vpop.xlane.xlu1 %892 }
 0x473   :  { %3611 = vpow2.f32 %v926_v37  ;;  %v908_v43 = vsub.f32 %v4392_v42, %v891_v22  ;;  %v909_v55 = vsub.f32 %v4394_v20, %v893_v24  ;;  %v692_v24 = vpack.c.bf16 %v4272_v34, %v4266_v29  ;;  %v1225_v29 = vld [vmem:[%s5200_s5 + $0x78] sm:$0xff]  ;;  %v1224_v34 = vld [vmem:[%s5200_s5 + $0x70] sm:$0xff] }
 0x474   :  { %v4437_v30 = vpop.eup %3601  ;;  %3613 = vpow2.f32 %v928_v38 }
 0x475   :  { %954 = vadd.xlane.f32.xlu0 %v4437_v30  ;;  %944 = vadd.xlane.f32.xlu1 %v4434_v25  ;;  %v938_v39 = vmul.f32 1.442695, %v908_v43  ;;  %v940_v57 = vmul.f32 1.442695, %v909_v55  ;;  %v4097_v43 = vmov 0.0  }
 0x476   :  { %v887_v36 = vpop.xlane.xlu0 %886  ;;  %v889_v26 = vpop.xlane.xlu1 %888 }
 0x477   :  { %v906_v19 = vsub.f32 %v4404_v46, %v887_v36  ;;  %3615 = vpow2.f32 %v938_v39  ;;  %v907_v52 = vsub.f32 %v4406_v47, %v889_v26 }
 0x478   :  { %v4442_v41 = vpop.eup %3603 }
 0x479   :  { %950 = vadd.xlane.f32.xlu1 %v4442_v41  ;;  %v4446_v45 = vpop.eup %3605  ;;  %v934_v42 = vmul.f32 1.442695, %v906_v19  ;;  %v936_v46 = vmul.f32 1.442695, %v907_v52  ;;  %v1221_v19 = vld [vmem:[%s5200_s5 + $0x58] sm:$0xff] }
 0x47a   :  { %v3543_v16 = vpop.permute.xlu0 %3542  ;;  %v3538_v23 = vpop.permute.xlu1 %3537 }
 0x47b   :  { %v3540_v44 = vunpack.i.h.bf16 %v3538_v23  ;;  %v3545_v48 = vunpack.i.h.bf16 %v3543_v16  ;;  %v3544_v49 = vunpack.i.l.bf16 %v3543_v16  ;;  %v3539_v13 = vunpack.i.l.bf16 %v3538_v23  ;;  %v4450_v50 = vpop.eup %3607 }
 0x47c   :  { %v4454_v54 = vpop.eup %3609  ;;  %3617 = vpow2.f32 %v934_v42 }
 0x47d   :  { %956 = vadd.xlane.f32.xlu1 %v4446_v45  ;;  %v696_v17 = vpack.c.bf16 %v3540_v44, %v3539_v13  ;;  %v695_v51 = vpack.c.bf16 %v3545_v48, %v3544_v49  ;;  %3619 = vpow2.f32 %v936_v46  ;;  %v1222_v48 = vld [vmem:[%s5200_s5 + $0x60] sm:$0xff]  ;;  %v1217_v46 = vld [vmem:[%s5200_s5 + $0x38] sm:$0xff] }
 0x47e   :  { %3621 = vpow2.f32 %v940_v57 }
 0x47f   :  { %3325 = vmatprep.subr.bf16.mxu0 %v696_v17  ;;  %3623 = vpow2.f32 %v932_v60 }
 0x480   :  { %3326 = vmatpush3.bf16.msra.mxu0 %v696_v17  ;;  %v4458_v56 = vpop.eup %3611 }
 0x481   :  { %952 = vadd.xlane.f32.xlu1 %v4450_v50  ;;  %3327 = vmatprep.subr.bf16.mxu0 %v695_v51  ;;  %v4463_v59 = vpop.eup %3613 }
 0x484   :  { %3328 = vmatpush3.bf16.msra.mxu0 %v695_v51  ;;  %v4466_v47 = vpop.eup %3615 }
 0x485   :  { %962 = vadd.xlane.f32.xlu1 %v4454_v54 }
 0x489   :  { %958 = vadd.xlane.f32.xlu1 %v4458_v56  ;;  %v4469_v20 = vpop.eup %3617 }
 0x48a   :  { %v4474_v53 = vpop.eup %3619 }
 0x48b   :  { %3547 = vrot.lane.b32.xlu0 %v4278_v35, %s4096_s6  ;;  %v4477_v35 = vpop.eup %3621 }
 0x48c   :  { %v4482_v0 = vpop.eup %3623 }
 0x48d   :  { %960 = vadd.xlane.f32.xlu1 %v4463_v59 }
 0x491   :  { %970 = vadd.xlane.f32.xlu1 %v4466_v47 }
 0x495   :  { %966 = vadd.xlane.f32.xlu1 %v4469_v20 }
 0x499   :  { %968 = vadd.xlane.f32.xlu1 %v4474_v53 }
 0x49d   :  { %972 = vadd.xlane.f32.xlu1 %v4477_v35 }
 0x4a1   :  { %1407 = vmax.xlane.f32.xlu1 %v4233_v4 }
 0x4a5   :  { %1405 = vmax.xlane.f32.xlu1 %v4231_v3 }
 0x4a9   :  { %1403 = vmax.xlane.f32.xlu1 %v4226_v62 }
 0x4aa   :  { %964 = vadd.xlane.f32.xlu0 %v4482_v0 }
 0x4ad   :  { %1395 = vadd.xlane.f32.xlu1 %v4233_v4 }
 0x4ae   :  { %1401 = vmax.xlane.f32.xlu0 %v4224_v61 }
 0x4b1   :  { %1393 = vadd.xlane.f32.xlu1 %v4231_v3 }
 0x4b2   :  { %1391 = vadd.xlane.f32.xlu0 %v4226_v62 }
 0x4b5   :  { %1389 = vadd.xlane.f32.xlu1 %v4224_v61 }
 0x4f2   :  { %v947_v2 = vpop.xlane.xlu0 %946 }
 0x4f6   :  { %v943_v27 = vpop.xlane.xlu1 %942 }
 0x4fa   :  { %v949_v58 = vpop.xlane.xlu1 %948 }
 0x4fb   :  { %3625 = vrcp.f32 %v949_v58 }
 0x4fc   :  { %3627 = vrcp.f32 %v943_v27 }
 0x4fd   :  { %3629 = vrcp.f32 %v947_v2  ;;  %v1215_v2 = vld [vmem:[%s5200_s5 + $0x28] sm:$0xff] }
 0x4fe   :  { %v955_v63 = vpop.xlane.xlu0 %954  ;;  %v945_v6 = vpop.xlane.xlu1 %944 }
 0x4ff   :  { %3631 = vrcp.f32 %v945_v6  ;;  %v1214_v6 = vld [vmem:[%s5200_s5 + $0x20] sm:$0xff] }
 0x502   :  { %v3548_v1 = vpop.permute.xlu0 %3547  ;;  %v951_v7 = vpop.xlane.xlu1 %950 }
 0x503   :  { %v3550_v10 = vunpack.i.h.bf16 %v3548_v1  ;;  %v3549_v8 = vunpack.i.l.bf16 %v3548_v1 }
 0x505   :  { %v694_v12 = vpack.c.bf16 %v3550_v10, %v3549_v8  ;;  %v1210_v10 = vld [vmem:[%s5200_s5] sm:$0xff]  ;;  %v1173_v8 = vadd.f32 %v4226_v62, %v4224_v61 }
 0x506   :  { %v957_v9 = vpop.xlane.xlu1 %956 }
 0x507   :  { %3329 = vmatprep.subr.bf16.mxu0 %v694_v12  ;;  %3633 = vrcp.f32 %v957_v9 }
 0x508   :  { %3330 = vmatpush3.bf16.msra.mxu0 %v694_v12  ;;  %3635 = vrcp.f32 %v951_v7  ;;  %v3626_v14 = vpop.eup %3625  ;;  %v1211_v7 = vld [vmem:[%s5200_s5 + $0x8] sm:$0xff]  ;;  %v1189_v12 = vadd.f32 %v4233_v4, %v4231_v3 }
 0x509   :  { %3331 = vmatprep.subr.bf16.mxu0 %v4270_v33  ;;  %3637 = vrcp.f32 %v955_v63  ;;  %v3628_v22 = vpop.eup %3627  ;;  %v993_v36 = vmul.f32 %v3626_v14, %v4431_v21 }
 0x50a   :  { %v953_v15 = vpop.xlane.xlu1 %952  ;;  %v3630_v18 = vpop.eup %3629  ;;  %v990_v37 = vmul.f32 %v3628_v22, %v4427_v11  ;;  %v1190_v22 = vrot.slane %v1189_v12, 4 }
 0x50b   :  { %3639 = vrcp.f32 %v953_v15  ;;  %v992_v16 = vmul.f32 %v3630_v18, %v4421_v5  ;;  %v1223_v5 = vld [vmem:[%s5200_s5 + $0x68] sm:$0xff]  ;;  %v1174_v15 = vrot.slane %v1173_v8, 4 }
 0x50c   :  { %3332 = vmatpush3.bf16.msra.mxu0 %v4270_v33  ;;  %v3632_v28 = vpop.eup %3631 }
 0x50d   :  { %3333 = vmatprep.subr.bf16.mxu0 %v692_v24  ;;  %v991_v40 = vmul.f32 %v3632_v28, %v4434_v25  ;;  %v1007_v38 = vpack.c.bf16 %v993_v36, %v992_v16  ;;  %v1175_v18 = vadd.f32 %v1174_v15, %v1173_v8  ;;  %v1191_v28 = vadd.f32 %v1190_v22, %v1189_v12 }
 0x50e   :  { %v4496_v26 = vpop.xlane.xlu1 %962 }
 0x50f   :  { %v1006_v23 = vpack.c.bf16 %v991_v40, %v990_v37  ;;  %v1176_v37 = vrot.slane %v1175_v18, 2  ;;  %v1192_v16 = vrot.slane %v1191_v28, 2 }
 0x510   :  { %3334 = vmatpush3.bf16.msra.mxu0 %v692_v24  ;;  %v1182_v24 = vmax.f32 %v4224_v61, %v4226_v62 }
 0x511   :  { %3351 = vmatprep.subr.mxu0 %v4097_v43  ;;  %3335 = vmatprep.mubr.bf16.mxu0 %v1006_v23 }
 0x512   :  { %v959_v33 = vpop.xlane.xlu1 %958  ;;  %v1183_v36 = vrot.slane %v1182_v24, 4 }
 0x513   :  { %3336 = vmatmul.mubr.bf16.vlgmr.msra.gmra.mxu0 %v1007_v38  ;;  %3641 = vrcp.f32 %v959_v33 }
 0x514   :  { %3352 = vmatpush3.msra.mxu0 %v1225_v29  ;;  %v3634_v11 = vpop.eup %3633  ;;  %v1184_v38 = vmax.f32 %v1182_v24, %v1183_v36 }
 0x515   :  { %3353 = vmatprep.subr.mxu0 %v4097_v43  ;;  %v3636_v21 = vpop.eup %3635  ;;  %v997_v13 = vmul.f32 %v3634_v11, %v4446_v45  ;;  %v1219_v45 = vld [vmem:[%s5200_s5 + $0x48] sm:$0xff] }
 0x516   :  { %v961_v25 = vpop.xlane.xlu1 %960  ;;  %3354 = vmatpush3.msra.mxu0 %v1224_v34  ;;  %v3638_v44 = vpop.eup %3637  ;;  %v994_v17 = vmul.f32 %v3636_v21, %v4442_v41  ;;  %v1220_v41 = vld [vmem:[%s5200_s5 + $0x50] sm:$0xff] }
 0x517   :  { %3643 = vrcp.f32 %v961_v25  ;;  %3355 = vmatprep.subr.mxu0 %v4097_v43  ;;  %v996_v51 = vmul.f32 %v3638_v44, %v4437_v30  ;;  %v1218_v30 = vld [vmem:[%s5200_s5 + $0x40] sm:$0xff]  ;;  %v1193_v44 = vadd.f32 %v1192_v16, %v1191_v28 }
 0x518   :  { %v3640_v49 = vpop.eup %3639  ;;  %3356 = vmatpush3.msra.mxu0 %v1223_v5  ;;  %v1177_v5 = vadd.f32 %v1176_v37, %v1175_v18 }
 0x519   :  { %v995_v39 = vmul.f32 %v3640_v49, %v4450_v50  ;;  %3357 = vmatprep.subr.mxu0 %v4097_v43  ;;  %v1009_v52 = vpack.c.bf16 %v997_v13, %v996_v51  ;;  %v1185_v49 = vrot.slane %v1184_v38, 2 }
 0x51a   :  { %3358 = vmatpush3.msra.mxu0 %v1222_v48  ;;  %v971_v55 = vpop.xlane.xlu1 %970  ;;  %v1178_v51 = vrot.slane %v1177_v5, 1 }
 0x51b   :  { %v1008_v42 = vpack.c.bf16 %v995_v39, %v994_v17  ;;  %3359 = vmatprep.subr.mxu0 %v4097_v43 }
 0x51c   :  { %3360 = vmatpush3.msra.mxu0 %v1221_v19 }
 0x51d   :  { %3339 = vmatprep.mubr.bf16.mxu0 %v1008_v42  ;;  %3361 = vmatprep.subr.mxu0 %v4097_v43  ;;  %v1194_v42 = vrot.slane %v1193_v44, 1 }
 0x51e   :  { %3340 = vmatmul.mubr.bf16.gmra.mxu0 %v1009_v52  ;;  %v967_v63 = vpop.xlane.xlu1 %966 }
 0x51f   :  { %3362 = vmatpush3.msra.mxu0 %v1220_v41  ;;  %v1186_v41 = vmax.f32 %v1184_v38, %v1185_v49  ;;  %v1411_v49 = vld [vmem:[#allocation14 + $0x10] sm:$0xff] }
 0x520   :  { %3363 = vmatprep.subr.mxu0 %v4097_v43  ;;  %v3642_v50 = vpop.eup %3641 }
 0x521   :  { %3364 = vmatpush3.msra.mxu0 %v1219_v45  ;;  %v998_v60 = vmul.f32 %v3642_v50, %v4458_v56  ;;  %v1213_v56 = vld [vmem:[%s5200_s5 + $0x18] sm:$0xff]  ;;  %v1187_v50 = vrot.slane %v1186_v41, 1 }
 0x522   :  { %3365 = vmatprep.subr.mxu0 %v4097_v43  ;;  %v969_v1 = vpop.xlane.xlu1 %968 }
 0x523   :  { %3366 = vmatpush3.msra.mxu0 %v1218_v30  ;;  %3645 = vrcp.f32 %v969_v1  ;;  %v1195_v30 = vadd.f32 %v1194_v42, %v1193_v44 }
 0x524   :  { %v3644_v57 = vpop.eup %3643  ;;  %3367 = vmatprep.subr.mxu0 %v4097_v43  ;;  %3647 = vrcp.f32 %v4496_v26  ;;  %v1197_v26 = vmax.f32 %v4231_v3, %v4233_v4 }
 0x525   :  { %v999_v27 = vmul.f32 %v3644_v57, %v4463_v59  ;;  %3368 = vmatpush3.msra.mxu0 %v1217_v46  ;;  %v1212_v59 = vld [vmem:[%s5200_s5 + $0x10] sm:$0xff]  ;;  %3649 = vrcp.f32 %v967_v63  ;;  %v1196_v57 = vmul.f32 0.0625, %v1195_v30  ;;  %s2933_s5 = sld [smem:[#allocation15 + $0x1]] }
 0x526   :  { %3369 = vmatprep.subr.mxu0 %v4097_v43  ;;  %v973_v14 = vpop.xlane.xlu1 %972  ;;  %v1198_v29 = vrot.slane %v1197_v26, 4 }
 0x527   :  { %v1010_v58 = vpack.c.bf16 %v999_v27, %v998_v60  ;;  %3370 = vmatpush3.msra.mxu0 %v1216_v31  ;;  %v1188_v31 = vmax.f32 %v1186_v41, %v1187_v50 }
 0x528   :  { %3371 = vmatprep.subr.mxu0 %v4097_v43  ;;  %v1199_v13 = vmax.f32 %v1197_v26, %v1198_v29 }
 0x529   :  { %3343 = vmatprep.mubr.bf16.mxu0 %v1010_v58  ;;  %3372 = vmatpush3.msra.mxu0 %v1215_v2  ;;  %v1297_v58 = vld [vmem:[#allocation12] sm:$0xff] }
 0x52a   :  { %3373 = vmatprep.subr.mxu0 %v4097_v43  ;;  %v1408_v63 = vpop.xlane.xlu1 %1407 }
 0x52b   :  { %3374 = vmatpush3.msra.mxu0 %v1214_v6 }
 0x52c   :  { %3375 = vmatprep.subr.mxu0 %v4097_v43 }
 0x52d   :  { %3376 = vmatpush3.msra.mxu0 %v1213_v56 }
 0x52e   :  { %3377 = vmatprep.subr.mxu0 %v4097_v43 }
 0x52f   :  { %3378 = vmatpush3.msra.mxu0 %v1212_v59 }
 0x530   :  { %3379 = vmatprep.subr.mxu0 %v4097_v43  ;;  %v3646_v40 = vpop.eup %3645 }
 0x531   :  { %3380 = vmatpush3.msra.mxu0 %v1211_v7  ;;  %v3648_v23 = vpop.eup %3647  ;;  %v1003_v11 = vmul.f32 %v3646_v40, %v4474_v53  ;;  %v1200_v53 = vrot.slane %v1199_v13, 2 }
 0x532   :  { %3381 = vmatprep.subr.mxu0 %v4097_v43  ;;  %v3650_v33 = vpop.eup %3649  ;;  %v1000_v21 = vmul.f32 %v3648_v23, %v4454_v54  ;;  %v1179_v54 = vadd.f32 %v1178_v51, %v1177_v5  ;;  %v1409_v23 = vld [vmem:[#allocation14] sm:$0xff] }
 0x533   :  { %v965_v9 = vpop.xlane.xlu0 %964  ;;  %3382 = vmatpush3.msra.mxu0 %v1210_v10  ;;  %v1002_v48 = vmul.f32 %v3650_v33, %v4469_v20  ;;  %v1201_v20 = vmax.f32 %v1199_v13, %v1200_v53  ;;  %v1412_v13 = vld [vmem:[#allocation14 + $0x18] sm:$0xff]  ;;  %v3579_v51 = vld [vmem:[#allocation11 + $0x28] sm:$0xff]  }
 0x534   :  { %3651 = vrcp.f32 %v965_v9  ;;  %3386 = vmatprep.subr.mxu0 %v4097_v43  ;;  %v1181_v46 = vmul.f32 0.0625, %v1179_v54 }
 0x535   :  { %3653 = vrcp.f32 %v973_v14  ;;  %v1012_v19 = vpack.c.bf16 %v1003_v11, %v1002_v48  ;;  %v1202_v60 = vrot.slane %v1201_v20, 1  ;;  %v1406_v14 = vpop.xlane.xlu1 %1405  ;;  %v1410_v48 = vld [vmem:[#allocation14 + $0x8] sm:$0xff] }
 0x536   :  { %3655 = vrcp.f32 %v971_v55  ;;  %v1205_v27 = vsel %vm1204_vm1, %v1181_v46, %v1188_v31 }
 0x537   :  { %v1207_v2 = vsel %vm1206_vm3, %v1205_v27, %v1196_v57  ;;  %v1402_v29 = vpop.xlane.xlu0 %1401 }
 0x539   :  { %v1404_v18 = vpop.xlane.xlu1 %1403 }
 0x53b   :  { %v1392_v11 = vpop.xlane.xlu0 %1391 }
 0x53d   :  { %v1396_v37 = vpop.xlane.xlu1 %1395 }
 0x541   :  { %v3652_v34 = vpop.eup %3651  ;;  %v1394_v33 = vpop.xlane.xlu1 %1393 }
 0x542   :  { %v1001_v25 = vmul.f32 %v3652_v34, %v4482_v0  ;;  %v3654_v39 = vpop.eup %3653  ;;  %v1400_v34 = vmul.f32 0.0078125, %v1396_v37  ;;  %v1399_v5 = vmul.f32 0.0078125, %v1394_v33  ;;  %v1381_v33 = vlaneseq }
 0x543   :  { %v3656_v52 = vpop.eup %3655  ;;  %v1005_v45 = vmul.f32 %v3654_v39, %v4477_v35  ;;  %v1203_v35 = vmax.f32 %v1201_v20, %v1202_v60  ;;  %v3577_v39 = vld [vmem:[#allocation11 + $0x38] sm:$0xff]  }
 0x544   :  { %v1011_v17 = vpack.c.bf16 %v1001_v25, %v1000_v21  ;;  %v1004_v0 = vmul.f32 %v3656_v52, %v4466_v47  ;;  %v1398_v25 = vmul.f32 0.0078125, %v1392_v11  ;;  %3413 = vmatprep.subr.bf16.mxu1 %v3577_v39  ;;  %v4621_v11 = vshrl.u32 %v1381_v33, 7 }
 0x545   :  { %v1209_v47 = vsel %vm1208_vm4, %v1207_v2, %v1203_v35  ;;  %v1390_v21 = vpop.xlane.xlu1 %1389  ;;  %3414 = vmatpush3.bf16.msra.mxu1 %v3577_v39 }
 0x546   :  { %3344 = vmatmul.mubr.bf16.gmra.mxu0 %v1011_v17  ;;  %v1013_v55 = vpack.c.bf16 %v1005_v45, %v1004_v0  ;;  %v1397_v44 = vmul.f32 0.0078125, %v1390_v21  ;;  %v4099_v17 = vmov 0  }
 0x547   :  { %3347 = vmatprep.mubr.bf16.mxu0 %v1012_v19  ;;  %3551 = vset.pattern.permute.xlu1 %v4099_v17  ;;  %v3578_v19 = vld [vmem:[#allocation11 + $0x30] sm:$0xff]  }
 0x548   :  { %3552 = vset.pattern.permute.xlu0 %v4099_v17  ;;  %3415 = vmatprep.subr.bf16.mxu1 %v3578_v19 }
 0x549   :  { %3416 = vmatpush3.bf16.msra.mxu1 %v3578_v19 }
 0x54a   :  { %3417 = vmatprep.subr.bf16.mxu1 %v3579_v51 }
 0x54d   :  { %3418 = vmatpush3.bf16.msra.mxu1 %v3579_v51 }
 0x54e   :  { %3348 = vmatmul.mubr.bf16.gmra.mxu0 %v1013_v55 }
 0x54f   :  { %3383 = vmatprep.mubr.msk.f32.mxu0 %vm4098_vm2, %v4097_v43 }
 0x556   :  { %3384 = vmatmul.mubr.f32.vlgmr.msra.gmra.mxu0 %v1209_v47 }
 0x557   :  { %3387 = vmatpush3.msra.mxu0 %v1297_v58  ;;  %3388 = vmatprep.mubr.msk.f32.mxu0 %vm4098_vm2, %v4097_v43 }
 0x558   :  { %3391 = vmatprep.subr.mxu0 %v1408_v63 }
 0x5d3   :  { %v4589_v6 = vpop.f32.mrf.mxu0 }
 0x5d5   :  { %v4591_v56 = vpop.f32.mrf.mxu0 }
 0x5d7   :  { %v4593_v59 = vpop.f32.mrf.mxu0 }
 0x5d9   :  { %v4595_v1 = vpop.f32.mrf.mxu0 }
 0x5de   :  { %v3341_v7 = vpop.f32.mrf.mxu0 }
 0x5df   :  { %1119 = vrot.lane.b32.xlu1 %v3341_v7, %s4095_s22 }
 0x5e0   :  { %v1064_v10 = vpop.f32.mrf.mxu0 }
 0x5e2   :  { %v3342_v8 = vpop.f32.mrf.mxu0 }
 0x5e3   :  { %1115 = vrot.lane.b32.xlu1 %v1064_v10, %s4095_s22  ;;  %v3580_v10 = vld [vmem:[#allocation11 + $0x20] sm:$0xff]  }
 0x5e4   :  { %v1067_v12 = vpop.f32.mrf.mxu0  ;;  %3419 = vmatprep.subr.bf16.mxu1 %v3580_v10 }
 0x5e5   :  { %3420 = vmatpush3.bf16.msra.mxu1 %v3580_v10 }
 0x5e7   :  { %1121 = vrot.lane.b32.xlu1 %v3342_v8, %s4095_s22 }
 0x5eb   :  { %1117 = vrot.lane.b32.xlu1 %v1067_v12, %s4095_s22  ;;  %v3581_v12 = vld [vmem:[#allocation11 + $0x18] sm:$0xff]   ;;  %s2934_s22 = sld [smem:[#allocation15 + $0x2]] }
 0x5ec   :  { %3421 = vmatprep.subr.bf16.mxu1 %v3581_v12 }
 0x5ed   :  { %3422 = vmatpush3.bf16.msra.mxu1 %v3581_v12 }
 0x606   :  { %v3345_v43 = vpop.f32.mrf.mxu0 }
 0x607   :  { %1135 = vrot.lane.b32.xlu0 %v3345_v43, %s4091_s23 }
 0x608   :  { %v1080_v9 = vpop.f32.mrf.mxu0 }
 0x60a   :  { %v3346_v15 = vpop.f32.mrf.mxu0 }
 0x60b   :  { %1131 = vrot.lane.b32.xlu0 %v1080_v9, %s4091_s23  ;;  %1137 = vrot.lane.b32.xlu1 %v3346_v15, %s4091_s23 }
 0x60c   :  { %v1083_v22 = vpop.f32.mrf.mxu0 }
 0x60e   :  { %v4604_v24 = vpop.f32.mrf.mxu0 }
 0x60f   :  { %1133 = vrot.lane.b32.xlu1 %v1083_v22, %s4091_s23  ;;  %v3583_v22 = vld [vmem:[#allocation11 + $0x8] sm:$0xff]   ;;  %s151_s23 = sld [smem:[#allocation15]] }
 0x610   :  { %v1096_v28 = vpop.f32.mrf.mxu0 }
 0x611   :  { %1147 = vrot.lane.b32.xlu0 %v1096_v28, %s4096_s6 }
 0x612   :  { %v4608_v36 = vpop.f32.mrf.mxu0 }
 0x614   :  { %v1099_v26 = vpop.f32.mrf.mxu0 }
 0x615   :  { %1149 = vrot.lane.b32.xlu1 %v1099_v26, %s4096_s6 }
 0x616   :  { %v1292_v40 = vpop.f32.mrf.mxu0 }
 0x617   :  { %v1296_v16 = vmax.f32 %v1292_v40, 0.0 }
 0x618   :  { %v3385_v38 = vpop.f32.mrf.mxu0 }
 0x619   :  { %3389 = vmatmul.mubr.msk.f32.vlgmr.msra.gmra.mxu0 %vm1298_vm5, %v1296_v16 }
 0x61a   :  { %3392 = vmatpush3.msra.mxu0 %v1408_v63  ;;  %3407 = vmatprep.mubr.msk.f32.mxu0 %vm1163_vm6, %v1409_v23 }
 0x61b   :  { %3393 = vmatprep.subr.mxu0 %v1406_v14 }
 0x61c   :  { %3394 = vmatpush3.msra.mxu0 %v1406_v14  ;;  %v3582_v14 = vld [vmem:[#allocation11 + $0x10] sm:$0xff]  }
 0x61d   :  { %3395 = vmatprep.subr.mxu0 %v1404_v18  ;;  %3423 = vmatprep.subr.bf16.mxu1 %v3582_v14 }
 0x61e   :  { %3396 = vmatpush3.msra.mxu0 %v1404_v18  ;;  %3424 = vmatpush3.bf16.msra.mxu1 %v3582_v14  ;;  %v3584_v18 = vld [vmem:[#allocation11] sm:$0xff]  }
 0x61f   :  { %3397 = vmatprep.subr.mxu0 %v1402_v29  ;;  %3425 = vmatprep.subr.bf16.mxu1 %v3583_v22 }
 0x620   :  { %3398 = vmatpush3.msra.mxu0 %v1402_v29 }
 0x621   :  { %3399 = vmatprep.subr.mxu0 %v1400_v34 }
 0x622   :  { %3400 = vmatpush3.msra.mxu0 %v1400_v34  ;;  %3426 = vmatpush3.bf16.msra.mxu1 %v3583_v22 }
 0x623   :  { %3401 = vmatprep.subr.mxu0 %v1399_v5  ;;  %3427 = vmatprep.subr.bf16.mxu1 %v3584_v18 }
 0x624   :  { %3402 = vmatpush3.msra.mxu0 %v1399_v5 }
 0x625   :  { %3403 = vmatprep.subr.mxu0 %v1398_v25 }
 0x626   :  { %3404 = vmatpush3.msra.mxu0 %v1398_v25  ;;  %3428 = vmatpush3.bf16.msra.mxu1 %v3584_v18 }
 0x627   :  { %3405 = vmatprep.subr.mxu0 %v1397_v44 }
 0x628   :  { %3406 = vmatpush3.msra.mxu0 %v1397_v44 }
 0x629   :  { %3408 = vmatmul.mubr.msk.f32.vlgmr.msra.gmra.mxu0 %vm1163_vm6, %v1410_v48 }
 0x62a   :  { %3410 = vmatprep.mubr.msk.f32.mxu0 %vm1163_vm6, %v1411_v49 }
 0x62d   :  { %3411 = vmatmul.mubr.msk.f32.gmra.mxu0 %vm1163_vm6, %v1412_v13 }
 0x651   :  { %v1120_v16 = vpop.permute.xlu1 %1119 }
 0x652   :  { %v1161_v10 = vsel %vm716_vm0, %v4589_v6, %v1120_v16 }
 0x655   :  { %v1116_v23 = vpop.permute.xlu1 %1115 }
 0x659   :  { %v1122_v29 = vpop.permute.xlu1 %1121 }
 0x65a   :  { %v1162_v6 = vsel %vm716_vm0, %v4593_v59, %v1122_v29  ;;  %v2974_v59 = vld [vmem:[%s5196_s1 + $0x4] ss:$0 sm:$0xff] }
 0x65d   :  { %v1118_v34 = vpop.permute.xlu1 %1117 }
 0x679   :  { %v1136_v21 = vpop.permute.xlu0 %1135 }
 0x67d   :  { %v1138_v5 = vpop.permute.xlu1 %1137  ;;  %v1132_v48 = vpop.permute.xlu0 %1131 }
 0x681   :  { %v1134_v44 = vpop.permute.xlu1 %1133 }
 0x683   :  { %v1148_v39 = vpop.permute.xlu0 %1147 }
 0x687   :  { %v1150_v13 = vpop.permute.xlu1 %1149 }
 0x6d9   :  { %v1368_v42 = vpop.f32.mrf.mxu0 }
 0x6da   :  { %v1373_v28 = vrot.slane %v1368_v42, 1 }
 0x6db   :  { %v3390_v52 = vpop.f32.mrf.mxu0 }
 0x6dc   :  { %v1375_v26 = vadd.f32 %v1373_v28, %v1368_v42  ;;  %v1159_v42 = vsel %vm716_vm0, %v4591_v56, %v1116_v23  ;;  %v1160_v52 = vsel %vm716_vm0, %v4595_v1, %v1118_v34  ;;  %v1387_v56 = vsub.s32 2, %v4621_v11 }
 0x6de   :  { %v1376_v37 = vsub.f32 0.0, %v1375_v26  ;;  %v1167_v26 = vsel %vm1163_vm6, %v1162_v6, %v1138_v5 }
 0x6e0   :  { %v1377_v40 = vmul.f32 1.442695, %v1376_v37 }
 0x6e9   :  { %v3409_v41 = vpop.f32.mrf.mxu0 }
 0x6ea   :  { %v1511_v53 = vsub.f32 0.0, %v3409_v41  ;;  %v1559_v41 = vstv %s2933_s5 }
 0x6eb   :  { %v1491_v45 = vpop.f32.mrf.mxu0 }
 0x6ec   :  { %v1516_v54 = vmul.f32 1.442695, %v1511_v53  ;;  %v1510_v0 = vsub.f32 0.0, %v1491_v45  ;;  %v1164_v53 = vsel %vm1163_vm6, %v1159_v42, %v1132_v48  ;;  %v1165_v45 = vsel %vm1163_vm6, %v1160_v52, %v1134_v44 }
 0x6ed   :  { %v3412_v30 = vpop.f32.mrf.mxu0 }
 0x6ee   :  { %3657 = vpow2.f32 %v1516_v54  ;;  %v1514_v50 = vmul.f32 1.442695, %v1510_v0  ;;  %v1513_v20 = vsub.f32 0.0, %v3412_v30  ;;  %v1550_v54 = vstv %s151_s23 }
 0x6ef   :  { %v1501_v55 = vpop.f32.mrf.mxu0  ;;  %v1169_v0 = vsel %vm1168_vm7, %v1164_v53, %v1148_v39  ;;  %v1170_v30 = vsel %vm1168_vm7, %v1165_v45, %v1150_v13  ;;  %v3685_v39 = vld [vmem:[#allocation5] sm:$0xff]  ;;  %v3687_v45 = vld [vmem:[#allocation5 + $0x10] sm:$0xff] }
 0x6f0   :  { %3659 = vpow2.f32 %v1514_v50  ;;  %v1520_v46 = vmul.f32 1.442695, %v1513_v20  ;;  %v1512_v57 = vsub.f32 0.0, %v1501_v55  ;;  %v1572_v50 = vstv %s2934_s22 }
 0x6f1   :  { %v1551_v1 = vmul.f32 %v1550_v54, %v1169_v0  ;;  %v3688_v0 = vld [vmem:[#allocation5 + $0x18] sm:$0xff] }
 0x6f2   :  { %v1518_v31 = vmul.f32 1.442695, %v1512_v57  ;;  %3661 = vpow2.f32 %v1520_v46 }
 0x6f4   :  { %3663 = vpow2.f32 %v1518_v31 }
 0x6fb   :  { %v3658_v60 = vpop.eup %3657 }
 0x6fc   :  { %v1523_v27 = vadd.f32 1.0, %v3658_v60  ;;  %v1552_v60 = vmul.f32 %v1550_v54, %v1170_v30 }
 0x6fd   :  { %v3660_v2 = vpop.eup %3659 }
 0x6fe   :  { %3665 = vrcp.f32 %v1523_v27  ;;  %v1522_v35 = vadd.f32 1.0, %v3660_v2 }
 0x6ff   :  { %v3662_v58 = vpop.eup %3661 }
 0x700   :  { %3667 = vrcp.f32 %v1522_v35  ;;  %v1525_v63 = vadd.f32 1.0, %v3662_v58 }
 0x701   :  { %v3664_v47 = vpop.eup %3663 }
 0x702   :  { %3669 = vrcp.f32 %v1525_v63  ;;  %v1524_v7 = vadd.f32 1.0, %v3664_v47 }
 0x704   :  { %3671 = vrcp.f32 %v1524_v7 }
 0x705   :  { %3673 = vpow2.f32 %v1377_v40 }
 0x70b   :  { %v3666_v8 = vpop.eup %3665 }
 0x70c   :  { %1537 = vperm.xlu1 %3551, %v3666_v8   ;;  %v1166_v8 = vsel %vm1163_vm6, %v1161_v10, %v1136_v21 }
 0x70d   :  { %v3668_v43 = vpop.eup %3667 }
 0x70e   :  { %1532 = vperm.xlu0 %3552, %v3668_v43  }
 0x70f   :  { %v3670_v9 = vpop.eup %3669 }
 0x710   :  { %1547 = vperm.xlu1 %3551, %v3670_v9  }
 0x711   :  { %v3672_v15 = vpop.eup %3671 }
 0x712   :  { %1151 = vrot.lane.b32.xlu0 %v4604_v24, %s4096_s6  ;;  %v3674_v24 = vpop.eup %3673 }
 0x713   :  { %v1379_v38 = vadd.f32 1.0, %v3674_v24 }
 0x714   :  { %1542 = vperm.xlu1 %3551, %v3672_v15  }
 0x715   :  { %3675 = vrcp.f32 %v1379_v38 }
 0x718   :  { %1153 = vrot.lane.b32.xlu1 %v4608_v36, %s4096_s6  ;;  %v1383_v36 = vsub.s32 0, %v4621_v11 }
 0x722   :  { %v3676_v25 = vpop.eup %3675 }
 0x723   :  { %v1384_v49 = vrot.slane %v3676_v25, %v1383_v36  ;;  %v1388_v7 = vrot.slane %v3676_v25, %v1387_v56 }
 0x725   :  { %v1556_v19 = vmul.f32 %v1384_v49, %v4226_v62  ;;  %v1555_v51 = vmul.f32 %v1384_v49, %v4224_v61  ;;  %v1557_v14 = vmul.f32 %v1388_v7, %v4231_v3  ;;  %v1558_v28 = vmul.f32 %v1388_v7, %v4233_v4 }
 0x727   :  { %v1561_v55 = vmul.f32 %v1559_v41, %v1556_v19  ;;  %v1560_v57 = vmul.f32 %v1559_v41, %v1555_v51  ;;  %v1562_v40 = vmul.f32 %v1559_v41, %v1557_v14  ;;  %v1563_v33 = vmul.f32 %v1559_v41, %v1558_v28  ;;  %v3686_v41 = vld [vmem:[#allocation5 + $0x8] sm:$0xff] }
 0x729   :  { %v1565_v35 = vadd.f32 %v1561_v55, %v1552_v60  ;;  %v1564_v58 = vadd.f32 %v1560_v57, %v1551_v1 }
 0x787   :  { %v1538_v20 = vpop.permute.xlu1 %1537 }
 0x788   :  { %v1569_v46 = vmul.f32 %v1538_v20, %v4226_v62 }
 0x789   :  { %v1533_v31 = vpop.permute.xlu0 %1532 }
 0x78a   :  { %v1574_v27 = vmul.f32 %v1572_v50, %v1569_v46  ;;  %v1568_v2 = vmul.f32 %v1533_v31, %v4224_v61 }
 0x78b   :  { %v1548_v63 = vpop.permute.xlu1 %1547 }
 0x78c   :  { %v1573_v47 = vmul.f32 %v1572_v50, %v1568_v2  ;;  %v1578_v12 = vadd.f32 %v1574_v27, %v1565_v35  ;;  %v1571_v37 = vmul.f32 %v1548_v63, %v4233_v4 }
 0x78d   :  { %v1152_v62 = vpop.permute.xlu0 %1151 }
 0x78e   :  { %v1577_v43 = vadd.f32 %v1573_v47, %v1564_v58  ;;  %v1171_v9 = vsel %vm1168_vm7, %v1166_v8, %v1152_v62  ;;  %v1576_v21 = vmul.f32 %v1572_v50, %v1571_v37 }
 0x78f   :  { %v1543_v61 = vpop.permute.xlu1 %1542  ;;  %v1553_v22 = vmul.f32 %v1550_v54, %v1171_v9 }
 0x790   :  { %v1581_v15 = vpack.c.bf16 %v1578_v12, %v1577_v43  ;;  %v1570_v18 = vmul.f32 %v1543_v61, %v4231_v3 }
 0x791   :  { %v1566_v23 = vadd.f32 %v1562_v40, %v1553_v22 }
 0x792   :  { %3429 = vmatprep.mubr.bf16.mxu1 %v1581_v15  ;;  %v1575_v38 = vmul.f32 %v1572_v50, %v1570_v18 }
 0x793   :  { %v1154_v16 = vpop.permute.xlu1 %1153 }
 0x794   :  { %v1172_v24 = vsel %vm1168_vm7, %v1167_v26, %v1154_v16  ;;  %v1579_v25 = vadd.f32 %v1575_v38, %v1566_v23 }
 0x795   :  { %v1554_v34 = vmul.f32 %v1550_v54, %v1172_v24 }
 0x797   :  { %v1567_v3 = vadd.f32 %v1563_v33, %v1554_v34 }
 0x799   :  { %v1580_v44 = vadd.f32 %v1576_v21, %v1567_v3 }
 0x79b   :  { %v1582_v48 = vpack.c.bf16 %v1580_v44, %v1579_v25 }
 0x79d   :  { %3430 = vmatmul.mubr.bf16.vlgmr.msra.gmra.mxu1 %v1582_v48 }
 0x85d   :  { %v3431_v49 = vpop.f32.mrf.mxu1 }
 0x85e   :  { %v1694_v13 = vadd.f32 %v3431_v49, %v2974_v59 }
 0x85f   :  { %v1685_v4 = vpop.f32.mrf.mxu1 }
 0x860   :  { %v1686_v29 = vadd.f32 %v2974_v59, %v1685_v4  ;;  %v4661_v54 = vadd.f32 %v3687_v45, %v1694_v13 }
 0x861   :  { %v3432_v5 = vpop.f32.mrf.mxu1 }
 0x862   :  { %v4656_v19 = vadd.f32 %v3685_v39, %v1686_v29  ;;  %v1697_v52 = vadd.f32 %v3432_v5, %v2974_v59 }
 0x863   :  { %v1688_v51 = vpop.f32.mrf.mxu1 }
 0x864   :  { %v1689_v42 = vadd.f32 %v2974_v59, %v1688_v51  ;;  %1704 = vadd.xlane.f32.xlu0 %v4656_v19  ;;  %v4665_v30 = vadd.f32 %v3688_v0, %v1697_v52 }
 0x866   :  { %v4659_v53 = vadd.f32 %v3686_v41, %v1689_v42 }
 0x868   :  { %1706 = vadd.xlane.f32.xlu1 %v4659_v53  ;;  %1708 = vadd.xlane.f32.xlu0 %v4661_v54 }
 0x86c   :  { %1710 = vadd.xlane.f32.xlu0 %v4665_v30 }
 0x8ed   :  { %v1705_v50 = vpop.xlane.xlu0 %1704 }
 0x8ee   :  { %v1712_v20 = vmul.f32 0.0078125, %v1705_v50 }
 0x8f0   :  { %v1716_v55 = vsub.f32 %v4656_v19, %v1712_v20 }
 0x8f1   :  { %v1707_v46 = vpop.xlane.xlu1 %1706  ;;  %v1709_v57 = vpop.xlane.xlu0 %1708 }
 0x8f2   :  { %v1713_v31 = vmul.f32 0.0078125, %v1707_v46  ;;  %v1714_v1 = vmul.f32 0.0078125, %v1709_v57  ;;  %v1720_v60 = vmul.f32 %v1716_v55, %v1716_v55 }
 0x8f4   :  { %v1717_v27 = vsub.f32 %v4659_v53, %v1713_v31  ;;  %v1718_v2 = vsub.f32 %v4661_v54, %v1714_v1  ;;  %1724 = vadd.xlane.f32.xlu1 %v1720_v60 }
 0x8f5   :  { %v1711_v35 = vpop.xlane.xlu0 %1710 }
 0x8f6   :  { %v1715_v58 = vmul.f32 0.0078125, %v1711_v35  ;;  %v1721_v47 = vmul.f32 %v1717_v27, %v1717_v27  ;;  %v1722_v63 = vmul.f32 %v1718_v2, %v1718_v2 }
 0x8f8   :  { %v1719_v7 = vsub.f32 %v4665_v30, %v1715_v58  ;;  %1726 = vadd.xlane.f32.xlu0 %v1721_v47  ;;  %1728 = vadd.xlane.f32.xlu1 %v1722_v63 }
 0x8fa   :  { %v1723_v10 = vmul.f32 %v1719_v7, %v1719_v7 }
 0x8fc   :  { %1730 = vadd.xlane.f32.xlu0 %v1723_v10 }
 0x8fd   :  { %4028 = shalt.err (!%p4025_p6)  }
 0x8fe   :  { %128 = dma.hbm_to_vmem [thread:$0]  %s5205_s10, 4096, %s126_s30, [#allocation4] }
 0x8ff   :  { %s4037_s2 = scalar_lea.vmem %s138_s14, 4096  ;;  %p4042_p8 = scmp.lt.s32.totalorder %s138_s14, %s138_s14 }
 0x900   :  { %p4038_p7 = scmp.ne.s32.totalorder %s138_s14, %s4037_s2  ;;  %p4043_p9 = scmp.lt.s32.totalorder %s4037_s2, %s4037_s2 }
 0x902   :  { %p4044_p10 = por %p4043_p9, %p4042_p8 }
 0x904   :  { %p4045_p11 = pnand %p4044_p10, %p4038_p7 }
 0x906   :  { %4048 = shalt.err (!%p4045_p11)  }
 0x907   :  { %140 = dma.hbm_to_vmem [thread:$0]  %s5206_s11, 4096, %s138_s14, [#allocation4 + $0x1]  ;;  %v2983_v37 = vld [vmem:[%s5196_s1 + $0x2] ss:$0 sm:$0xff]  ;;  %v2984_v16 = vld [vmem:[%s5196_s1 + $0x3] ss:$0 sm:$0xff] }
 0x97d   :  { %v1725_v62 = vpop.xlane.xlu1 %1724 }
 0x97e   :  { %v1732_v8 = vmul.f32 0.0078125, %v1725_v62 }
 0x980   :  { %v1736_v12 = vadd.f32 1e-06, %v1732_v8 }
 0x981   :  { %v1729_v43 = vpop.xlane.xlu1 %1728  ;;  %v1727_v9 = vpop.xlane.xlu0 %1726 }
 0x982   :  { %3677 = vrsqrt.f32 %v1736_v12  ;;  %v1734_v14 = vmul.f32 0.0078125, %v1729_v43  ;;  %v1733_v61 = vmul.f32 0.0078125, %v1727_v9 }
 0x984   :  { %v1738_v15 = vadd.f32 1e-06, %v1734_v14  ;;  %v1737_v22 = vadd.f32 1e-06, %v1733_v61 }
 0x985   :  { %v1731_v18 = vpop.xlane.xlu0 %1730 }
 0x986   :  { %3679 = vrsqrt.f32 %v1738_v15  ;;  %v1735_v28 = vmul.f32 0.0078125, %v1731_v18 }
 0x987   :  { %3681 = vrsqrt.f32 %v1737_v22 }
 0x988   :  { %v1739_v6 = vadd.f32 1e-06, %v1735_v28 }
 0x98a   :  { %3683 = vrsqrt.f32 %v1739_v6 }
 0x98f   :  { %v3678_v26 = vpop.eup %3677 }
 0x990   :  { %v1744_v40 = vmul.f32 %v3678_v26, %v1716_v55 }
 0x992   :  { %v1752_v24 = vmul.f32 %v2983_v37, %v1744_v40 }
 0x993   :  { %v3680_v23 = vpop.eup %3679 }
 0x994   :  { %v3682_v38 = vpop.eup %3681  ;;  %v4684_v33 = vadd.f32 %v2984_v16, %v1752_v24  ;;  %v1746_v34 = vmul.f32 %v3680_v23, %v1718_v2 }
 0x995   :  { %v1745_v21 = vmul.f32 %v3682_v38, %v1717_v27 }
 0x996   :  { %v1754_v3 = vmul.f32 %v2983_v37, %v1746_v34 }
 0x997   :  { %v3684_v25 = vpop.eup %3683  ;;  %v1753_v44 = vmul.f32 %v2983_v37, %v1745_v21 }
 0x998   :  { %v4686_v48 = vadd.f32 %v2984_v16, %v1754_v3  ;;  %v1747_v49 = vmul.f32 %v3684_v25, %v1719_v7 }
 0x999   :  { %v4688_v59 = vadd.f32 %v2984_v16, %v1753_v44 }
 0x99a   :  { %v1755_v4 = vmul.f32 %v2983_v37, %v1747_v49 }
 0x99c   :  { %v4690_v29 = vadd.f32 %v2984_v16, %v1755_v4 }
 0x99d   :  { %4077 = dma.done.wait [#allocation4], 4096 }
 0x99e   :  { %4078 = vsyncadd [#allocation4], 4294963200  ;;  %2016 = vmatprep.mubr.bf16.mxu0 %v4099_v17  ;;  %2069 = vmatprep.mubr.bf16.mxu1 %v4099_v17  ;;  %v3689_v5 = vld [vmem:[#allocation2 + $0xe4] ss:$16 sps:$4 sm:$0xff]   ;;  %v3691_v13 = vld [vmem:[#allocation2 + $0xec] ss:$16 sps:$4 sm:$0xff]   ;;  %v1768_v15 = vpack.c.bf16 %v4688_v59, %v4684_v33  ;;  %v1769_v22 = vpack.c.bf16 %v4690_v29, %v4686_v48 }
 0x99f   :  { %1984 = vmatprep.subr.bf16.mxu0 %v3689_v5  ;;  %v3693_v39 = vld [vmem:[#allocation2 + $0xe0] ss:$16 sps:$4 sm:$0xff]   ;;  %v3694_v51 = vld [vmem:[#allocation2 + $0xe8] ss:$16 sps:$4 sm:$0xff]   ;;  %2037 = vmatprep.subr.bf16.mxu1 %v3691_v13  ;;  %v3695_v42 = vld [vmem:[#allocation2 + $0xc4] ss:$16 sps:$4 sm:$0xff]  }
 0x9a0   :  { %1985 = vmatpush1.bf16.msra.mxu0 %v3693_v39  ;;  %2038 = vmatpush1.bf16.msra.mxu1 %v3694_v51  ;;  %v3697_v52 = vld [vmem:[#allocation2 + $0xcc] ss:$16 sps:$4 sm:$0xff]   ;;  %v3699_v41 = vld [vmem:[#allocation2 + $0xc0] ss:$16 sps:$4 sm:$0xff]   ;;  %v3700_v45 = vld [vmem:[#allocation2 + $0xc8] ss:$16 sps:$4 sm:$0xff]  }
 0x9a1   :  { %1986 = vmatprep.subr.bf16.mxu0 %v3695_v42  ;;  %2039 = vmatprep.subr.bf16.mxu1 %v3697_v52  ;;  %v3701_v0 = vld [vmem:[#allocation2 + $0xa4] ss:$16 sps:$4 sm:$0xff]   ;;  %v3703_v50 = vld [vmem:[#allocation2 + $0xac] ss:$16 sps:$4 sm:$0xff]   ;;  %v3705_v20 = vld [vmem:[#allocation2 + $0xa0] ss:$16 sps:$4 sm:$0xff]  }
 0x9a2   :  { %v3706_v55 = vld [vmem:[#allocation2 + $0xa8] ss:$16 sps:$4 sm:$0xff]   ;;  %v3707_v46 = vld [vmem:[#allocation2 + $0x84] ss:$16 sps:$4 sm:$0xff]   ;;  %v3709_v57 = vld [vmem:[#allocation2 + $0x8c] ss:$16 sps:$4 sm:$0xff]  }
 0x9a3   :  { %v3711_v31 = vld [vmem:[#allocation2 + $0x80] ss:$16 sps:$4 sm:$0xff]   ;;  %v3712_v1 = vld [vmem:[#allocation2 + $0x88] ss:$16 sps:$4 sm:$0xff]   ;;  %v3713_v60 = vld [vmem:[#allocation2 + $0x64] ss:$16 sps:$4 sm:$0xff]  }
 0x9a4   :  { %1987 = vmatpush1.bf16.msra.mxu0 %v3699_v41  ;;  %2040 = vmatpush1.bf16.msra.mxu1 %v3700_v45  ;;  %v3715_v27 = vld [vmem:[#allocation2 + $0x6c] ss:$16 sps:$4 sm:$0xff]   ;;  %v3717_v2 = vld [vmem:[#allocation2 + $0x60] ss:$16 sps:$4 sm:$0xff]   ;;  %v3718_v35 = vld [vmem:[#allocation2 + $0x68] ss:$16 sps:$4 sm:$0xff]  }
 0x9a5   :  { %1988 = vmatprep.subr.bf16.mxu0 %v3701_v0  ;;  %2041 = vmatprep.subr.bf16.mxu1 %v3703_v50  ;;  %v3719_v58 = vld [vmem:[#allocation2 + $0x44] ss:$16 sps:$4 sm:$0xff]   ;;  %v3721_v47 = vld [vmem:[#allocation2 + $0x4c] ss:$16 sps:$4 sm:$0xff]   ;;  %v3723_v63 = vld [vmem:[#allocation2 + $0x40] ss:$16 sps:$4 sm:$0xff]  }
 0x9a6   :  { %v3724_v7 = vld [vmem:[#allocation2 + $0x48] ss:$16 sps:$4 sm:$0xff]   ;;  %v3725_v10 = vld [vmem:[#allocation2 + $0x24] ss:$16 sps:$4 sm:$0xff]   ;;  %v3727_v62 = vld [vmem:[#allocation2 + $0x2c] ss:$16 sps:$4 sm:$0xff]  }
 0x9a7   :  { %v3729_v8 = vld [vmem:[#allocation2 + $0x20] ss:$16 sps:$4 sm:$0xff]   ;;  %v3730_v12 = vld [vmem:[#allocation2 + $0x28] ss:$16 sps:$4 sm:$0xff]   ;;  %v3731_v43 = vld [vmem:[#allocation2 + $0x4] ss:$16 sps:$4 sm:$0xff]  }
 0x9a8   :  { %1989 = vmatpush1.bf16.msra.mxu0 %v3705_v20  ;;  %2042 = vmatpush1.bf16.msra.mxu1 %v3706_v55  ;;  %v3733_v9 = vld [vmem:[#allocation2 + $0xc] ss:$16 sps:$4 sm:$0xff]   ;;  %v3735_v14 = vld [vmem:[#allocation2] ss:$16 sps:$4 sm:$0xff]   ;;  %v3736_v61 = vld [vmem:[#allocation2 + $0x8] ss:$16 sps:$4 sm:$0xff]  }
 0x9a9   :  { %1990 = vmatprep.subr.bf16.mxu0 %v3707_v46  ;;  %2043 = vmatprep.subr.bf16.mxu1 %v3709_v57  ;;  %v1802_v18 = vld [vmem:[%s5203_s8] sm:$0xf]  ;;  %v1810_v28 = vsub.s32 1, %v4621_v11  ;;  %v1818_v6 = vsub.s32 3, %v4621_v11 }
 0x9aa   :  { %v4707_v26 = vrot.slane %v1802_v18, %v1383_v36 }
 0x9ab   :  { %v4713_v37 = vrot.slane %v1802_v18, %v1810_v28  ;;  %v4715_v40 = vrot.slane %v1802_v18, %v1818_v6 }
 0x9ac   :  { %1991 = vmatpush1.bf16.msra.mxu0 %v3711_v31  ;;  %2044 = vmatpush1.bf16.msra.mxu1 %v3712_v1 }
 0x9ad   :  { %1992 = vmatprep.subr.bf16.mxu0 %v3713_v60  ;;  %2045 = vmatprep.subr.bf16.mxu1 %v3715_v27 }
 0x9b0   :  { %1993 = vmatpush1.bf16.msra.mxu0 %v3717_v2  ;;  %2046 = vmatpush1.bf16.msra.mxu1 %v3718_v35 }
 0x9b1   :  { %1994 = vmatprep.subr.bf16.mxu0 %v3719_v58  ;;  %2047 = vmatprep.subr.bf16.mxu1 %v3721_v47 }
 0x9b4   :  { %1995 = vmatpush1.bf16.msra.mxu0 %v3723_v63  ;;  %2048 = vmatpush1.bf16.msra.mxu1 %v3724_v7 }
 0x9b5   :  { %1996 = vmatprep.subr.bf16.mxu0 %v3725_v10  ;;  %2049 = vmatprep.subr.bf16.mxu1 %v3727_v62 }
 0x9b8   :  { %1997 = vmatpush1.bf16.msra.mxu0 %v3729_v8  ;;  %2050 = vmatpush1.bf16.msra.mxu1 %v3730_v12 }
 0x9b9   :  { %1998 = vmatprep.subr.bf16.mxu0 %v3731_v43  ;;  %2051 = vmatprep.subr.bf16.mxu1 %v3733_v9 }
 0x9bc   :  { %1999 = vmatpush1.bf16.msra.mxu0 %v3735_v14  ;;  %2052 = vmatpush1.bf16.msra.mxu1 %v3736_v61 }
 0x9bf   :  { %2017 = vmatmul.mubr.bf16.vlgmr.msra.gmra.mxu0 %v1768_v15  ;;  %2070 = vmatmul.mubr.bf16.vlgmr.msra.gmra.mxu1 %v1768_v15 }
 0x9c0   :  { %2026 = vmatprep.mubr.bf16.mxu0 %v4099_v17  ;;  %2079 = vmatprep.mubr.bf16.mxu1 %v4099_v17  ;;  %v4711_v17 = vrot.slane %v1802_v18, %v1387_v56 }
 0x9c7   :  { %2027 = vmatmul.mubr.bf16.gmra.mxu0 %v1769_v22  ;;  %2080 = vmatmul.mubr.bf16.gmra.mxu1 %v1769_v22 }
 0xa7f   :  { %v2018_v16 = vpop.f32.mrf.mxu0  ;;  %v2071_v24 = vpop.f32.mrf.mxu1 }
 0xa80   :  { %v2019_v23 = vadd.f32 %v2018_v16, %v4707_v26  ;;  %v2072_v38 = vadd.f32 %v2071_v24, %v4711_v17 }
 0xa81   :  { %v2020_v33 = vpop.f32.mrf.mxu0  ;;  %v2073_v34 = vpop.f32.mrf.mxu1 }
 0xa82   :  { %v3017_v21 = vclamps-f32 %v2019_v23, 1.5  ;;  %v3019_v3 = vclamps-f32 %v2072_v38, 1.5  ;;  %v2021_v36 = vadd.f32 %v2020_v33, %v4713_v37  ;;  %v2074_v11 = vadd.f32 %v2073_v34, %v4715_v40 }
 0xa83   :  { %v2022_v56 = vpop.f32.mrf.mxu0  ;;  %v2075_v25 = vpop.f32.mrf.mxu1 }
 0xa84   :  { %v4721_v44 = vmul.f32 12.0, %v3017_v21  ;;  %v4723_v48 = vmul.f32 12.0, %v3019_v3  ;;  %v3018_v49 = vclamps-f32 %v2021_v36, 1.5  ;;  %v3020_v59 = vclamps-f32 %v2074_v11, 1.5 }
 0xa85   :  { %v2023_v4 = vadd.f32 %v2022_v56, %v4707_v26  ;;  %v2076_v29 = vadd.f32 %v2075_v25, %v4711_v17  ;;  %v2024_v5 = vpop.f32.mrf.mxu0  ;;  %v2077_v13 = vpop.f32.mrf.mxu1 }
 0xa86   :  { %v2138_v39 = vsub.f32 10.5, %v4721_v44  ;;  %v2140_v51 = vsub.f32 10.5, %v4723_v48  ;;  %v4729_v42 = vmul.f32 12.0, %v3018_v49  ;;  %v4731_v52 = vmul.f32 12.0, %v3020_v59 }
 0xa87   :  { %v3021_v41 = vclamps-f32 %v2023_v4, 1.5  ;;  %v3023_v45 = vclamps-f32 %v2076_v29, 1.5  ;;  %v2025_v0 = vadd.f32 %v2024_v5, %v4713_v37  ;;  %v2078_v50 = vadd.f32 %v2077_v13, %v4715_v40  ;;  %v2028_v6 = vpop.f32.mrf.mxu0  ;;  %v2081_v16 = vpop.f32.mrf.mxu1 }
 0xa88   :  { %v4737_v20 = vand.u32 2147483647, %v2138_v39  ;;  %v4741_v55 = vand.u32 2147483647, %v2140_v51  ;;  %v2139_v46 = vsub.f32 10.5, %v4729_v42  ;;  %v2141_v57 = vsub.f32 10.5, %v4731_v52 }
 0xa89   :  { %v4745_v31 = vmul.f32 12.0, %v3021_v41  ;;  %v4747_v1 = vmul.f32 12.0, %v3023_v45  ;;  %v3022_v2 = vclamps-f32 %v2025_v0, 1.5  ;;  %v3024_v35 = vclamps-f32 %v2078_v50, 1.5  ;;  %v2030_v56 = vpop.f32.mrf.mxu0  ;;  %v2083_v29 = vpop.f32.mrf.mxu1 }
 0xa8a   :  { %v2170_v60 = vmul.f32 %v4737_v20, %v4737_v20  ;;  %v2172_v27 = vmul.f32 %v4741_v55, %v4741_v55  ;;  %v4755_v58 = vand.u32 2147483647, %v2139_v46  ;;  %v4759_v47 = vand.u32 2147483647, %v2141_v57 }
 0xa8b   :  { %v2142_v10 = vsub.f32 10.5, %v4745_v31  ;;  %v2144_v62 = vsub.f32 10.5, %v4747_v1  ;;  %v4771_v43 = vmul.f32 12.0, %v3022_v2  ;;  %v4773_v9 = vmul.f32 12.0, %v3024_v35 }
 0xa8c   :  { %v4761_v63 = vadd.f32 1.0, %v2170_v60  ;;  %v4763_v7 = vadd.f32 1.0, %v2172_v27  ;;  %v2171_v8 = vmul.f32 %v4755_v58, %v4755_v58  ;;  %v2173_v12 = vmul.f32 %v4759_v47, %v4759_v47 }
 0xa8d   :  { %v4783_v15 = vand.u32 2147483647, %v2142_v10  ;;  %v4787_v22 = vand.u32 2147483647, %v2144_v62  ;;  %v2143_v18 = vsub.f32 10.5, %v4771_v43  ;;  %v2145_v28 = vsub.f32 10.5, %v4773_v9 }
 0xa8e   :  { %3737 = vrsqrt.f32 %v4761_v63  ;;  %v4777_v14 = vadd.f32 1.0, %v2171_v8  ;;  %v4779_v61 = vadd.f32 1.0, %v2173_v12  ;;  %v2029_v34 = vadd.f32 %v2028_v6, %v4707_v26 }
 0xa8f   :  { %3739 = vrsqrt.f32 %v4763_v7  ;;  %v2174_v24 = vmul.f32 %v4783_v15, %v4783_v15  ;;  %v2176_v23 = vmul.f32 %v4787_v22, %v4787_v22  ;;  %v4799_v38 = vand.u32 2147483647, %v2143_v18 }
 0xa90   :  { %3741 = vrsqrt.f32 %v4777_v14  ;;  %v4803_v33 = vand.u32 2147483647, %v2145_v28  ;;  %v2082_v21 = vadd.f32 %v2081_v16, %v4711_v17  ;;  %vm2204_vm8 = vcmp.eq.f32.partialorder %v4761_v63, inf }
 0xa91   :  { %3743 = vrsqrt.f32 %v4779_v61  ;;  %v4807_v3 = vadd.f32 1.0, %v2174_v24  ;;  %v4809_v36 = vadd.f32 1.0, %v2176_v23  ;;  %v2175_v11 = vmul.f32 %v4799_v38, %v4799_v38 }
 0xa92   :  { %v2177_v25 = vmul.f32 %v4803_v33, %v4803_v33  ;;  %v3025_v49 = vclamps-f32 %v2029_v34, 1.5  ;;  %v3027_v59 = vclamps-f32 %v2082_v21, 1.5  ;;  %vm2206_vm9 = vcmp.eq.f32.partialorder %v4761_v63, 0.0 }
 0xa93   :  { %v2207_v4 = vand.u32 2147483648, %v4761_v63  ;;  %vm2218_vm10 = vcmp.eq.f32.partialorder %v4763_v7, inf  ;;  %3745 = vrsqrt.f32 %v4807_v3  ;;  %vm2220_vm11 = vcmp.eq.f32.partialorder %v4763_v7, 0.0 }
 0xa94   :  { %v2221_v5 = vand.u32 2147483648, %v4763_v7  ;;  %3747 = vrsqrt.f32 %v4809_v36  ;;  %v2031_v13 = vadd.f32 %v2030_v56, %v4713_v37  ;;  %vm2211_vm12 = vcmp.eq.f32.partialorder %v4777_v14, inf }
 0xa95   :  { %v4825_v41 = vadd.f32 1.0, %v2175_v11  ;;  %v4827_v45 = vadd.f32 1.0, %v2177_v25  ;;  %v4829_v0 = vmul.f32 12.0, %v3025_v49  ;;  %vm2213_vm13 = vcmp.eq.f32.partialorder %v4777_v14, 0.0 }
 0xa96   :  { %v2214_v60 = vand.u32 2147483648, %v4777_v14  ;;  %v4833_v27 = vmul.f32 12.0, %v3027_v59  ;;  %v2084_v2 = vadd.f32 %v2083_v29, %v4715_v40  ;;  %vm2225_vm14 = vcmp.eq.f32.partialorder %v4779_v61, inf  ;;  %v2032_v29 = vpop.f32.mrf.mxu0 }
 0xa97   :  { %vm2227_vm15 = vcmp.eq.f32.partialorder %v4779_v61, 0.0  ;;  %3749 = vrsqrt.f32 %v4825_v41  ;;  %v2228_v6 = vand.u32 2147483648, %v4779_v61  ;;  %v3026_v16 = vclamps-f32 %v2031_v13, 1.5 }
 0xa98   :  { %3751 = vrsqrt.f32 %v4827_v45  ;;  %v2235_v23 = vand.u32 2147483648, %v4807_v3  ;;  %v2249_v34 = vand.u32 2147483648, %v4809_v36  ;;  %v2146_v21 = vsub.f32 10.5, %v4829_v0 }
 0xa99   :  { %vm2232_vm0 = vcmp.eq.f32.partialorder %v4807_v3, inf  ;;  %v2148_v49 = vsub.f32 10.5, %v4833_v27  ;;  %v3028_v59 = vclamps-f32 %v2084_v2, 1.5  ;;  %vm2234_vm1 = vcmp.eq.f32.partialorder %v4807_v3, 0.0 }
 0xa9a   :  { %vm2246_vm2 = vcmp.eq.f32.partialorder %v4809_v36, inf  ;;  %vm2248_vm3 = vcmp.eq.f32.partialorder %v4809_v36, 0.0  ;;  %vm2239_vm4 = vcmp.eq.f32.partialorder %v4825_v41, inf  ;;  %vm2241_vm5 = vcmp.eq.f32.partialorder %v4825_v41, 0.0 }
 0xa9b   :  { %v3738_v50 = vpop.eup %3737  ;;  %vm2253_vm6 = vcmp.eq.f32.partialorder %v4827_v45, inf  ;;  %vm2255_vm7 = vcmp.eq.f32.partialorder %v4827_v45, 0.0 }
 0xa9c   :  { %v3740_v35 = vpop.eup %3739  ;;  %v2203_v8 = vmul.f32 %v3738_v50, %v4761_v63 }
 0xa9d   :  { %v2217_v12 = vmul.f32 %v3740_v35, %v4763_v7  ;;  %v3742_v11 = vpop.eup %3741 }
 0xa9e   :  { %v2205_v24 = vsel %vm2204_vm8, %v4761_v63, %v2203_v8  ;;  %v3744_v13 = vpop.eup %3743  ;;  %v2210_v8 = vmul.f32 %v3742_v11, %v4777_v14  ;;  %v4864_v63 = vand.u32 2147483647, %v2146_v21 }
 0xa9f   :  { %v2208_v56 = vsel %vm2206_vm9, %v2207_v4, %v2205_v24  ;;  %v2219_v25 = vsel %vm2218_vm10, %v4763_v7, %v2217_v12  ;;  %v2224_v2 = vmul.f32 %v3744_v13, %v4779_v61  ;;  %v4873_v7 = vmul.f32 12.0, %v3026_v16 }
 0xaa0   :  { %v2314_v50 = vadd.f32 %v2208_v56, %v4737_v20  ;;  %v2222_v35 = vsel %vm2220_vm11, %v2221_v5, %v2219_v25  ;;  %v4871_v20 = vand.u32 2147483647, %v2148_v49  ;;  %v2085_v5 = vpop.f32.mrf.mxu1  ;;  %v2212_v12 = vsel %vm2211_vm12, %v4777_v14, %v2210_v8 }
 0xaa1   :  { %v2316_v4 = vadd.f32 %v2222_v35, %v4741_v55  ;;  %v2178_v24 = vmul.f32 %v4864_v63, %v4864_v63  ;;  %v2033_v55 = vadd.f32 %v2032_v29, %v4707_v26  ;;  %v2215_v11 = vsel %vm2213_vm13, %v2214_v60, %v2212_v12  ;;  %v3746_v29 = vpop.eup %3745 }
 0xaa2   :  { %3753 = vlog2.f32 %v2314_v50  ;;  %v2226_v16 = vsel %vm2225_vm14, %v4779_v61, %v2224_v2  ;;  %v2180_v56 = vmul.f32 %v4871_v20, %v4871_v20  ;;  %v2315_v25 = vadd.f32 %v2215_v11, %v4755_v58  ;;  %v3748_v8 = vpop.eup %3747 }
 0xaa3   :  { %3755 = vlog2.f32 %v2316_v4  ;;  %v2229_v13 = vsel %vm2227_vm15, %v2228_v6, %v2226_v16  ;;  %v4891_v50 = vadd.f32 1.0, %v2178_v24  ;;  %v2086_v26 = vadd.f32 %v2085_v5, %v4711_v17 }
 0xaa4   :  { %v2317_v14 = vadd.f32 %v2229_v13, %v4759_v47  ;;  %v4896_v60 = vadd.f32 1.0, %v2180_v56  ;;  %v2147_v35 = vsub.f32 10.5, %v4873_v7  ;;  %3757 = vlog2.f32 %v2315_v25  ;;  %v3750_v2 = vpop.eup %3749 }
 0xaa5   :  { %v2231_v58 = vmul.f32 %v3746_v29, %v4807_v3  ;;  %v2242_v61 = vand.u32 2147483648, %v4825_v41  ;;  %v2245_v17 = vmul.f32 %v3748_v8, %v4809_v36  ;;  %v4904_v47 = vmul.f32 12.0, %v3028_v59  ;;  %v3752_v24 = vpop.eup %3751 }
 0xaa6   :  { %3759 = vlog2.f32 %v2317_v14  ;;  %v3029_v4 = vclamps-f32 %v2033_v55, 1.5  ;;  %v4919_v59 = vand.u32 2147483647, %v2147_v35  ;;  %v2238_v16 = vmul.f32 %v3750_v2, %v4825_v41 }
 0xaa7   :  { %v2233_v6 = vsel %vm2232_vm0, %v4807_v3, %v2231_v58  ;;  %3761 = vrsqrt.f32 %v4891_v50  ;;  %v2247_v12 = vsel %vm2246_vm2, %v4809_v36, %v2245_v17  ;;  %v2256_v3 = vand.u32 2147483648, %v4827_v45 }
 0xaa8   :  { %v2236_v5 = vsel %vm2234_vm1, %v2235_v23, %v2233_v6  ;;  %3763 = vrsqrt.f32 %v4896_v60  ;;  %v2250_v55 = vsel %vm2248_vm3, %v2249_v34, %v2247_v12  ;;  %v2252_v56 = vmul.f32 %v3752_v24, %v4827_v45 }
 0xaa9   :  { %v2318_v11 = vadd.f32 %v2236_v5, %v4783_v15  ;;  %v2320_v23 = vadd.f32 %v2250_v55, %v4787_v22  ;;  %v2179_v25 = vmul.f32 %v4919_v59, %v4919_v59  ;;  %v2149_v13 = vsub.f32 10.5, %v4904_v47 }
 0xaaa   :  { %v2240_v15 = vsel %vm2239_vm4, %v4825_v41, %v2238_v16  ;;  %v4934_v36 = vmul.f32 12.0, %v3029_v4  ;;  %v3031_v34 = vclamps-f32 %v2086_v26, 1.5  ;;  %v2254_v22 = vsel %vm2253_vm6, %v4827_v45, %v2252_v56 }
 0xaab   :  { %3765 = vlog2.f32 %v2318_v11  ;;  %v2243_v29 = vsel %vm2241_vm5, %v2242_v61, %v2240_v15  ;;  %v4941_v14 = vadd.f32 1.0, %v2179_v25  ;;  %v2257_v58 = vsel %vm2255_vm7, %v2256_v3, %v2254_v22  ;;  %v2034_v22 = vpop.f32.mrf.mxu0 }
 0xaac   :  { %3767 = vlog2.f32 %v2320_v23  ;;  %v2319_v8 = vadd.f32 %v2243_v29, %v4799_v38  ;;  %v4948_v17 = vand.u32 2147483647, %v2149_v13  ;;  %v2321_v6 = vadd.f32 %v2257_v58, %v4803_v33 }
 0xaad   :  { %3769 = vrsqrt.f32 %v4941_v14  ;;  %v5211_v38 = vsub.f32 10.5, %v4934_v36  ;;  %v4955_v45 = vmul.f32 12.0, %v3031_v34  ;;  %vm2260_vm8 = vcmp.eq.f32.partialorder %v4891_v50, inf }
 0xaae   :  { %3771 = vlog2.f32 %v2319_v8  ;;  %v2181_v4 = vmul.f32 %v4948_v17, %v4948_v17  ;;  %vm2262_vm9 = vcmp.eq.f32.partialorder %v4891_v50, 0.0  ;;  %v2263_v11 = vand.u32 2147483648, %v4891_v50 }
 0xaaf   :  { %v3754_v26 = vpop.eup %3753  ;;  %3773 = vlog2.f32 %v2321_v6  ;;  %v4964_v55 = vand.u32 2147483647, %v5211_v38  ;;  %v5210_v16 = vsub.f32 10.5, %v4955_v45  ;;  %vm2274_vm10 = vcmp.eq.f32.partialorder %v4896_v60, inf }
 0xab0   :  { %v3756_v41 = vpop.eup %3755  ;;  %v2331_v61 = vmul.f32 0.6931472, %v3754_v26  ;;  %v4959_v33 = vadd.f32 1.0, %v2181_v4  ;;  %vm2276_vm11 = vcmp.eq.f32.partialorder %v4896_v60, 0.0  ;;  %v2277_v29 = vand.u32 2147483648, %v4896_v60 }
 0xab1   :  { %v2335_v2 = vmul.f32 0.6931472, %v3756_v41  ;;  %v3758_v12 = vpop.eup %3757  ;;  %vm2267_vm12 = vcmp.eq.f32.partialorder %v4941_v14, inf  ;;  %v2182_v6 = vmul.f32 %v4964_v55, %v4964_v55  ;;  %v4978_v4 = vand.u32 2147483647, %v5210_v16 }
 0xab2   :  { %v2362_v5 = vmul.f32 0.33333334, %v2331_v61  ;;  %v2333_v56 = vmul.f32 0.6931472, %v3758_v12  ;;  %3775 = vrsqrt.f32 %v4959_v33  ;;  %vm2269_vm13 = vcmp.eq.f32.partialorder %v4941_v14, 0.0 }
 0xab3   :  { %v2364_v24 = vmul.f32 0.33333334, %v2335_v2  ;;  %v3760_v3 = vpop.eup %3759  ;;  %v4983_v12 = vadd.f32 1.0, %v2182_v6  ;;  %vm2281_vm14 = vcmp.eq.f32.partialorder %v4959_v33, inf  ;;  %vm2283_vm15 = vcmp.eq.f32.partialorder %v4959_v33, 0.0 }
 0xab4   :  { %v2378_v23 = vmul.f32 1.442695, %v2362_v5  ;;  %v3762_v25 = vpop.eup %3761  ;;  %v2337_v34 = vmul.f32 0.6931472, %v3760_v3  ;;  %v2363_v58 = vmul.f32 0.33333334, %v2333_v56 }
 0xab5   :  { %v2382_v15 = vmul.f32 1.442695, %v2364_v24  ;;  %v3764_v8 = vpop.eup %3763  ;;  %v2259_v26 = vmul.f32 %v3762_v25, %v4891_v50  ;;  %v2035_v24 = vadd.f32 %v2034_v22, %v4713_v37  ;;  %vm2288_vm0 = vcmp.eq.f32.partialorder %v4983_v12, inf }
 0xab6   :  { %3777 = vpow2.f32 %v2378_v23  ;;  %v2365_v41 = vmul.f32 0.33333334, %v2337_v34  ;;  %v2273_v61 = vmul.f32 %v3764_v8, %v4896_v60  ;;  %v2380_v2 = vmul.f32 1.442695, %v2363_v58  ;;  %v2087_v34 = vpop.f32.mrf.mxu1 }
 0xab7   :  { %3779 = vpow2.f32 %v2382_v15  ;;  %v2261_v5 = vsel %vm2260_vm8, %v4891_v50, %v2259_v26  ;;  %v2184_v15 = vmul.f32 %v4978_v4, %v4978_v4  ;;  %vm2290_vm1 = vcmp.eq.f32.partialorder %v4983_v12, 0.0 }
 0xab8   :  { %v3766_v3 = vpop.eup %3765  ;;  %v2384_v23 = vmul.f32 1.442695, %v2365_v41  ;;  %v2264_v56 = vsel %vm2262_vm9, %v2263_v11, %v2261_v5  ;;  %v2275_v25 = vsel %vm2274_vm10, %v4896_v60, %v2273_v61  ;;  %3781 = vpow2.f32 %v2380_v2 }
 0xab9   :  { %v3768_v8 = vpop.eup %3767  ;;  %v2339_v58 = vmul.f32 0.6931472, %v3766_v3  ;;  %v2322_v26 = vadd.f32 %v2264_v56, %v4864_v63  ;;  %v2278_v37 = vsel %vm2276_vm11, %v2277_v29, %v2275_v25  ;;  %v2270_v41 = vand.u32 2147483648, %v4941_v14 }
 0xaba   :  { %3783 = vpow2.f32 %v2384_v23  ;;  %v2343_v22 = vmul.f32 0.6931472, %v3768_v8  ;;  %v2324_v50 = vadd.f32 %v2278_v37, %v4871_v20  ;;  %v3770_v11 = vpop.eup %3769  ;;  %v2088_v61 = vadd.f32 %v2087_v34, %v4715_v40 }
 0xabb   :  { %v2366_v6 = vmul.f32 0.33333334, %v2339_v58  ;;  %3785 = vlog2.f32 %v2322_v26  ;;  %v3772_v2 = vpop.eup %3771  ;;  %v2266_v63 = vmul.f32 %v3770_v11, %v4941_v14  ;;  %v5001_v60 = vadd.f32 1.0, %v2184_v15 }
 0xabc   :  { %v2368_v5 = vmul.f32 0.33333334, %v2343_v22  ;;  %3787 = vlog2.f32 %v2324_v50  ;;  %v3774_v29 = vpop.eup %3773  ;;  %v2341_v23 = vmul.f32 0.6931472, %v3772_v2  ;;  %v3030_v20 = vclamps-f32 %v2035_v24, 1.5 }
 0xabd   :  { %v2386_v3 = vmul.f32 1.442695, %v2366_v6  ;;  %3789 = vrsqrt.f32 %v4983_v12  ;;  %v2345_v25 = vmul.f32 0.6931472, %v3774_v29  ;;  %v2268_v8 = vsel %vm2267_vm12, %v4941_v14, %v2266_v63 }
 0xabe   :  { %v2390_v56 = vmul.f32 1.442695, %v2368_v5  ;;  %3791 = vrsqrt.f32 %v5001_v60  ;;  %v2367_v40 = vmul.f32 0.33333334, %v2341_v23  ;;  %v2271_v15 = vsel %vm2269_vm13, %v2270_v41, %v2268_v8 }
 0xabf   :  { %3793 = vpow2.f32 %v2386_v3  ;;  %v3776_v34 = vpop.eup %3775  ;;  %v2369_v58 = vmul.f32 0.33333334, %v2345_v25  ;;  %v2323_v26 = vadd.f32 %v2271_v15, %v4919_v59  ;;  %v5013_v22 = vmul.f32 12.0, %v3030_v20 }
 0xac0   :  { %3795 = vpow2.f32 %v2390_v56  ;;  %v2388_v37 = vmul.f32 1.442695, %v2367_v40  ;;  %v2280_v24 = vmul.f32 %v3776_v34, %v4959_v33  ;;  %v2284_v6 = vand.u32 2147483648, %v4959_v33 }
 0xac1   :  { %v2392_v11 = vmul.f32 1.442695, %v2369_v58  ;;  %3797 = vlog2.f32 %v2323_v26  ;;  %v3032_v14 = vclamps-f32 %v2088_v61, 1.5  ;;  %v5209_v2 = vsub.f32 10.5, %v5013_v22 }
 0xac2   :  { %v2282_v59 = vsel %vm2281_vm14, %v4959_v33, %v2280_v24  ;;  %v2291_v58 = vand.u32 2147483648, %v4983_v12  ;;  %vm2302_vm2 = vcmp.eq.f32.partialorder %v5001_v60, inf  ;;  %vm2304_vm3 = vcmp.eq.f32.partialorder %v5001_v60, 0.0 }
 0xac3   :  { %v5015_v50 = vpop.eup %3777  ;;  %v2285_v5 = vsel %vm2283_vm15, %v2284_v6, %v2282_v59  ;;  %v5025_v63 = vmul.f32 12.0, %v3032_v14  ;;  %v5030_v61 = vand.u32 2147483647, %v5209_v2  ;;  %v2305_v59 = vand.u32 2147483648, %v5001_v60 }
 0xac4   :  { %v5018_v41 = vpop.eup %3779  ;;  %3799 = vrcp.f32 %v5015_v50  ;;  %v2325_v29 = vadd.f32 %v2285_v5, %v4948_v17  ;;  %vm2474_vm4 = vcmp.ge.f32.partialorder %v2138_v39, 0.0  ;;  %vm2476_vm5 = vcmp.ge.f32.partialorder %v2140_v51, 0.0 }
 0xac5   :  { %3801 = vrcp.f32 %v5018_v41  ;;  %v5032_v3 = vpop.eup %3781  ;;  %v5208_v23 = vsub.f32 10.5, %v5025_v63  ;;  %v2183_v20 = vmul.f32 %v5030_v61, %v5030_v61  ;;  %vm2475_vm6 = vcmp.ge.f32.partialorder %v2139_v46, 0.0 }
 0xac6   :  { %3803 = vpow2.f32 %v2388_v37  ;;  %vm2477_vm7 = vcmp.ge.f32.partialorder %v2141_v57, 0.0  ;;  %vm2478_vm10 = vcmp.ge.f32.partialorder %v2142_v10, 0.0  ;;  %vm2480_vm11 = vcmp.ge.f32.partialorder %v2144_v62, 0.0 }
 0xac7   :  { %3805 = vpow2.f32 %v2392_v11  ;;  %v5035_v33 = vpop.eup %3783  ;;  %v5041_v8 = vadd.f32 1.0, %v2183_v20  ;;  %v5045_v40 = vand.u32 2147483647, %v5208_v23  ;;  %vm2479_vm14 = vcmp.ge.f32.partialorder %v2143_v18, 0.0 }
 0xac8   :  { %3807 = vrcp.f32 %v5032_v3  ;;  %v3786_v56 = vpop.eup %3785  ;;  %vm2481_vm15 = vcmp.ge.f32.partialorder %v2145_v28, 0.0 }
 0xac9   :  { %3809 = vrcp.f32 %v5035_v33  ;;  %v3788_v17 = vpop.eup %3787  ;;  %v2347_v25 = vmul.f32 0.6931472, %v3786_v56  ;;  %v2185_v56 = vmul.f32 %v5045_v40, %v5045_v40  ;;  %vm2295_vm8 = vcmp.eq.f32.partialorder %v5041_v8, inf }
 0xaca   :  { %3811 = vlog2.f32 %v2325_v29  ;;  %v3790_v15 = vpop.eup %3789  ;;  %v2351_v34 = vmul.f32 0.6931472, %v3788_v17  ;;  %vm2297_vm9 = vcmp.eq.f32.partialorder %v5041_v8, 0.0  ;;  %v2298_v48 = vand.u32 2147483648, %v5041_v8 }
 0xacb   :  { %v3792_v26 = vpop.eup %3791  ;;  %v2370_v37 = vmul.f32 0.33333334, %v2347_v25  ;;  %v2287_v24 = vmul.f32 %v3790_v15, %v4983_v12  ;;  %3813 = vrsqrt.f32 %v5041_v8 }
 0xacc   :  { %v5053_v11 = vpop.eup %3793  ;;  %v2372_v6 = vmul.f32 0.33333334, %v2351_v34  ;;  %v2301_v14 = vmul.f32 %v3792_v26, %v5001_v60 }
 0xacd   :  { %v5058_v5 = vpop.eup %3795  ;;  %3815 = vrcp.f32 %v5053_v11  ;;  %v2394_v29 = vmul.f32 1.442695, %v2370_v37  ;;  %v2289_v20 = vsel %vm2288_vm0, %v4983_v12, %v2287_v24  ;;  %vm2482_vm0 = vcmp.ge.f32.partialorder %v2146_v21, 0.0 }
 0xace   :  { %3817 = vrcp.f32 %v5058_v5  ;;  %v2398_v17 = vmul.f32 1.442695, %v2372_v6  ;;  %v2292_v25 = vsel %vm2290_vm1, %v2291_v58, %v2289_v20  ;;  %v2303_v15 = vsel %vm2302_vm2, %v5001_v60, %v2301_v14  ;;  %v3798_v34 = vpop.eup %3797 }
 0xacf   :  { %3819 = vpow2.f32 %v2394_v29  ;;  %v2326_v26 = vadd.f32 %v2292_v25, %v4964_v55  ;;  %v2306_v37 = vsel %vm2304_vm3, %v2305_v59, %v2303_v15  ;;  %v2349_v2 = vmul.f32 0.6931472, %v3798_v34 }
 0xad0   :  { %3821 = vpow2.f32 %v2398_v17  ;;  %v2328_v24 = vadd.f32 %v2306_v37, %v4978_v4  ;;  %v5073_v6 = vadd.f32 1.0, %v2185_v56  ;;  %vm2484_vm1 = vcmp.ge.f32.partialorder %v2148_v49, 0.0 }
 0xad1   :  { %v3800_v23 = vpop.eup %3799  ;;  %3823 = vlog2.f32 %v2326_v26  ;;  %v2371_v58 = vmul.f32 0.33333334, %v2349_v2  ;;  %vm2483_vm2 = vcmp.ge.f32.partialorder %v2147_v35, 0.0  ;;  %vm2485_vm3 = vcmp.ge.f32.partialorder %v2149_v13, 0.0 }
 0xad2   :  { %v3802_v16 = vpop.eup %3801  ;;  %v2442_v38 = vsub.f32 %v5015_v50, %v3800_v23  ;;  %3825 = vlog2.f32 %v2328_v24  ;;  %vm2309_vm12 = vcmp.eq.f32.partialorder %v5073_v6, inf  ;;  %v2312_v62 = vand.u32 2147483648, %v5073_v6 }
 0xad3   :  { %v5075_v12 = vpop.eup %3803  ;;  %v2444_v60 = vsub.f32 %v5018_v41, %v3802_v16  ;;  %v2396_v4 = vmul.f32 1.442695, %v2371_v58  ;;  %vm2311_vm13 = vcmp.eq.f32.partialorder %v5073_v6, 0.0 }
 0xad4   :  { %v5078_v14 = vpop.eup %3805  ;;  %v2458_v55 = vmul.f32 0.5, %v2442_v38  ;;  %3827 = vrcp.f32 %v5075_v12 }
 0xad5   :  { %v3808_v59 = vpop.eup %3807  ;;  %v2460_v29 = vmul.f32 0.5, %v2444_v60  ;;  %3829 = vrcp.f32 %v5078_v14 }
 0xad6   :  { %v3810_v50 = vpop.eup %3809  ;;  %v2490_v23 = vsub.f32 0.0, %v2458_v55  ;;  %v2443_v20 = vsub.f32 %v5032_v3, %v3808_v59  ;;  %3831 = vrsqrt.f32 %v5073_v6 }
 0xad7   :  { %v3812_v56 = vpop.eup %3811  ;;  %v2492_v16 = vsub.f32 0.0, %v2460_v29  ;;  %v2445_v38 = vsub.f32 %v5035_v33, %v3810_v50  ;;  %3833 = vpow2.f32 %v2396_v4 }
 0xad8   :  { %v5087_v41 = vsel %vm2474_vm4, %v2490_v23, %v2458_v55  ;;  %v2459_v2 = vmul.f32 0.5, %v2443_v20  ;;  %v2353_v17 = vmul.f32 0.6931472, %v3812_v56  ;;  %v3814_v25 = vpop.eup %3813 }
 0xad9   :  { %v5091_v15 = vsel %vm2476_vm5, %v2492_v16, %v2460_v29  ;;  %v2461_v3 = vmul.f32 0.5, %v2445_v38  ;;  %v2294_v33 = vmul.f32 %v3814_v25, %v5041_v8 }
 0xada   :  { %v2491_v44 = vsub.f32 0.0, %v2459_v2  ;;  %v2373_v39 = vmul.f32 0.33333334, %v2353_v17  ;;  %v3816_v34 = vpop.eup %3815 }
 0xadb   :  { %v2493_v26 = vsub.f32 0.0, %v2461_v3  ;;  %v3818_v51 = vpop.eup %3817  ;;  %v2446_v42 = vsub.f32 %v5053_v11, %v3816_v34  ;;  %v2296_v52 = vsel %vm2295_vm8, %v5041_v8, %v2294_v33 }
 0xadc   :  { %v5101_v37 = vsel %vm2475_vm6, %v2491_v44, %v2459_v2  ;;  %v2400_v46 = vmul.f32 1.442695, %v2373_v39  ;;  %v3820_v57 = vpop.eup %3819  ;;  %v2448_v60 = vsub.f32 %v5058_v5, %v3818_v51  ;;  %v2299_v58 = vsel %vm2297_vm9, %v2298_v48, %v2296_v52 }
 0xadd   :  { %v5105_v24 = vsel %vm2477_vm7, %v2493_v26, %v2461_v3  ;;  %v3822_v55 = vpop.eup %3821  ;;  %v2462_v59 = vmul.f32 0.5, %v2446_v42  ;;  %3835 = vrcp.f32 %v3820_v57  ;;  %v2327_v29 = vadd.f32 %v2299_v58, %v5030_v61 }
 0xade   :  { %v3824_v4 = vpop.eup %3823  ;;  %v2464_v50 = vmul.f32 0.5, %v2448_v60  ;;  %3837 = vrcp.f32 %v3822_v55 }
 0xadf   :  { %v3826_v23 = vpop.eup %3825  ;;  %v2494_v20 = vsub.f32 0.0, %v2462_v59  ;;  %3839 = vpow2.f32 %v2400_v46  ;;  %v2355_v11 = vmul.f32 0.6931472, %v3824_v4 }
 0xae0   :  { %v2496_v8 = vsub.f32 0.0, %v2464_v50  ;;  %v2359_v16 = vmul.f32 0.6931472, %v3826_v23  ;;  %3841 = vlog2.f32 %v2327_v29 }
 0xae1   :  { %v3828_v56 = vpop.eup %3827  ;;  %v5111_v38 = vsel %vm2478_vm10, %v2494_v20, %v2462_v59  ;;  %v2374_v2 = vmul.f32 0.33333334, %v2355_v11 }
 0xae2   :  { %v3830_v5 = vpop.eup %3829  ;;  %v2447_v61 = vsub.f32 %v5075_v12, %v3828_v56  ;;  %v5116_v25 = vsel %vm2480_vm11, %v2496_v8, %v2464_v50  ;;  %v2376_v44 = vmul.f32 0.33333334, %v2359_v16 }
 0xae3   :  { %v3832_v17 = vpop.eup %3831  ;;  %v2449_v3 = vsub.f32 %v5078_v14, %v3830_v5  ;;  %v2402_v39 = vmul.f32 1.442695, %v2374_v2 }
 0xae4   :  { %v3834_v31 = vpop.eup %3833  ;;  %v2463_v10 = vmul.f32 0.5, %v2447_v61  ;;  %v2308_v33 = vmul.f32 %v3832_v17, %v5073_v6  ;;  %v2406_v1 = vmul.f32 1.442695, %v2376_v44 }
 0xae5   :  { %v2465_v34 = vmul.f32 0.5, %v2449_v3  ;;  %3843 = vrcp.f32 %v3834_v31 }
 0xae6   :  { %v2495_v12 = vsub.f32 0.0, %v2463_v10  ;;  %3845 = vpow2.f32 %v2402_v39  ;;  %v2310_v26 = vsel %vm2309_vm12, %v5073_v6, %v2308_v33 }
 0xae7   :  { %v2497_v14 = vsub.f32 0.0, %v2465_v34  ;;  %3847 = vpow2.f32 %v2406_v1  ;;  %v2313_v48 = vsel %vm2311_vm13, %v2312_v62, %v2310_v26  ;;  %v5212_v62 = vsub.f32 10.5, %v4934_v36 }
 0xae8   :  { %v5126_v51 = vsel %vm2479_vm14, %v2495_v12, %v2463_v10  ;;  %v2329_v42 = vadd.f32 %v2313_v48, %v5045_v40 }
 0xae9   :  { %v5131_v46 = vsel %vm2481_vm15, %v2497_v14, %v2465_v34  ;;  %vm2486_vm4 = vcmp.ge.f32.partialorder %v5212_v62, 0.0  ;;  %v5213_v14 = vsub.f32 10.5, %v4955_v45  ;;  %v5215_v45 = vsub.f32 10.5, %v5025_v63 }
 0xaea   :  { %3849 = vlog2.f32 %v2329_v42  ;;  %v3836_v52 = vpop.eup %3835 }
 0xaeb   :  { %v3838_v60 = vpop.eup %3837  ;;  %v2450_v58 = vsub.f32 %v3820_v57, %v3836_v52  ;;  %vm2488_vm5 = vcmp.ge.f32.partialorder %v5213_v14, 0.0  ;;  %vm2489_vm7 = vcmp.ge.f32.partialorder %v5215_v45, 0.0 }
 0xaec   :  { %v3840_v6 = vpop.eup %3839  ;;  %v2452_v59 = vsub.f32 %v3822_v55, %v3838_v60 }
 0xaed   :  { %v3842_v43 = vpop.eup %3841  ;;  %v2466_v18 = vmul.f32 0.5, %v2450_v58  ;;  %3851 = vrcp.f32 %v3840_v6  ;;  %v5214_v58 = vsub.f32 10.5, %v5013_v22 }
 0xaee   :  { %v2468_v29 = vmul.f32 0.5, %v2452_v59  ;;  %v2357_v4 = vmul.f32 0.6931472, %v3842_v43 }
 0xaef   :  { %v2498_v50 = vsub.f32 0.0, %v2466_v18  ;;  %vm2487_vm6 = vcmp.ge.f32.partialorder %v5214_v58, 0.0 }
 0xaf0   :  { %v2500_v9 = vsub.f32 0.0, %v2468_v29  ;;  %v2375_v28 = vmul.f32 0.33333334, %v2357_v4 }
 0xaf1   :  { %v5135_v23 = vsel %vm2482_vm0, %v2498_v50, %v2466_v18 }
 0xaf2   :  { %v3844_v40 = vpop.eup %3843  ;;  %v5139_v20 = vsel %vm2484_vm1, %v2500_v9, %v2468_v29  ;;  %v2404_v11 = vmul.f32 1.442695, %v2375_v28 }
 0xaf3   :  { %v3846_v57 = vpop.eup %3845  ;;  %v2451_v55 = vsub.f32 %v3834_v31, %v3844_v40 }
 0xaf4   :  { %v3848_v56 = vpop.eup %3847  ;;  %3853 = vrcp.f32 %v3846_v57 }
 0xaf5   :  { %v2467_v8 = vmul.f32 0.5, %v2451_v55  ;;  %3855 = vrcp.f32 %v3848_v56 }
 0xaf6   :  { %3857 = vpow2.f32 %v2404_v11 }
 0xaf7   :  { %v3850_v0 = vpop.eup %3849  ;;  %v2499_v21 = vsub.f32 0.0, %v2467_v8 }
 0xaf8   :  { %v2361_v16 = vmul.f32 0.6931472, %v3850_v0 }
 0xaf9   :  { %v5143_v5 = vsel %vm2483_vm2, %v2499_v21, %v2467_v8 }
 0xafa   :  { %v2377_v27 = vmul.f32 0.33333334, %v2361_v16  ;;  %v3852_v49 = vpop.eup %3851 }
 0xafb   :  { %v2453_v61 = vsub.f32 %v3840_v6, %v3852_v49 }
 0xafc   :  { %v2408_v2 = vmul.f32 1.442695, %v2377_v27 }
 0xafd   :  { %v2469_v17 = vmul.f32 0.5, %v2453_v61 }
 0xafe   :  { %3859 = vpow2.f32 %v2408_v2 }
 0xaff   :  { %v2501_v3 = vsub.f32 0.0, %v2469_v17 }
 0xb01   :  { %v3854_v44 = vpop.eup %3853  ;;  %v5147_v10 = vsel %vm2485_vm3, %v2501_v3, %v2469_v17 }
 0xb02   :  { %v3856_v31 = vpop.eup %3855  ;;  %v2454_v39 = vsub.f32 %v3846_v57, %v3854_v44 }
 0xb03   :  { %v3858_v7 = vpop.eup %3857  ;;  %v2456_v35 = vsub.f32 %v3848_v56, %v3856_v31 }
 0xb04   :  { %v2470_v33 = vmul.f32 0.5, %v2454_v39  ;;  %3861 = vrcp.f32 %v3858_v7 }
 0xb05   :  { %v2472_v34 = vmul.f32 0.5, %v2456_v35 }
 0xb06   :  { %v2502_v1 = vsub.f32 0.0, %v2470_v33 }
 0xb07   :  { %v2504_v12 = vsub.f32 0.0, %v2472_v34 }
 0xb08   :  { %v5151_v26 = vsel %vm2486_vm4, %v2502_v1, %v2470_v33 }
 0xb09   :  { %v5155_v47 = vsel %vm2488_vm5, %v2504_v12, %v2472_v34 }
 0xb0b   :  { %v3860_v13 = vpop.eup %3859 }
 0xb0c   :  { %3863 = vrcp.f32 %v3860_v13 }
 0xb11   :  { %v3862_v48 = vpop.eup %3861 }
 0xb12   :  { %v2455_v42 = vsub.f32 %v3858_v7, %v3862_v48 }
 0xb14   :  { %v2471_v52 = vmul.f32 0.5, %v2455_v42 }
 0xb16   :  { %v2503_v60 = vsub.f32 0.0, %v2471_v52 }
 0xb18   :  { %v5159_v6 = vsel %vm2487_vm6, %v2503_v60, %v2471_v52 }
 0xb19   :  { %v3864_v36 = vpop.eup %3863 }
 0xb1a   :  { %v2457_v59 = vsub.f32 %v3860_v13, %v3864_v36 }
 0xb1c   :  { %v2473_v43 = vmul.f32 0.5, %v2457_v59 }
 0xb1e   :  { %v2505_v18 = vsub.f32 0.0, %v2473_v43 }
 0xb20   :  { %v5163_v29 = vsel %vm2489_vm7, %v2505_v18, %v2473_v43 }
 0xb21   :  { %4079 = dma.done.wait [#allocation4 + $0x1], 4096 }
 0xb22   :  { %4080 = vsyncadd [#allocation4 + $0x1], 4294963200  ;;  %v2527_v4 = vpack.c.bf16 %v5126_v51, %v5101_v37  ;;  %v2529_v22 = vpack.c.bf16 %v5131_v46, %v5105_v24  ;;  %v3865_v50 = vld [vmem:[#allocation3 + $0x78] sm:$0xff]   ;;  %v3869_v63 = vld [vmem:[#allocation3 + $0x70] sm:$0xff]   ;;  %v2526_v12 = vpack.c.bf16 %v5111_v38, %v5087_v41  ;;  %v2528_v14 = vpack.c.bf16 %v5116_v25, %v5091_v15  ;;  %s4102_s8 = smov [#allocation16]  }
 0xb23   :  { %v3866_v9 = vld [vmem:[#allocation3 + $0xf8] sm:$0xff]   ;;  %3171 = vmatprep.subr.bf16.mxu0 %v3865_v50  ;;  %v3870_v57 = vld [vmem:[#allocation3 + $0xf0] sm:$0xff]   ;;  %v3873_v37 = vld [vmem:[#allocation3 + $0x68] sm:$0xff]   ;;  %v2531_v13 = vpack.c.bf16 %v5159_v6, %v5143_v5  ;;  %v2533_v48 = vpack.c.bf16 %v5163_v29, %v5147_v10  ;;  %v2530_v42 = vpack.c.bf16 %v5151_v26, %v5135_v23  ;;  %v2532_v41 = vpack.c.bf16 %v5155_v47, %v5139_v20  ;;  %s2905_s21 = sshll.u32 %s4102_s8, 4  ;;  %s2906_s21 = int_to_ptr.vmem [resolvable:$true] %s2905_s21 }
 0xb24   :  { %2826 = vmatprep.mubr.bf16.mxu0 %v2527_v4  ;;  %2875 = vmatprep.mubr.bf16.mxu1 %v2529_v22  ;;  %v3867_v28 = vld [vmem:[#allocation3 + $0x38] sm:$0xff]   ;;  %v3871_v55 = vld [vmem:[#allocation3 + $0x30] sm:$0xff]   ;;  %v3874_v24 = vld [vmem:[#allocation3 + $0xe8] sm:$0xff]   ;;  %s4049_s24 = scalar_lea.vmem %s2906_s21, 512  ;;  %p4054_p13 = scmp.lt.s32.totalorder %s2906_s21, %s2906_s21 }
 0xb25   :  { %3199 = vmatprep.subr.bf16.mxu1 %v3866_v9  ;;  %v3868_v40 = vld [vmem:[#allocation3 + $0xb8] sm:$0xff]   ;;  %3172 = vmatpush3.bf16.msra.mxu0 %v3867_v28  ;;  %v3872_v11 = vld [vmem:[#allocation3 + $0xb0] sm:$0xff]   ;;  %v3875_v51 = vld [vmem:[#allocation3 + $0x28] sm:$0xff]   ;;  %p4050_p12 = scmp.ne.s32.totalorder %s2906_s21, %s4049_s24  ;;  %p4055_p0 = scmp.lt.s32.totalorder %s4049_s24, %s4049_s24 }
 0xb26   :  { %3200 = vmatpush3.bf16.msra.mxu1 %v3868_v40  ;;  %3173 = vmatprep.subr.bf16.mxu0 %v3869_v63  ;;  %v3876_v46 = vld [vmem:[#allocation3 + $0xa8] sm:$0xff]   ;;  %v3877_v56 = vld [vmem:[#allocation3 + $0x60] sm:$0xff]   ;;  %v3881_v16 = vld [vmem:[#allocation3 + $0x58] sm:$0xff]  }
 0xb27   :  { %3201 = vmatprep.subr.bf16.mxu1 %v3870_v57  ;;  %v3878_v8 = vld [vmem:[#allocation3 + $0xe0] sm:$0xff]   ;;  %v3882_v27 = vld [vmem:[#allocation3 + $0xd8] sm:$0xff]   ;;  %v3885_v2 = vld [vmem:[#allocation3 + $0x50] sm:$0xff]   ;;  %p4056_p1 = por %p4055_p0, %p4054_p13 }
 0xb28   :  { %v3879_v0 = vld [vmem:[#allocation3 + $0x20] sm:$0xff]   ;;  %v3883_v49 = vld [vmem:[#allocation3 + $0x18] sm:$0xff]   ;;  %v3886_v17 = vld [vmem:[#allocation3 + $0xd0] sm:$0xff]  }
 0xb29   :  { %3174 = vmatpush3.bf16.msra.mxu0 %v3871_v55  ;;  %v3880_v21 = vld [vmem:[#allocation3 + $0xa0] sm:$0xff]   ;;  %v3884_v61 = vld [vmem:[#allocation3 + $0x98] sm:$0xff]   ;;  %v3887_v3 = vld [vmem:[#allocation3 + $0x10] sm:$0xff]   ;;  %p4057_p2 = pnand %p4056_p1, %p4050_p12 }
 0xb2a   :  { %3202 = vmatpush3.bf16.msra.mxu1 %v3872_v11  ;;  %3175 = vmatprep.subr.bf16.mxu0 %v3873_v37  ;;  %v3888_v44 = vld [vmem:[#allocation3 + $0x90] sm:$0xff]   ;;  %v3889_v31 = vld [vmem:[#allocation3 + $0x48] sm:$0xff]   ;;  %v3893_v33 = vld [vmem:[#allocation3 + $0x40] sm:$0xff]  }
 0xb2b   :  { %3203 = vmatprep.subr.bf16.mxu1 %v3874_v24  ;;  %v3890_v39 = vld [vmem:[#allocation3 + $0xc8] sm:$0xff]   ;;  %v3894_v34 = vld [vmem:[#allocation3 + $0xc0] sm:$0xff]  }
 0xb2c   :  { %v3891_v7 = vld [vmem:[#allocation3 + $0x8] sm:$0xff]   ;;  %v3895_v1 = vld [vmem:[#allocation3] sm:$0xff]  }
 0xb2d   :  { %3176 = vmatpush3.bf16.msra.mxu0 %v3875_v51  ;;  %v3892_v35 = vld [vmem:[#allocation3 + $0x88] sm:$0xff]   ;;  %v3896_v62 = vld [vmem:[#allocation3 + $0x80] sm:$0xff]  }
 0xb2e   :  { %3204 = vmatpush3.bf16.msra.mxu1 %v3876_v46  ;;  %3177 = vmatprep.subr.bf16.mxu0 %v3877_v56 }
 0xb2f   :  { %3205 = vmatprep.subr.bf16.mxu1 %v3878_v8 }
 0xb31   :  { %3178 = vmatpush3.bf16.msra.mxu0 %v3879_v0 }
 0xb32   :  { %3206 = vmatpush3.bf16.msra.mxu1 %v3880_v21  ;;  %3179 = vmatprep.subr.bf16.mxu0 %v3881_v16 }
 0xb33   :  { %3207 = vmatprep.subr.bf16.mxu1 %v3882_v27 }
 0xb35   :  { %3180 = vmatpush3.bf16.msra.mxu0 %v3883_v49 }
 0xb36   :  { %3208 = vmatpush3.bf16.msra.mxu1 %v3884_v61  ;;  %3181 = vmatprep.subr.bf16.mxu0 %v3885_v2 }
 0xb37   :  { %3209 = vmatprep.subr.bf16.mxu1 %v3886_v17 }
 0xb39   :  { %3182 = vmatpush3.bf16.msra.mxu0 %v3887_v3 }
 0xb3a   :  { %3210 = vmatpush3.bf16.msra.mxu1 %v3888_v44  ;;  %3183 = vmatprep.subr.bf16.mxu0 %v3889_v31 }
 0xb3b   :  { %3211 = vmatprep.subr.bf16.mxu1 %v3890_v39 }
 0xb3d   :  { %3184 = vmatpush3.bf16.msra.mxu0 %v3891_v7 }
 0xb3e   :  { %3212 = vmatpush3.bf16.msra.mxu1 %v3892_v35  ;;  %3185 = vmatprep.subr.bf16.mxu0 %v3893_v33 }
 0xb3f   :  { %3213 = vmatprep.subr.bf16.mxu1 %v3894_v34 }
 0xb41   :  { %3186 = vmatpush3.bf16.msra.mxu0 %v3895_v1 }
 0xb42   :  { %3214 = vmatpush3.bf16.msra.mxu1 %v3896_v62 }
 0xb44   :  { %2827 = vmatmul.mubr.bf16.vlgmr.msra.gmra.mxu0 %v2526_v12 }
 0xb45   :  { %2876 = vmatmul.mubr.bf16.vlgmr.msra.gmra.mxu1 %v2528_v14  ;;  %2834 = vmatprep.mubr.bf16.mxu0 %v2531_v13 }
 0xb46   :  { %2883 = vmatprep.mubr.bf16.mxu1 %v2533_v48 }
 0xb4c   :  { %2835 = vmatmul.mubr.bf16.gmra.mxu0 %v2530_v42 }
 0xb4d   :  { %2884 = vmatmul.mubr.bf16.gmra.mxu1 %v2532_v41 }
 0xc04   :  { %v3187_v15 = vpop.f32.mrf.mxu0 }
 0xc05   :  { %v3215_v38 = vpop.f32.mrf.mxu1 }
 0xc06   :  { %v3188_v25 = vpop.f32.mrf.mxu0 }
 0xc07   :  { %v3189_v5 = vadd.f32 %v3188_v25, %v3187_v15  ;;  %v3216_v52 = vpop.f32.mrf.mxu1 }
 0xc08   :  { %v3190_v60 = vpop.f32.mrf.mxu0  ;;  %v3217_v58 = vadd.f32 %v3216_v52, %v3215_v38 }
 0xc09   :  { %v2829_v10 = vadd.f32 %v3189_v5, %v4213_v32  ;;  %v3218_v6 = vpop.f32.mrf.mxu1 }
 0xc0a   :  { %v3191_v36 = vpop.f32.mrf.mxu0 }
 0xc0b   :  { %v2878_v59 = vadd.f32 %v3217_v58, %v2829_v10  ;;  %v3192_v43 = vadd.f32 %v3191_v36, %v3190_v60  ;;  %v3219_v18 = vpop.f32.mrf.mxu1 }
 0xc0c   :  { %v3193_v23 = vpop.f32.mrf.mxu0  ;;  %v3220_v47 = vadd.f32 %v3219_v18, %v3218_v6 }
 0xc0d   :  { %v2892_v26 = vadd.f32 %v2878_v59, %v4656_v19  ;;  %v2832_v20 = vadd.f32 %v3192_v43, %v4213_v32  ;;  %v3221_v45 = vpop.f32.mrf.mxu1 }
 0xc0e   :  { %v3194_v29 = vpop.f32.mrf.mxu0 }
 0xc0f   :  { %2896 = vst [vmem:[#allocation16] sm:$0xff] %v2892_v26  ;;  %v2881_v4 = vadd.f32 %v3220_v47, %v2832_v20  ;;  %v3195_v22 = vadd.f32 %v3194_v29, %v3193_v23  ;;  %v3222_v50 = vpop.f32.mrf.mxu1 }
 0xc10   :  { %v3196_v9 = vpop.f32.mrf.mxu0  ;;  %v3223_v63 = vadd.f32 %v3222_v50, %v3221_v45 }
 0xc11   :  { %v2893_v28 = vadd.f32 %v2881_v4, %v4659_v53  ;;  %v2837_v40 = vadd.f32 %v3195_v22, %v4213_v32  ;;  %v3224_v57 = vpop.f32.mrf.mxu1 }
 0xc12   :  { %v3197_v55 = vpop.f32.mrf.mxu0 }
 0xc13   :  { %2897 = vst [vmem:[#allocation16 + $0x8] sm:$0xff] %v2893_v28  ;;  %v2886_v11 = vadd.f32 %v3223_v63, %v2837_v40  ;;  %v3198_v19 = vadd.f32 %v3197_v55, %v3196_v9  ;;  %v3225_v37 = vpop.f32.mrf.mxu1 }
 0xc14   :  { %v3226_v46 = vadd.f32 %v3225_v37, %v3224_v57 }
 0xc15   :  { %v2894_v24 = vadd.f32 %v2886_v11, %v4661_v54  ;;  %v2840_v51 = vadd.f32 %v3198_v19, %v4213_v32 }
 0xc17   :  { %2898 = vst [vmem:[#allocation16 + $0x10] sm:$0xff] %v2894_v24  ;;  %v2889_v56 = vadd.f32 %v3226_v46, %v2840_v51 }
 0xc19   :  { %v2895_v53 = vadd.f32 %v2889_v56, %v4665_v30 }
 0xc1b   :  { %2899 = vst [vmem:[#allocation16 + $0x18] sm:$0xff] %v2895_v53 }
 0xc1c   :  { %4060 = shalt.err (!%p4057_p2)
}
 0xc1d   :  { %2911 = dma.vmem_to_hbm [thread:$0]  %s2906_s21, 512, %s5207_s12, [#allocation7], %s4088_s3, %s4088_s3, %s4089_s18  }
 0xc1e   :  { %4081 = dma.done.wait [#allocation7], 512  }
 0xc1f   :  { %4082 = vsyncadd [#allocation7], 4294966784 }
 0xc20   :  { %2915 = vsyncpa [#allocation6], 1 }
 0xc21   :  { %2916 = vsyncpa [#allocation10], 1 }
 0xc22   :  { %2917 = vsyncpa [#allocation13], 1 }
 0xc23   :  { %2918 = vsyncpa [#allocation7], 1 }
 0xc24   :  { %2919 = vsyncpa [#allocation8], 1 }
 0xc25   :  { %2920 = vsyncmov [#allocation4] }
 0xc28   :  { %s2921_s27 = vpop.sfrf %2920 }
 0xc29   :  { %p3066_p3 = scmp.ne.s32.totalorder %s2921_s27, 0 }
 0xc2b   :  { %2925 = shalt.err (%p3066_p3)  }
 0xc2c   :  { %2927 = vsyncmov [#allocation4 + $0x1] }
 0xc2f   :  { %s2928_s0 = vpop.sfrf %2927 }
 0xc30   :  { %p3067_p4 = scmp.ne.s32.totalorder %s2928_s0, 0 }
 0xc32   :  { %2932 = shalt.err (%p3067_p4)  }

</bundles_post_ra>
